<compile_context>
chip_gen: v6e
topology: v6e:2x2x1
jax: 0.10.0
libtpu: 0.0.40
codegen_flags: <defaults>
</compile_context>

<pallas_src>
import functools

import numpy as np

import jax
import jax.numpy as jnp
from jax.experimental import pallas as pl
from jax.experimental.pallas import tpu as pltpu

HALF = 256  # padded (wo * cout) feature width per pooling-column parity


# ------------------------------- Pallas kernel -------------------------------

def convnet_kernel(x_ref, bd1_ref, sel1_ref, shift1_ref,
                   bd2_ref, sel2_ref, shift2_ref,
                   fcw_ref, fcb_ref, out_ref, y1_scr, *, bb):
    """Fused conv1+BN+ReLU+pool -> conv2+BN+ReLU+pool -> FC for one batch block.

    x_ref    : (bb*28, 140) bf16   layer-1 row-im2col (5 taps * 28 cols), rows = sample*28 + r.
    bd1_ref  : (140, 512)   bf16   layer-1 tap weights, parity-merged, BN scale folded.
    sel1_ref : (2, bb*24, bb*28) bf16  row-pool selection + scatter into padded layer-2 rows.
    shift1   : (1, 256) f32        folded BN shift (zero in the 32 pad lanes).
    bd2_ref  : (5, 256, 512) bf16  layer-2 per-tap weights (K padded to 256), parity-merged.
    sel2_ref : (2, 7*bb, bb*24-4) bf16 row-pool selection, output rows ordered h*bb + s.
    fcw_ref  : (7, 256, 128) bf16  FC weight per pooled row h (classes padded to 128 lanes).
    fcb_ref  : (1, 128) f32        FC bias.
    out_ref  : (1, bb, 128) f32    logits for the bb samples of this grid step.
    y1_scr   : (bb*24, 256) bf16   VMEM-resident layer-1 output (zero-row-padded per sample).
    """
    # ---------------- layer 1: conv(1->16,k5,p2) + BN + ReLU + maxpool ----------------
    acc1 = jnp.dot(x_ref[...], bd1_ref[...],
                   preferred_element_type=jnp.float32)             # (bb*28, 512)
    # max over the two pooling-window columns (lane halves), add folded BN shift.
    t1 = (jnp.maximum(acc1[:, :HALF], acc1[:, HALF:])
          + shift1_ref[...]).astype(jnp.bfloat16)                  # (bb*28, 256)
    # max over the two pooling-window rows via 0/1 selection matmuls; the selection also
    # scatters results into the zero-row-padded layer-2 layout (pad rows select nothing -> 0).
    p1 = jnp.maximum(
        jnp.dot(sel1_ref[0], t1, preferred_element_type=jnp.float32),
        jnp.dot(sel1_ref[1], t1, preferred_element_type=jnp.float32))
    y1_scr[...] = jnp.maximum(p1, 0.0).astype(jnp.bfloat16)        # (bb*24, 256)

    # ---------------- layer 2: conv(16->32,k5,p2) + BN + ReLU + maxpool ----------------
    m2 = bb * 24 - 4
    acc2 = jnp.dot(y1_scr[0:m2, :], bd2_ref[0],
                   preferred_element_type=jnp.float32)             # (m2, 512)
    for ki in range(1, 5):
        acc2 = acc2 + jnp.dot(y1_scr[ki:ki + m2, :], bd2_ref[ki],
                              preferred_element_type=jnp.float32)
    t2 = (jnp.maximum(acc2[:, :HALF], acc2[:, HALF:])
          + shift2_ref[...]).astype(jnp.bfloat16)                  # (m2, 256)
    feat = jnp.maximum(
        jnp.dot(sel2_ref[0], t2, preferred_element_type=jnp.float32),
        jnp.dot(sel2_ref[1], t2, preferred_element_type=jnp.float32))
    feat = jnp.maximum(feat, 0.0).astype(jnp.bfloat16)             # (7*bb, 256), rows h*bb + s

    # ---------------- FC: 7 batched matmuls (bb, 256) @ (256, 128) ----------------
    logits = fcb_ref[...] + jnp.dot(feat[0:bb, :], fcw_ref[0],
                                    preferred_element_type=jnp.float32)
    for h in range(1, 7):
        logits = logits + jnp.dot(feat[h * bb:(h + 1) * bb, :], fcw_ref[h],
                                  preferred_element_type=jnp.float32)
    out_ref[0, :, :] = logits                                      # (bb, 128) f32


# --------------------------- parameter preparation --------------------------

def _make_block_diag_weights(w_scaled, w_in, wo, n_half, pad=2):
    """Per-tap block-diagonal conv weights, parity-merged and lane-padded.

    w_scaled : (K, K, Cin, Cout) conv weights (ki, kj, cin, cout), BN scale folded.
    returns  : (K, w_in*Cin, 2*n_half).  Row = w*Cin + c, column = cp*n_half + j*Cout + o,
               value = w_scaled[ki, kj, c, o] with kj = w - 2j - cp + pad (if 0 <= kj < K),
               implementing the kj shift, column zero-padding, and pooling-column parity split.
    """
    ksz, _, cin, cout = w_scaled.shape
    placement = np.zeros((ksz, 2, w_in, wo), np.float32)
    for kj in range(ksz):
        for cp in range(2):
            for j in range(wo):
                col = 2 * j + cp + kj - pad
                if 0 <= col < w_in:
                    placement[kj, cp, col, j] = 1.0
    bd = jnp.einsum("kpwj,ikco->iwcpjo", jnp.asarray(placement), w_scaled)
    bd = bd.reshape(ksz, w_in * cin, 2, wo * cout)
    bd = jnp.pad(bd, ((0, 0), (0, 0), (0, 0), (0, n_half - wo * cout)))
    return bd.reshape(ksz, w_in * cin, 2 * n_half)


def _make_sel1(bb):
    # Output row s*24 + 2 + j  <-  input row s*28 + 2*j + rp   (rp = pooling-row parity).
    sel = np.zeros((2, bb * 24, bb * 28), np.float32)
    for s in range(bb):
        for j in range(14):
            for rp in range(2):
                sel[rp, s * 24 + 2 + j, s * 28 + 2 * j + rp] = 1.0
    return jnp.asarray(sel, dtype=jnp.bfloat16)


def _make_sel2(bb):
    # Output row h*bb + s (h-major so the FC can slice contiguous (bb, 256) blocks)
    #  <-  input row s*24 + 2*h + rp.
    m2 = bb * 24 - 4
    sel = np.zeros((2, 7 * bb, m2), np.float32)
    for s in range(bb):
        for h in range(7):
            for rp in range(2):
                sel[rp, h * bb + s, s * 24 + 2 * h + rp] = 1.0
    return jnp.asarray(sel, dtype=jnp.bfloat16)


def prepare_params(p, bb=4, eps=1e-5):
    """One-time folding of conv/BN/fc params into kernel-ready operands."""
    def fold(w, b, g, be, m, v):
        scale = g / jnp.sqrt(v + eps)                  # (Cout,)
        shift = scale * (b - m) + be                   # (Cout,)
        w_s = jnp.transpose(w, (2, 3, 1, 0)) * scale   # (5,5,Cin,Cout) scaled
        return w_s, shift

    w1s, sh1 = fold(p["w1"], p["b1"], p["g1"], p["be1"], p["m1"], p["v1"])
    w2s, sh2 = fold(p["w2"], p["b2"], p["g2"], p["be2"], p["m2"], p["v2"])

    bd1 = _make_block_diag_weights(w1s, w_in=28, wo=14, n_half=HALF)      # (5, 28, 512)
    bd1 = bd1.reshape(5 * 28, 2 * HALF).astype(jnp.bfloat16)              # (140, 512)
    bd2 = _make_block_diag_weights(w2s, w_in=14, wo=7, n_half=HALF)       # (5, 224, 512)
    bd2 = jnp.pad(bd2, ((0, 0), (0, HALF - 224), (0, 0))).astype(jnp.bfloat16)  # (5, 256, 512)

    shift1 = jnp.pad(jnp.tile(sh1, 14), (0, HALF - 224)).reshape(1, HALF).astype(jnp.float32)
    shift2 = jnp.pad(jnp.tile(sh2, 7), (0, HALF - 224)).reshape(1, HALF).astype(jnp.float32)

    # fc weight: PyTorch (class, c*49 + h*7 + w) -> (h, w*32 + c, class), padded to (7, 256, 128).
    nc = p["fc_w"].shape[0]
    fcw = p["fc_w"].reshape(nc, 32, 7, 7).transpose(2, 3, 1, 0).reshape(7, 224, nc)
    fcw = jnp.pad(fcw, ((0, 0), (0, HALF - 224), (0, 128 - nc))).astype(jnp.bfloat16)
    fcb = jnp.pad(p["fc_b"], (0, 128 - nc)).reshape(1, 128).astype(jnp.float32)

    return {"bd1": bd1, "bd2": bd2,
            "sel1": _make_sel1(bb), "sel2": _make_sel2(bb),
            "shift1": shift1, "shift2": shift2,
            "fcw": fcw, "fcb": fcb}


# ------------------------------- forward pass -------------------------------

def convnet_forward(x_nchw, prep, bb=4, num_classes=10):
    n = x_nchw.shape[0]
    n_pad = (-n) % bb
    n_blk = n + n_pad
    nb = n_blk // bb

    # Layer-1 row-im2col (built by XLA in the wrapper; ~40 KB/sample):
    # row r holds the 5 zero-row-padded input rows r..r+4, each 28 wide -> (28, 140).
    x = x_nchw[:, 0, :, :]
    x = jnp.pad(x, ((0, n_pad), (2, 2), (0, 0))).astype(jnp.bfloat16)        # (n_blk, 32, 28)
    x = jnp.concatenate([x[:, ki:ki + 28, :] for ki in range(5)], axis=-1)   # (n_blk, 28, 140)
    x = x.reshape(n_blk * 28, 140)

    m2 = bb * 24 - 4
    flops = nb * 2 * (bb * 28 * 140 * 2 * HALF          # layer-1 conv matmul
                      + 2 * (bb * 24) * (bb * 28) * HALF  # layer-1 row-pool selections
                      + 5 * m2 * HALF * 2 * HALF          # layer-2 tap matmuls
                      + 2 * (7 * bb) * m2 * HALF          # layer-2 row-pool selections
                      + 7 * bb * HALF * 128)              # FC
    bytes_accessed = (n_blk * 28 * 140 * 2 + n_blk * 128 * 4
                      + (140 * 512 + 5 * 256 * 512 + 7 * 256 * 128) * 2
                      + (2 * bb * 24 * bb * 28 + 2 * 7 * bb * m2) * 2
                      + 2 * 256 * 4 + 128 * 4)

    out = pl.pallas_call(
        functools.partial(convnet_kernel, bb=bb),
        out_shape=jax.ShapeDtypeStruct((nb, bb, 128), jnp.float32),
        grid=(nb,),
        in_specs=[
            pl.BlockSpec((bb * 28, 140), lambda b: (b, 0)),
            pl.BlockSpec((140, 2 * HALF), lambda b: (0, 0)),
            pl.BlockSpec((2, bb * 24, bb * 28), lambda b: (0, 0, 0)),
            pl.BlockSpec((1, HALF), lambda b: (0, 0)),
            pl.BlockSpec((5, HALF, 2 * HALF), lambda b: (0, 0, 0)),
            pl.BlockSpec((2, 7 * bb, m2), lambda b: (0, 0, 0)),
            pl.BlockSpec((1, HALF), lambda b: (0, 0)),
            pl.BlockSpec((7, HALF, 128), lambda b: (0, 0, 0)),
            pl.BlockSpec((1, 128), lambda b: (0, 0)),
        ],
        out_specs=pl.BlockSpec((1, bb, 128), lambda b: (b, 0, 0)),
        scratch_shapes=[pltpu.VMEM((bb * 24, HALF), jnp.bfloat16)],
        compiler_params=pltpu.CompilerParams(
            dimension_semantics=("parallel",),
            vmem_limit_bytes=32 * 1024 * 1024),
        cost_estimate=pl.CostEstimate(flops=flops, transcendentals=0,
                                      bytes_accessed=bytes_accessed),
    )(x, prep["bd1"], prep["sel1"], prep["shift1"],
      prep["bd2"], prep["sel2"], prep["shift2"],
      prep["fcw"], prep["fcb"])

    return out.reshape(n_blk, 128)[:n, :num_classes]


# ------------------------------- reference & init ---------------------------

def convnet_reference(x_nchw, p, eps=1e-5):
    """Plain-JAX f32 reference matching the PyTorch module (inference-mode BN)."""
    def block(x, w, b, g, be, m, v):
        y = jax.lax.conv_general_dilated(
            x, w, window_strides=(1, 1), padding=((2, 2), (2, 2)),
            dimension_numbers=("NCHW", "OIHW", "NCHW"))
        y = y + b[None, :, None, None]
        y = (y - m[None, :, None, None]) * (
            g[None, :, None, None] / jnp.sqrt(v[None, :, None, None] + eps)
        ) + be[None, :, None, None]
        y = jnp.maximum(y, 0.0)
        n, c, hh, ww = y.shape
        return y.reshape(n, c, hh // 2, 2, ww // 2, 2).max(axis=(3, 5))

    y = block(x_nchw, p["w1"], p["b1"], p["g1"], p["be1"], p["m1"], p["v1"])
    y = block(y, p["w2"], p["b2"], p["g2"], p["be2"], p["m2"], p["v2"])
    feat = y.reshape(y.shape[0], -1)
    return feat @ p["fc_w"].T + p["fc_b"]


def init_params(key, num_classes=10):
    ks = jax.random.split(key, 10)
    p = {}
    p["w1"] = 0.1 * jax.random.normal(ks[0], (16, 1, 5, 5), jnp.float32)
    p["b1"] = 0.1 * jax.random.normal(ks[1], (16,), jnp.float32)
    p["g1"] = 1.0 + 0.1 * jax.random.normal(ks[2], (16,), jnp.float32)
    p["be1"] = 0.1 * jax.random.normal(ks[3], (16,), jnp.float32)
    p["m1"] = jnp.zeros((16,), jnp.float32)
    p["v1"] = jnp.ones((16,), jnp.float32)

    p["w2"] = 0.05 * jax.random.normal(ks[4], (32, 16, 5, 5), jnp.float32)
    p["b2"] = 0.1 * jax.random.normal(ks[5], (32,), jnp.float32)
    p["g2"] = 1.0 + 0.1 * jax.random.normal(ks[6], (32,), jnp.float32)
    p["be2"] = 0.1 * jax.random.normal(ks[7], (32,), jnp.float32)
    p["m2"] = jnp.zeros((32,), jnp.float32)
    p["v2"] = jnp.ones((32,), jnp.float32)

    p["fc_w"] = 0.02 * jax.random.normal(ks[8], (num_classes, 7 * 7 * 32), jnp.float32)
    p["fc_b"] = 0.02 * jax.random.normal(ks[9], (num_classes,), jnp.float32)
    return p


if __name__ == "__main__":
    key = jax.random.PRNGKey(0)
    k_x, k_p = jax.random.split(key)
    # MNIST-like input: (batch=8, 1 channel, 28x28); bb=4 -> grid length 2.
    x = jax.random.normal(k_x, (8, 1, 28, 28), jnp.float32)
    params = init_params(k_p, num_classes=10)
    prep = prepare_params(params, bb=4)     # one-time weight folding (BN scale, fc transpose)

    fwd = jax.jit(convnet_forward, static_argnames=("bb", "num_classes"))
    out = jax.block_until_ready(fwd(x, prep, bb=4, num_classes=10))
    assert out.shape == (8, 10) and out.dtype == jnp.float32

    ref = jax.block_until_ready(convnet_reference(x, params))
    assert jnp.allclose(out, ref, rtol=5e-2, atol=5e-2), (
        "mismatch vs reference: max abs err = "
        + str(float(jnp.max(jnp.abs(out - ref)))))

    print("KERNEL_OK")
</pallas_src>

<mosaic_0001>
module attributes {stable_mosaic.version = 11 : i64} {
  func.func @convnet_kernel(%arg0: i32, %arg1: memref<112x140xbf16, #tpu.memory_space<vmem>>, %arg2: memref<140x512xbf16, #tpu.memory_space<vmem>>, %arg3: memref<2x96x112xbf16, #tpu.memory_space<vmem>>, %arg4: memref<1x256xf32, #tpu.memory_space<vmem>>, %arg5: memref<5x256x512xbf16, #tpu.memory_space<vmem>>, %arg6: memref<2x28x92xbf16, #tpu.memory_space<vmem>>, %arg7: memref<1x256xf32, #tpu.memory_space<vmem>>, %arg8: memref<7x256x128xbf16, #tpu.memory_space<vmem>>, %arg9: memref<1x128xf32, #tpu.memory_space<vmem>>, %arg10: memref<1x4x128xf32, #tpu.memory_space<vmem>>, %arg11: memref<96x256xbf16, #tpu.memory_space<vmem>>) attributes {dimension_semantics = [#tpu.dimension_semantics<parallel>], iteration_bounds = array<i64: 2>, scalar_prefetch = 0 : i64, scratch_operands = 1 : i64, tpu.core_type = #tpu.core_type<tc>, window_params = [{transform_indices = @transform_0, window_bounds = array<i64: 112, 140>}, {pipeline_mode = #tpu.pipeline_mode<synchronous>, transform_indices = @transform_1, window_bounds = array<i64: 140, 512>}, {pipeline_mode = #tpu.pipeline_mode<synchronous>, transform_indices = @transform_2, window_bounds = array<i64: 2, 96, 112>}, {pipeline_mode = #tpu.pipeline_mode<synchronous>, transform_indices = @transform_3, window_bounds = array<i64: 1, 256>}, {pipeline_mode = #tpu.pipeline_mode<synchronous>, transform_indices = @transform_4, window_bounds = array<i64: 5, 256, 512>}, {pipeline_mode = #tpu.pipeline_mode<synchronous>, transform_indices = @transform_5, window_bounds = array<i64: 2, 28, 92>}, {pipeline_mode = #tpu.pipeline_mode<synchronous>, transform_indices = @transform_6, window_bounds = array<i64: 1, 256>}, {pipeline_mode = #tpu.pipeline_mode<synchronous>, transform_indices = @transform_7, window_bounds = array<i64: 7, 256, 128>}, {pipeline_mode = #tpu.pipeline_mode<synchronous>, transform_indices = @transform_8, window_bounds = array<i64: 1, 128>}, {transform_indices = @transform_9, window_bounds = array<i64: 1, 4, 128>}]} {
    %c0 = arith.constant 0 : index
    %c0_0 = arith.constant 0 : index
    %0 = vector.load %arg1[%c0, %c0_0] : memref<112x140xbf16, #tpu.memory_space<vmem>>, vector<112x140xbf16>
    %c0_1 = arith.constant 0 : index
    %c0_2 = arith.constant 0 : index
    %1 = vector.load %arg2[%c0_1, %c0_2] : memref<140x512xbf16, #tpu.memory_space<vmem>>, vector<140x512xbf16>
    %cst = arith.constant dense<0.000000e+00> : vector<112x512xf32>
    %2 = tpu.matmul %0, %1, %cst {dimension_numbers = #tpu.dot_dimension_numbers<[1], [0], [0], [1], [0, 0, 1, 1], [], []>} : vector<112x140xbf16>, vector<140x512xbf16>, vector<112x512xf32> -> vector<112x512xf32>
    %3 = vector.extract_strided_slice %2 {offsets = [0, 0], sizes = [112, 256], strides = [1, 1]} : vector<112x512xf32> to vector<112x256xf32>
    %4 = vector.extract_strided_slice %2 {offsets = [0, 256], sizes = [112, 256], strides = [1, 1]} : vector<112x512xf32> to vector<112x256xf32>
    %5 = arith.maximumf %3, %4 : vector<112x256xf32>
    %c0_3 = arith.constant 0 : index
    %c0_4 = arith.constant 0 : index
    %6 = vector.load %arg4[%c0_3, %c0_4] : memref<1x256xf32, #tpu.memory_space<vmem>>, vector<1x256xf32>
    %7 = vector.broadcast %6 : vector<1x256xf32> to vector<112x256xf32>
    %8 = arith.addf %5, %7 : vector<112x256xf32>
    %9 = arith.truncf %8 : vector<112x256xf32> to vector<112x256xbf16>
    %c0_5 = arith.constant 0 : index
    %c0_6 = arith.constant 0 : index
    %c0_7 = arith.constant 0 : index
    %10 = vector.load %arg3[%c0_5, %c0_6, %c0_7] : memref<2x96x112xbf16, #tpu.memory_space<vmem>>, vector<1x96x112xbf16>
    %11 = vector.shape_cast %10 : vector<1x96x112xbf16> to vector<96x112xbf16>
    %cst_8 = arith.constant dense<0.000000e+00> : vector<96x256xf32>
    %12 = tpu.matmul %11, %9, %cst_8 {dimension_numbers = #tpu.dot_dimension_numbers<[1], [0], [0], [1], [0, 0, 1, 1], [], []>} : vector<96x112xbf16>, vector<112x256xbf16>, vector<96x256xf32> -> vector<96x256xf32>
    %c1 = arith.constant 1 : index
    %c0_9 = arith.constant 0 : index
    %c0_10 = arith.constant 0 : index
    %13 = vector.load %arg3[%c1, %c0_9, %c0_10] : memref<2x96x112xbf16, #tpu.memory_space<vmem>>, vector<1x96x112xbf16>
    %14 = vector.shape_cast %13 : vector<1x96x112xbf16> to vector<96x112xbf16>
    %cst_11 = arith.constant dense<0.000000e+00> : vector<96x256xf32>
    %15 = tpu.matmul %14, %9, %cst_11 {dimension_numbers = #tpu.dot_dimension_numbers<[1], [0], [0], [1], [0, 0, 1, 1], [], []>} : vector<96x112xbf16>, vector<112x256xbf16>, vector<96x256xf32> -> vector<96x256xf32>
    %16 = arith.maximumf %12, %15 : vector<96x256xf32>
    %cst_12 = arith.constant 0.000000e+00 : f32
    %17 = vector.broadcast %cst_12 : f32 to vector<96x256xf32>
    %18 = arith.maximumf %16, %17 : vector<96x256xf32>
    %19 = arith.truncf %18 : vector<96x256xf32> to vector<96x256xbf16>
    %c0_13 = arith.constant 0 : index
    %c0_14 = arith.constant 0 : index
    %20 = vector.load %arg11[%c0_13, %c0_14] : memref<96x256xbf16, #tpu.memory_space<vmem>>, vector<96x256xbf16>
    tpu.vector_store %arg11[%c0_13, %c0_14], %19 {strides = array<i32>} : memref<96x256xbf16, #tpu.memory_space<vmem>>, vector<96x256xbf16>,
    %c0_15 = arith.constant 0 : index
    %c0_16 = arith.constant 0 : index
    %21 = vector.load %arg11[%c0_15, %c0_16] : memref<96x256xbf16, #tpu.memory_space<vmem>>, vector<92x256xbf16>
    %c0_17 = arith.constant 0 : index
    %c0_18 = arith.constant 0 : index
    %c0_19 = arith.constant 0 : index
    %22 = vector.load %arg5[%c0_17, %c0_18, %c0_19] : memref<5x256x512xbf16, #tpu.memory_space<vmem>>, vector<1x256x512xbf16>
    %23 = vector.shape_cast %22 : vector<1x256x512xbf16> to vector<256x512xbf16>
    %cst_20 = arith.constant dense<0.000000e+00> : vector<92x512xf32>
    %24 = tpu.matmul %21, %23, %cst_20 {dimension_numbers = #tpu.dot_dimension_numbers<[1], [0], [0], [1], [0, 0, 1, 1], [], []>} : vector<92x256xbf16>, vector<256x512xbf16>, vector<92x512xf32> -> vector<92x512xf32>
    %c1_21 = arith.constant 1 : index
    %c0_22 = arith.constant 0 : index
    %25 = vector.load %arg11[%c1_21, %c0_22] : memref<96x256xbf16, #tpu.memory_space<vmem>>, vector<92x256xbf16>
    %c1_23 = arith.constant 1 : index
    %c0_24 = arith.constant 0 : index
    %c0_25 = arith.constant 0 : index
    %26 = vector.load %arg5[%c1_23, %c0_24, %c0_25] : memref<5x256x512xbf16, #tpu.memory_space<vmem>>, vector<1x256x512xbf16>
    %27 = vector.shape_cast %26 : vector<1x256x512xbf16> to vector<256x512xbf16>
    %cst_26 = arith.constant dense<0.000000e+00> : vector<92x512xf32>
    %28 = tpu.matmul %25, %27, %cst_26 {dimension_numbers = #tpu.dot_dimension_numbers<[1], [0], [0], [1], [0, 0, 1, 1], [], []>} : vector<92x256xbf16>, vector<256x512xbf16>, vector<92x512xf32> -> vector<92x512xf32>
    %29 = arith.addf %24, %28 : vector<92x512xf32>
    %c2 = arith.constant 2 : index
    %c0_27 = arith.constant 0 : index
    %30 = vector.load %arg11[%c2, %c0_27] : memref<96x256xbf16, #tpu.memory_space<vmem>>, vector<92x256xbf16>
    %c2_28 = arith.constant 2 : index
    %c0_29 = arith.constant 0 : index
    %c0_30 = arith.constant 0 : index
    %31 = vector.load %arg5[%c2_28, %c0_29, %c0_30] : memref<5x256x512xbf16, #tpu.memory_space<vmem>>, vector<1x256x512xbf16>
    %32 = vector.shape_cast %31 : vector<1x256x512xbf16> to vector<256x512xbf16>
    %cst_31 = arith.constant dense<0.000000e+00> : vector<92x512xf32>
    %33 = tpu.matmul %30, %32, %cst_31 {dimension_numbers = #tpu.dot_dimension_numbers<[1], [0], [0], [1], [0, 0, 1, 1], [], []>} : vector<92x256xbf16>, vector<256x512xbf16>, vector<92x512xf32> -> vector<92x512xf32>
    %34 = arith.addf %29, %33 : vector<92x512xf32>
    %c3 = arith.constant 3 : index
    %c0_32 = arith.constant 0 : index
    %35 = vector.load %arg11[%c3, %c0_32] : memref<96x256xbf16, #tpu.memory_space<vmem>>, vector<92x256xbf16>
    %c3_33 = arith.constant 3 : index
    %c0_34 = arith.constant 0 : index
    %c0_35 = arith.constant 0 : index
    %36 = vector.load %arg5[%c3_33, %c0_34, %c0_35] : memref<5x256x512xbf16, #tpu.memory_space<vmem>>, vector<1x256x512xbf16>
    %37 = vector.shape_cast %36 : vector<1x256x512xbf16> to vector<256x512xbf16>
    %cst_36 = arith.constant dense<0.000000e+00> : vector<92x512xf32>
    %38 = tpu.matmul %35, %37, %cst_36 {dimension_numbers = #tpu.dot_dimension_numbers<[1], [0], [0], [1], [0, 0, 1, 1], [], []>} : vector<92x256xbf16>, vector<256x512xbf16>, vector<92x512xf32> -> vector<92x512xf32>
    %39 = arith.addf %34, %38 : vector<92x512xf32>
    %c4 = arith.constant 4 : index
    %c0_37 = arith.constant 0 : index
    %40 = vector.load %arg11[%c4, %c0_37] : memref<96x256xbf16, #tpu.memory_space<vmem>>, vector<92x256xbf16>
    %c4_38 = arith.constant 4 : index
    %c0_39 = arith.constant 0 : index
    %c0_40 = arith.constant 0 : index
    %41 = vector.load %arg5[%c4_38, %c0_39, %c0_40] : memref<5x256x512xbf16, #tpu.memory_space<vmem>>, vector<1x256x512xbf16>
    %42 = vector.shape_cast %41 : vector<1x256x512xbf16> to vector<256x512xbf16>
    %cst_41 = arith.constant dense<0.000000e+00> : vector<92x512xf32>
    %43 = tpu.matmul %40, %42, %cst_41 {dimension_numbers = #tpu.dot_dimension_numbers<[1], [0], [0], [1], [0, 0, 1, 1], [], []>} : vector<92x256xbf16>, vector<256x512xbf16>, vector<92x512xf32> -> vector<92x512xf32>
    %44 = arith.addf %39, %43 : vector<92x512xf32>
    %45 = vector.extract_strided_slice %44 {offsets = [0, 0], sizes = [92, 256], strides = [1, 1]} : vector<92x512xf32> to vector<92x256xf32>
    %46 = vector.extract_strided_slice %44 {offsets = [0, 256], sizes = [92, 256], strides = [1, 1]} : vector<92x512xf32> to vector<92x256xf32>
    %47 = arith.maximumf %45, %46 : vector<92x256xf32>
    %c0_42 = arith.constant 0 : index
    %c0_43 = arith.constant 0 : index
    %48 = vector.load %arg7[%c0_42, %c0_43] : memref<1x256xf32, #tpu.memory_space<vmem>>, vector<1x256xf32>
    %49 = vector.broadcast %48 : vector<1x256xf32> to vector<92x256xf32>
    %50 = arith.addf %47, %49 : vector<92x256xf32>
    %51 = arith.truncf %50 : vector<92x256xf32> to vector<92x256xbf16>
    %c0_44 = arith.constant 0 : index
    %c0_45 = arith.constant 0 : index
    %c0_46 = arith.constant 0 : index
    %52 = vector.load %arg6[%c0_44, %c0_45, %c0_46] : memref<2x28x92xbf16, #tpu.memory_space<vmem>>, vector<1x28x92xbf16>
    %53 = vector.shape_cast %52 : vector<1x28x92xbf16> to vector<28x92xbf16>
    %cst_47 = arith.constant dense<0.000000e+00> : vector<28x256xf32>
    %54 = tpu.matmul %53, %51, %cst_47 {dimension_numbers = #tpu.dot_dimension_numbers<[1], [0], [0], [1], [0, 0, 1, 1], [], []>} : vector<28x92xbf16>, vector<92x256xbf16>, vector<28x256xf32> -> vector<28x256xf32>
    %c1_48 = arith.constant 1 : index
    %c0_49 = arith.constant 0 : index
    %c0_50 = arith.constant 0 : index
    %55 = vector.load %arg6[%c1_48, %c0_49, %c0_50] : memref<2x28x92xbf16, #tpu.memory_space<vmem>>, vector<1x28x92xbf16>
    %56 = vector.shape_cast %55 : vector<1x28x92xbf16> to vector<28x92xbf16>
    %cst_51 = arith.constant dense<0.000000e+00> : vector<28x256xf32>
    %57 = tpu.matmul %56, %51, %cst_51 {dimension_numbers = #tpu.dot_dimension_numbers<[1], [0], [0], [1], [0, 0, 1, 1], [], []>} : vector<28x92xbf16>, vector<92x256xbf16>, vector<28x256xf32> -> vector<28x256xf32>
    %58 = arith.maximumf %54, %57 : vector<28x256xf32>
    %cst_52 = arith.constant 0.000000e+00 : f32
    %59 = vector.broadcast %cst_52 : f32 to vector<28x256xf32>
    %60 = arith.maximumf %58, %59 : vector<28x256xf32>
    %61 = arith.truncf %60 : vector<28x256xf32> to vector<28x256xbf16>
    %c0_53 = arith.constant 0 : index
    %c0_54 = arith.constant 0 : index
    %62 = vector.load %arg9[%c0_53, %c0_54] : memref<1x128xf32, #tpu.memory_space<vmem>>, vector<1x128xf32>
    %63 = vector.extract_strided_slice %61 {offsets = [0, 0], sizes = [4, 256], strides = [1, 1]} : vector<28x256xbf16> to vector<4x256xbf16>
    %c0_55 = arith.constant 0 : index
    %c0_56 = arith.constant 0 : index
    %c0_57 = arith.constant 0 : index
    %64 = vector.load %arg8[%c0_55, %c0_56, %c0_57] : memref<7x256x128xbf16, #tpu.memory_space<vmem>>, vector<1x256x128xbf16>
    %65 = vector.shape_cast %64 : vector<1x256x128xbf16> to vector<256x128xbf16>
    %cst_58 = arith.constant dense<0.000000e+00> : vector<4x128xf32>
    %66 = tpu.matmul %63, %65, %cst_58 {dimension_numbers = #tpu.dot_dimension_numbers<[1], [0], [0], [1], [0, 0, 1, 1], [], []>} : vector<4x256xbf16>, vector<256x128xbf16>, vector<4x128xf32> -> vector<4x128xf32>
    %67 = vector.broadcast %62 : vector<1x128xf32> to vector<4x128xf32>
    %68 = arith.addf %67, %66 : vector<4x128xf32>
    %69 = vector.extract_strided_slice %61 {offsets = [4, 0], sizes = [4, 256], strides = [1, 1]} : vector<28x256xbf16> to vector<4x256xbf16>
    %c1_59 = arith.constant 1 : index
    %c0_60 = arith.constant 0 : index
    %c0_61 = arith.constant 0 : index
    %70 = vector.load %arg8[%c1_59, %c0_60, %c0_61] : memref<7x256x128xbf16, #tpu.memory_space<vmem>>, vector<1x256x128xbf16>
    %71 = vector.shape_cast %70 : vector<1x256x128xbf16> to vector<256x128xbf16>
    %cst_62 = arith.constant dense<0.000000e+00> : vector<4x128xf32>
    %72 = tpu.matmul %69, %71, %cst_62 {dimension_numbers = #tpu.dot_dimension_numbers<[1], [0], [0], [1], [0, 0, 1, 1], [], []>} : vector<4x256xbf16>, vector<256x128xbf16>, vector<4x128xf32> -> vector<4x128xf32>
    %73 = arith.addf %68, %72 : vector<4x128xf32>
    %74 = vector.extract_strided_slice %61 {offsets = [8, 0], sizes = [4, 256], strides = [1, 1]} : vector<28x256xbf16> to vector<4x256xbf16>
    %c2_63 = arith.constant 2 : index
    %c0_64 = arith.constant 0 : index
    %c0_65 = arith.constant 0 : index
    %75 = vector.load %arg8[%c2_63, %c0_64, %c0_65] : memref<7x256x128xbf16, #tpu.memory_space<vmem>>, vector<1x256x128xbf16>
    %76 = vector.shape_cast %75 : vector<1x256x128xbf16> to vector<256x128xbf16>
    %cst_66 = arith.constant dense<0.000000e+00> : vector<4x128xf32>
    %77 = tpu.matmul %74, %76, %cst_66 {dimension_numbers = #tpu.dot_dimension_numbers<[1], [0], [0], [1], [0, 0, 1, 1], [], []>} : vector<4x256xbf16>, vector<256x128xbf16>, vector<4x128xf32> -> vector<4x128xf32>
    %78 = arith.addf %73, %77 : vector<4x128xf32>
    %79 = vector.extract_strided_slice %61 {offsets = [12, 0], sizes = [4, 256], strides = [1, 1]} : vector<28x256xbf16> to vector<4x256xbf16>
    %c3_67 = arith.constant 3 : index
    %c0_68 = arith.constant 0 : index
    %c0_69 = arith.constant 0 : index
    %80 = vector.load %arg8[%c3_67, %c0_68, %c0_69] : memref<7x256x128xbf16, #tpu.memory_space<vmem>>, vector<1x256x128xbf16>
    %81 = vector.shape_cast %80 : vector<1x256x128xbf16> to vector<256x128xbf16>
    %cst_70 = arith.constant dense<0.000000e+00> : vector<4x128xf32>
    %82 = tpu.matmul %79, %81, %cst_70 {dimension_numbers = #tpu.dot_dimension_numbers<[1], [0], [0], [1], [0, 0, 1, 1], [], []>} : vector<4x256xbf16>, vector<256x128xbf16>, vector<4x128xf32> -> vector<4x128xf32>
    %83 = arith.addf %78, %82 : vector<4x128xf32>
    %84 = vector.extract_strided_slice %61 {offsets = [16, 0], sizes = [4, 256], strides = [1, 1]} : vector<28x256xbf16> to vector<4x256xbf16>
    %c4_71 = arith.constant 4 : index
    %c0_72 = arith.constant 0 : index
    %c0_73 = arith.constant 0 : index
    %85 = vector.load %arg8[%c4_71, %c0_72, %c0_73] : memref<7x256x128xbf16, #tpu.memory_space<vmem>>, vector<1x256x128xbf16>
    %86 = vector.shape_cast %85 : vector<1x256x128xbf16> to vector<256x128xbf16>
    %cst_74 = arith.constant dense<0.000000e+00> : vector<4x128xf32>
    %87 = tpu.matmul %84, %86, %cst_74 {dimension_numbers = #tpu.dot_dimension_numbers<[1], [0], [0], [1], [0, 0, 1, 1], [], []>} : vector<4x256xbf16>, vector<256x128xbf16>, vector<4x128xf32> -> vector<4x128xf32>
    %88 = arith.addf %83, %87 : vector<4x128xf32>
    %89 = vector.extract_strided_slice %61 {offsets = [20, 0], sizes = [4, 256], strides = [1, 1]} : vector<28x256xbf16> to vector<4x256xbf16>
    %c5 = arith.constant 5 : index
    %c0_75 = arith.constant 0 : index
    %c0_76 = arith.constant 0 : index
    %90 = vector.load %arg8[%c5, %c0_75, %c0_76] : memref<7x256x128xbf16, #tpu.memory_space<vmem>>, vector<1x256x128xbf16>
    %91 = vector.shape_cast %90 : vector<1x256x128xbf16> to vector<256x128xbf16>
    %cst_77 = arith.constant dense<0.000000e+00> : vector<4x128xf32>
    %92 = tpu.matmul %89, %91, %cst_77 {dimension_numbers = #tpu.dot_dimension_numbers<[1], [0], [0], [1], [0, 0, 1, 1], [], []>} : vector<4x256xbf16>, vector<256x128xbf16>, vector<4x128xf32> -> vector<4x128xf32>
    %93 = arith.addf %88, %92 : vector<4x128xf32>
    %94 = vector.extract_strided_slice %61 {offsets = [24, 0], sizes = [4, 256], strides = [1, 1]} : vector<28x256xbf16> to vector<4x256xbf16>
    %c6 = arith.constant 6 : index
    %c0_78 = arith.constant 0 : index
    %c0_79 = arith.constant 0 : index
    %95 = vector.load %arg8[%c6, %c0_78, %c0_79] : memref<7x256x128xbf16, #tpu.memory_space<vmem>>, vector<1x256x128xbf16>
    %96 = vector.shape_cast %95 : vector<1x256x128xbf16> to vector<256x128xbf16>
    %cst_80 = arith.constant dense<0.000000e+00> : vector<4x128xf32>
    %97 = tpu.matmul %94, %96, %cst_80 {dimension_numbers = #tpu.dot_dimension_numbers<[1], [0], [0], [1], [0, 0, 1, 1], [], []>} : vector<4x256xbf16>, vector<256x128xbf16>, vector<4x128xf32> -> vector<4x128xf32>
    %98 = arith.addf %93, %97 : vector<4x128xf32>
    %c0_81 = arith.constant 0 : index
    %c0_82 = arith.constant 0 : index
    %c0_83 = arith.constant 0 : index
    %99 = vector.load %arg10[%c0_81, %c0_82, %c0_83] : memref<1x4x128xf32, #tpu.memory_space<vmem>>, vector<1x4x128xf32>
    %100 = vector.shape_cast %99 : vector<1x4x128xf32> to vector<4x128xf32>
    %101 = vector.shape_cast %98 : vector<4x128xf32> to vector<1x4x128xf32>
    tpu.vector_store %arg10[%c0_81, %c0_82, %c0_83], %101 {strides = array<i32>} : memref<1x4x128xf32, #tpu.memory_space<vmem>>, vector<1x4x128xf32>,
    return
  }
  func.func @transform_0(%arg0: i32) -> (i32, i32) {
    %c0_i32 = arith.constant 0 : i32
    %c0_i32_0 = arith.constant 0 : i32
    return %arg0, %c0_i32 : i32, i32
  }
  func.func @transform_1(%arg0: i32) -> (i32, i32) {
    %c0_i32 = arith.constant 0 : i32
    %c0_i32_0 = arith.constant 0 : i32
    %c0_i32_1 = arith.constant 0 : i32
    return %c0_i32, %c0_i32_0 : i32, i32
  }
  func.func @transform_2(%arg0: i32) -> (i32, i32, i32) {
    %c0_i32 = arith.constant 0 : i32
    %c0_i32_0 = arith.constant 0 : i32
    %c0_i32_1 = arith.constant 0 : i32
    %c0_i32_2 = arith.constant 0 : i32
    return %c0_i32, %c0_i32_0, %c0_i32_1 : i32, i32, i32
  }
  func.func @transform_3(%arg0: i32) -> (i32, i32) {
    %c0_i32 = arith.constant 0 : i32
    %c0_i32_0 = arith.constant 0 : i32
    %c0_i32_1 = arith.constant 0 : i32
    return %c0_i32, %c0_i32_0 : i32, i32
  }
  func.func @transform_4(%arg0: i32) -> (i32, i32, i32) {
    %c0_i32 = arith.constant 0 : i32
    %c0_i32_0 = arith.constant 0 : i32
    %c0_i32_1 = arith.constant 0 : i32
    %c0_i32_2 = arith.constant 0 : i32
    return %c0_i32, %c0_i32_0, %c0_i32_1 : i32, i32, i32
  }
  func.func @transform_5(%arg0: i32) -> (i32, i32, i32) {
    %c0_i32 = arith.constant 0 : i32
    %c0_i32_0 = arith.constant 0 : i32
    %c0_i32_1 = arith.constant 0 : i32
    %c0_i32_2 = arith.constant 0 : i32
    return %c0_i32, %c0_i32_0, %c0_i32_1 : i32, i32, i32
  }
  func.func @transform_6(%arg0: i32) -> (i32, i32) {
    %c0_i32 = arith.constant 0 : i32
    %c0_i32_0 = arith.constant 0 : i32
    %c0_i32_1 = arith.constant 0 : i32
    return %c0_i32, %c0_i32_0 : i32, i32
  }
  func.func @transform_7(%arg0: i32) -> (i32, i32, i32) {
    %c0_i32 = arith.constant 0 : i32
    %c0_i32_0 = arith.constant 0 : i32
    %c0_i32_1 = arith.constant 0 : i32
    %c0_i32_2 = arith.constant 0 : i32
    return %c0_i32, %c0_i32_0, %c0_i32_1 : i32, i32, i32
  }
  func.func @transform_8(%arg0: i32) -> (i32, i32) {
    %c0_i32 = arith.constant 0 : i32
    %c0_i32_0 = arith.constant 0 : i32
    %c0_i32_1 = arith.constant 0 : i32
    return %c0_i32, %c0_i32_0 : i32, i32
  }
  func.func @transform_9(%arg0: i32) -> (i32, i32, i32) {
    %c0_i32 = arith.constant 0 : i32
    %c0_i32_0 = arith.constant 0 : i32
    %c0_i32_1 = arith.constant 0 : i32
    return %arg0, %c0_i32, %c0_i32_0 : i32, i32, i32
  }
}

</mosaic_0001>

<bundles_post_ra>
// kernel: convnet_forward.1
= control target key start
LH: loop header
LB: loop body
LE: loop exit
PB: predicated region body
PF: predicated region fallthrough
CT: control target
= control target key end

     0   :  { %14 = vsyncpa [#allocation4], 0  ;;  %s10615_s0 = inlined_call_operand.vmem [shape: bf16[224,140], index: 0, kind: input, shape index: {}]   ;;  %s10616_s1 = inlined_call_operand.hbm [shape: bf16[140,512], index: 1, kind: input, shape index: {}]   ;;  %s10617_s2 = inlined_call_operand.vmem [shape: bf16[2,96,112], index: 2, kind: input, shape index: {}]   ;;  %s10618_s3 = inlined_call_operand.vmem [shape: f32[1,256], index: 3, kind: input, shape index: {}]   ;;  %s10619_s4 = inlined_call_operand.vmem [shape: bf16[5,256,512], index: 4, kind: input, shape index: {}]   ;;  %s10620_s5 = inlined_call_operand.vmem [shape: bf16[2,28,92], index: 5, kind: input, shape index: {}]   ;;  %s10621_s6 = inlined_call_operand.vmem [shape: f32[1,256], index: 6, kind: input, shape index: {}]   ;;  %s10622_s7 = inlined_call_operand.hbm [shape: bf16[7,256,128], index: 7, kind: input, shape index: {}]   ;;  %s10623_s8 = inlined_call_operand.vmem [shape: f32[1,128], index: 8, kind: input, shape index: {}]   ;;  %s10624_s9 = inlined_call_operand.hbm [shape: f32[2,4,128], index: 9, kind: output, shape index: {}]  }
   0x1   :  { %15 = vsyncpa [#allocation7], 0 }
   0x2   :  { %16 = vsyncpa [#allocation5], 0 }
   0x3   :  { %18 = vsyncpa [#allocation5 + $0x1], 0  ;;  %s8289_s30 = smov 0   ;;  %s8291_s10 = smov 0  }
   0x4   :  { %s8293_s11 = smov 0   ;;  %s8295_s12 = smov 0  }
   0x5 LB: > { %s8310_s13 = sadd.s32 4294967295, %s8229_s12   ;;  %s6331_s14 = sadd.s32 4294967294, %s8229_s12   ;;  %s8229_s12 = sphi %s8295_s12, %s10721_s12   ;;  %s8225_s11 = sphi %s8293_s11, %s10720_s11   ;;  %s8221_s10 = sphi %s8291_s10, %s10719_s10   ;;  %s8217_s30 = sphi %s8289_s30, %s10718_s30  }
   0x6   : > { %s8314_s15 = sadd.s32 1, %s8229_s12   ;;  %s225_s16 = sadd.s32 1, %s8225_s11 }
   0x7   : > { %s222_s17 = ssub.s32 %s8229_s12, %s8314_s15  ;;  %p235_p0 = scmp.ne.s32.totalorder %s8225_s11, %s8221_s10 }
   0x8   : > { %p223_p1 = scmp.eq.s32.totalorder %s222_s17, 0  ;;  %p236_p2 = scmp.eq.s32.totalorder %s8310_s13, 1 }
   0x9   : > { %p241_p3 = scmp.ne.s32.totalorder %s8221_s10, %s8217_s30  ;;  %p242_p4 = scmp.eq.s32.totalorder %s6331_s14, 1 }
   0xa   : > { %s8325_s18 = scalar_select %p223_p1, %s8225_s11, %s225_s16  }
   0xb   : > { %p8327_p5 = por %p236_p2, %p235_p0  ;;  %p8331_p6 = por %p242_p4, %p241_p3 }
   0xc   : > { %10638 = sst [smem:[#allocation12_spill]] %s8325_s18  ;;  %p6332_p7 = scmp.ge.s32.totalorder %s8229_s12, 1 }
   0xd   : > { %s10640_s20 = scalar_select %p8331_p6, 1, 0 }
   0xe   : > { %p249_p8 = scmp.lt.s32.totalorder %s8229_s12, 3  ;;  %p10625_p9 = scmp.eq.s32.totalorder %s8310_s13, 0 }
   0xf   : > { %s8231_s22 = smov [#allocation3]   ;;  %s8232_s25 = smov [#allocation6]  }
  0x10   : > { %p8338_p10 = pnand %p6332_p7, %p249_p8  ;;  %s261_s23 = sshll.u32 %s8231_s22, 4  ;;  %s262_s23 = int_to_ptr.vmem [resolvable:$true] %s261_s23 }
  0x11   : > { %s289_s26 = sshll.u32 %s8232_s25, 4  ;;  %s8120_s27 = scalar_lea.vmem %s262_s23, 4608  ;;  %s290_s26 = int_to_ptr.vmem [resolvable:$true] %s289_s26 }
  0x12   : > { %p7360_p11 = pneg %p8338_p10  ;;  %p8121_p0 = scmp.ne.s32.totalorder %s262_s23, %s8120_s27 }
  0x13   : > { %p8128_p3 = scmp.lt.s32.totalorder %s262_s23, %s262_s23  ;;  %p8129_p4 = scmp.lt.s32.totalorder %s8120_s27, %s8120_s27 }
  0x14   : > { %p8346_p12 = pnand %p10625_p9, %p7360_p11 }
  0x15   : > { %p8130_p7 = por %p8129_p4, %p8128_p3 }
  0x16   : > { %p8111_p13 = pneg %p8346_p12 }
  0x18   : > { %p8123_p1 = pnand %p8121_p0, %p8111_p13 }
  0x1a   : > { %p8124_p2 = pneg %p8123_p1 }
  0x1c   : > { %p8131_p8 = pnand %p8130_p7, %p8124_p2 }
  0x1e   : > { %8134 = shalt.err (!%p8131_p8)
}
  0x1f   : > { %s8233_s28 = smov 256   ;;  %s8234_s29 = smov 16  }
  0x20   : > { %7363 = dma.hbm_to_vmem [thread:$0]  (!%p8346_p12), %s10616_s1, 4608, %s262_s23, [#allocation4], %s8233_s28, %s8233_s28, %s8234_s29  }
  0x21   : > { %s8146_s17 = scalar_lea.vmem %s290_s26, 14336  ;;  %p8154_p9 = scmp.lt.s32.totalorder %s290_s26, %s290_s26 }
  0x22   : > { %p8147_p11 = scmp.ne.s32.totalorder %s290_s26, %s8146_s17  ;;  %p8155_p6 = scmp.lt.s32.totalorder %s8146_s17, %s8146_s17 }
  0x24   : > { %p8149_p0 = pnand %p8147_p11, %p8111_p13  ;;  %p8156_p3 = por %p8155_p6, %p8154_p9 }
  0x26   : > { %p8150_p1 = pneg %p8149_p0 }
  0x28   : > { %p8157_p2 = pnand %p8156_p3, %p8150_p1 }
  0x2a   : > { %8160 = shalt.err (!%p8157_p2)
}
  0x2b   : > { %s8235_s22 = smov 64   ;;  %s8236_s25 = smov 4  }
  0x2c   : > { %7366 = dma.hbm_to_vmem [thread:$0]  (!%p8346_p12), %s10622_s7, 14336, %s290_s26, [#allocation7], %s8235_s22, %s8235_s22, %s8236_s25  }
  0x2d   : > { %318 = sbr.rel (%p8338_p10) target bundleno = 1664 (0x680), region = 56 }
  0x32   : > { %p10643_p4 = scmp.eq.s32.totalorder %s8310_s13, 0 }
  0x34   : > { %8204 = dma.done.wait (%p10643_p4), [#allocation4], 4608   ;;  %p10644_p13 = pmov %p10643_p4 }
  0x35   : > { %p10645_p6 = pmov %p10643_p4 }
  0x36   : > { %8206 = vsyncadd (%p10644_p13), [#allocation4], 4294962688 }
  0x37   : > { %8208 = dma.done.wait (%p10645_p6), [#allocation7], 14336   ;;  %p10646_p9 = pmov %p10643_p4 }
  0x38   : > { %v7415_v0 = vld [vmem:[#allocation3 + $0xe4] ss:$16 sps:$4 sm:$0xff]   ;;  %v7417_v1 = vld [vmem:[#allocation3 + $0xec] ss:$16 sps:$4 sm:$0xff]   ;;  %v7419_v2 = vld [vmem:[#allocation3 + $0xe0] ss:$16 sps:$4 sm:$0xff]   ;;  %v927_v53 = vlaneseq }
  0x39   : > { %8210 = vsyncadd (%p10646_p9), [#allocation7], 4294952960  ;;  %691 = vmatprep.subr.bf16.mxu0 %v7415_v0  ;;  %v7420_v3 = vld [vmem:[#allocation3 + $0xe8] ss:$16 sps:$4 sm:$0xff]   ;;  %794 = vmatprep.subr.bf16.mxu1 %v7417_v1  ;;  %v7421_v4 = vld [vmem:[#allocation3 + $0xc4] ss:$16 sps:$4 sm:$0xff]  }
  0x3a   : > { %692 = vmatpush1.bf16.msra.mxu0 %v7419_v2  ;;  %795 = vmatpush1.bf16.msra.mxu1 %v7420_v3  ;;  %v7423_v5 = vld [vmem:[#allocation3 + $0xcc] ss:$16 sps:$4 sm:$0xff]   ;;  %v7425_v6 = vld [vmem:[#allocation3 + $0xc0] ss:$16 sps:$4 sm:$0xff]   ;;  %v7426_v7 = vld [vmem:[#allocation3 + $0xc8] ss:$16 sps:$4 sm:$0xff]  }
  0x3b   : > { %693 = vmatprep.subr.bf16.mxu0 %v7421_v4  ;;  %796 = vmatprep.subr.bf16.mxu1 %v7423_v5  ;;  %v7427_v8 = vld [vmem:[#allocation3 + $0xa4] ss:$16 sps:$4 sm:$0xff]   ;;  %s359_s18 = smul.u32 14, %s8310_s13  ;;  %v7429_v9 = vld [vmem:[#allocation3 + $0xac] ss:$16 sps:$4 sm:$0xff]   ;;  %vm656_vm0 = vcmask 97280  }
  0x3c   : > { %v7431_v10 = vld [vmem:[#allocation3 + $0xa0] ss:$16 sps:$4 sm:$0xff]   ;;  %v7432_v11 = vld [vmem:[#allocation3 + $0xa8] ss:$16 sps:$4 sm:$0xff]   ;;  %v7433_v12 = vld [vmem:[#allocation3 + $0x84] ss:$16 sps:$4 sm:$0xff]  }
  0x3d   : > { %v7435_v13 = vld [vmem:[#allocation3 + $0x8c] ss:$16 sps:$4 sm:$0xff]   ;;  %v7437_v14 = vld [vmem:[#allocation3 + $0x80] ss:$16 sps:$4 sm:$0xff]   ;;  %p360_p10 = scmp.lt.s32.totalorder %s359_s18, 27  ;;  %vm678_vm1 = vcmask 1045504  }
  0x3e   : > { %694 = vmatpush1.bf16.msra.mxu0 %v7425_v6  ;;  %797 = vmatpush1.bf16.msra.mxu1 %v7426_v7  ;;  %v7438_v15 = vld [vmem:[#allocation3 + $0x88] ss:$16 sps:$4 sm:$0xff]   ;;  %v7439_v16 = vld [vmem:[#allocation3 + $0x64] ss:$16 sps:$4 sm:$0xff]   ;;  %v7441_v17 = vld [vmem:[#allocation3 + $0x6c] ss:$16 sps:$4 sm:$0xff]  }
  0x3f   : > { %695 = vmatprep.subr.bf16.mxu0 %v7427_v8  ;;  %798 = vmatprep.subr.bf16.mxu1 %v7429_v9  ;;  %v7443_v18 = vld [vmem:[#allocation3 + $0x60] ss:$16 sps:$4 sm:$0xff]   ;;  %v7444_v19 = vld [vmem:[#allocation3 + $0x68] ss:$16 sps:$4 sm:$0xff]   ;;  %s10723_s18 = smov (!%p360_p10, %s359_s18), 27  ;;  %v10627_v52 = vmov 0  }
  0x40   : > { %v7445_v20 = vld [vmem:[#allocation3 + $0x44] ss:$16 sps:$4 sm:$0xff]   ;;  %v7447_v21 = vld [vmem:[#allocation3 + $0x4c] ss:$16 sps:$4 sm:$0xff]   ;;  %v7449_v22 = vld [vmem:[#allocation3 + $0x40] ss:$16 sps:$4 sm:$0xff]  }
  0x41   : > { %s7183_s21 = sshll.u32 %s10723_s18, 3  ;;  %v7450_v23 = vld [vmem:[#allocation3 + $0x48] ss:$16 sps:$4 sm:$0xff]   ;;  %v7451_v24 = vld [vmem:[#allocation3 + $0x24] ss:$16 sps:$4 sm:$0xff]   ;;  %v8418_v54 = vshrl.u32 %v927_v53, 7 }
  0x42   : > { %696 = vmatpush1.bf16.msra.mxu0 %v7431_v10  ;;  %799 = vmatpush1.bf16.msra.mxu1 %v7432_v11  ;;  %v7453_v25 = vld [vmem:[#allocation3 + $0x2c] ss:$16 sps:$4 sm:$0xff]   ;;  %s8382_s26 = scalar_lea.vmem %s10615_s0, %s7183_s21  ;;  %v7455_v26 = vld [vmem:[#allocation3 + $0x20] ss:$16 sps:$4 sm:$0xff]   ;;  %v7456_v27 = vld [vmem:[#allocation3 + $0x28] ss:$16 sps:$4 sm:$0xff]  }
  0x43   : > { %697 = vmatprep.subr.bf16.mxu0 %v7433_v12  ;;  %800 = vmatprep.subr.bf16.mxu1 %v7435_v13  ;;  %v7457_v28 = vld [vmem:[#allocation3 + $0x4] ss:$16 sps:$4 sm:$0xff]   ;;  %v7459_v29 = vld [vmem:[#allocation3 + $0xc] ss:$16 sps:$4 sm:$0xff]   ;;  %v7461_v31 = vld [vmem:[#allocation3] ss:$16 sps:$4 sm:$0xff]  }
  0x44   : > { %v7471_v30 = vld [vmem:[%s8382_s26 + $0x4] ss:$8 sps:$4 sm:$0xff]   ;;  %v7462_v32 = vld [vmem:[#allocation3 + $0x8] ss:$16 sps:$4 sm:$0xff]   ;;  %v7472_v40 = vld [vmem:[%s8382_s26 + $0x14] ss:$8 sps:$4 sm:$0xff]  }
  0x45   : > { %v7463_v33 = vld [vmem:[#allocation3 + $0x104] ss:$16 sps:$4 sm:$0x3f]   ;;  %v7465_v34 = vld [vmem:[#allocation3 + $0x10c] ss:$16 sps:$4 sm:$0x3f]   ;;  %6393 = vmatprep.mubr.msk.bf16.mxu0 %vm656_vm0, %v7471_v30  ;;  %6401 = vmatprep.mubr.msk.bf16.mxu1 %vm656_vm0, %v7471_v30 }
  0x46   : > { %698 = vmatpush1.bf16.msra.mxu0 %v7437_v14  ;;  %801 = vmatpush1.bf16.msra.mxu1 %v7438_v15  ;;  %v7467_v35 = vld [vmem:[#allocation3 + $0x100] ss:$16 sps:$4 sm:$0x3f]   ;;  %v7468_v36 = vld [vmem:[#allocation3 + $0x108] ss:$16 sps:$4 sm:$0x3f]  }
  0x47   : > { %699 = vmatprep.subr.bf16.mxu0 %v7439_v16  ;;  %802 = vmatprep.subr.bf16.mxu1 %v7441_v17  ;;  %v680_v37 = vsel %vm678_vm1, %v7467_v35, 0  ;;  %v686_v38 = vsel %vm678_vm1, %v7468_v36, 0  ;;  %v7469_v39 = vld [vmem:[%s8382_s26] ss:$8 sps:$4 sm:$0xff]   ;;  %v7474_v41 = vld [vmem:[%s8382_s26 + $0x10] ss:$8 sps:$4 sm:$0xff]  }
  0x48   : > { %v7475_v42 = vld [vmem:[%s8382_s26 + $0x24] ss:$8 sps:$4 sm:$0xff]   ;;  %v7477_v43 = vld [vmem:[%s8382_s26 + $0x20] ss:$8 sps:$4 sm:$0xff]   ;;  %v7478_v44 = vld [vmem:[%s8382_s26 + $0x34] ss:$8 sps:$4 sm:$0xff]  }
  0x49   : > { %v7480_v45 = vld [vmem:[%s8382_s26 + $0x30] ss:$8 sps:$4 sm:$0xff]   ;;  %v7481_v46 = vld [vmem:[%s8382_s26 + $0x44] ss:$8 sps:$4 sm:$0xff]   ;;  %v7483_v47 = vld [vmem:[%s8382_s26 + $0x40] ss:$8 sps:$4 sm:$0xff]  }
  0x4a   : > { %700 = vmatpush1.bf16.msra.mxu0 %v7443_v18  ;;  %803 = vmatpush1.bf16.msra.mxu1 %v7444_v19  ;;  %v7484_v48 = vld [vmem:[%s8382_s26 + $0x54] ss:$8 sps:$4 sm:$0xff]   ;;  %v7486_v49 = vld [vmem:[%s8382_s26 + $0x50] ss:$8 sps:$4 sm:$0xff]   ;;  %v7487_v50 = vld [vmem:[%s8382_s26 + $0x64] ss:$8 sps:$4 sm:$0xff]  }
  0x4b   : > { %701 = vmatprep.subr.bf16.mxu0 %v7445_v20  ;;  %804 = vmatprep.subr.bf16.mxu1 %v7447_v21  ;;  %v7489_v51 = vld [vmem:[%s8382_s26 + $0x60] ss:$8 sps:$4 sm:$0xff]   ;;  %10647 = vst [vmem:[#allocation13_spill] sm:$0xff] %v8418_v54  ;;  %v10626_v55 = vsub.s32 0, %v8418_v54  ;;  %vm1021_vm2 = vcmask 916480   ;;  %vm2816_vm5 = vcmask 1046528  }
  0x4c   : > { %v8424_v58 = vld [vmem:[%s10618_s3] sm:$0x3]  ;;  %vm1609_vm3 = vsmask.f32 7424  ;;  %vm3476_vm4 = vsmask.f32 6400 }
  0x4d   : > { %v8433_v62 = vrot.slane %v8424_v58, %v10626_v55  ;;  %vm4855_vm6 = vcmask 752640   ;;  %s356_s14 = sand.u32 1, %s8221_s10   ;;  %s7180_s17 = sshll.u32 %s8310_s13, 6 }
  0x4e   : > { %702 = vmatpush1.bf16.msra.mxu0 %v7449_v22  ;;  %805 = vmatpush1.bf16.msra.mxu1 %v7450_v23  ;;  %s6339_s16 = sshll.u32 %s356_s14, 2  ;;  %s10580_s21 = scalar_lea.hbm %s10624_s9, %s7180_s17 }
  0x4f   : > { %703 = vmatprep.subr.bf16.mxu0 %v7451_v24  ;;  %806 = vmatprep.subr.bf16.mxu1 %v7453_v25  ;;  %s358_s22 = scalar_lea.vmem [#allocation8], %s6339_s16  ;;  %s6237_s23 = scalar_lea.sflag [#allocation5], %s356_s14 }
  0x50   : > { %s6250_s25 = sshll.u32 %s358_s22, 4  ;;  %s8238_s13 = smov [#allocation8]   ;;  %s6251_s25 = int_to_ptr.vmem [resolvable:$true] %s6250_s25 }
  0x51   : > { %s8161_s24 = scalar_lea.vmem %s6251_s25, 64  ;;  %s8165_s26 = sshll.u32 %s8238_s13, 4  ;;  %s8166_s26 = int_to_ptr.vmem [resolvable:$false] %s8165_s26 }
  0x52   : > { %704 = vmatpush1.bf16.msra.mxu0 %v7455_v26  ;;  %807 = vmatpush1.bf16.msra.mxu1 %v7456_v27  ;;  %p8162_p12 = scmp.ne.s32.totalorder %s6251_s25, %s8161_s24  ;;  %s8167_s28 = scalar_lea.vmem %s8166_s26, 128 }
  0x53   : > { %705 = vmatprep.subr.bf16.mxu0 %v7457_v28  ;;  %808 = vmatprep.subr.bf16.mxu1 %v7459_v29  ;;  %p8168_p11 = scmp.lt.s32.totalorder %s6251_s25, %s8166_s26  ;;  %p8169_p0 = scmp.lt.s32.totalorder %s8167_s28, %s8161_s24 }
  0x54   : > { %p8163_p7 = pnand %p8162_p12, %p8327_p5 }
  0x55   : > { %p8170_p1 = por %p8169_p0, %p8168_p11 }
  0x56   : > { %706 = vmatpush1.bf16.msra.mxu0 %v7461_v31  ;;  %809 = vmatpush1.bf16.msra.mxu1 %v7462_v32  ;;  %p8164_p8 = pneg %p8163_p7 }
  0x57   : > { %6392 = vmatprep.subr.msk.bf16.mxu0 %vm678_vm1, %v7463_v33  ;;  %6400 = vmatprep.subr.msk.bf16.mxu1 %vm678_vm1, %v7465_v34 }
  0x58   : > { %p8171_p3 = pnand %p8170_p1, %p8164_p8 }
  0x5a   : > { %722 = vmatpush2.bf16.msra.mxu0 %v680_v37  ;;  %825 = vmatpush2.bf16.msra.mxu1 %v686_v38 }
  0x5d   : > { %724 = vmatmul.mubr.bf16.vlgmr.msra.gmra.mxu0 %v7469_v39  ;;  %827 = vmatmul.mubr.bf16.vlgmr.msra.gmra.mxu1 %v7469_v39 }
  0x5e   : > { %6394 = vmatprep.mubr.msk.bf16.mxu0 %vm656_vm0, %v7472_v40  ;;  %6402 = vmatprep.mubr.msk.bf16.mxu1 %vm656_vm0, %v7472_v40 }
  0x65   : > { %734 = vmatmul.mubr.bf16.gmra.mxu0 %v7474_v41  ;;  %837 = vmatmul.mubr.bf16.gmra.mxu1 %v7474_v41 }
  0x66   : > { %6395 = vmatprep.mubr.msk.bf16.mxu0 %vm656_vm0, %v7475_v42  ;;  %6403 = vmatprep.mubr.msk.bf16.mxu1 %vm656_vm0, %v7475_v42 }
  0x6d   : > { %744 = vmatmul.mubr.bf16.gmra.mxu0 %v7477_v43  ;;  %847 = vmatmul.mubr.bf16.gmra.mxu1 %v7477_v43 }
  0x6e   : > { %6396 = vmatprep.mubr.msk.bf16.mxu0 %vm656_vm0, %v7478_v44  ;;  %6404 = vmatprep.mubr.msk.bf16.mxu1 %vm656_vm0, %v7478_v44 }
  0x75   : > { %754 = vmatmul.mubr.bf16.gmra.mxu0 %v7480_v45  ;;  %857 = vmatmul.mubr.bf16.gmra.mxu1 %v7480_v45 }
  0x76   : > { %6397 = vmatprep.mubr.msk.bf16.mxu0 %vm656_vm0, %v7481_v46  ;;  %6405 = vmatprep.mubr.msk.bf16.mxu1 %vm656_vm0, %v7481_v46 }
  0x7d   : > { %764 = vmatmul.mubr.bf16.gmra.mxu0 %v7483_v47  ;;  %867 = vmatmul.mubr.bf16.gmra.mxu1 %v7483_v47 }
  0x7e   : > { %6398 = vmatprep.mubr.msk.bf16.mxu0 %vm656_vm0, %v7484_v48  ;;  %6406 = vmatprep.mubr.msk.bf16.mxu1 %vm656_vm0, %v7484_v48 }
  0x85   : > { %774 = vmatmul.mubr.bf16.gmra.mxu0 %v7486_v49  ;;  %877 = vmatmul.mubr.bf16.gmra.mxu1 %v7486_v49 }
  0x86   : > { %6399 = vmatprep.mubr.msk.bf16.mxu0 %vm656_vm0, %v7487_v50  ;;  %6407 = vmatprep.mubr.msk.bf16.mxu1 %vm656_vm0, %v7487_v50 }
  0x8d   : > { %784 = vmatmul.mubr.bf16.gmra.mxu0 %v7489_v51  ;;  %887 = vmatmul.mubr.bf16.gmra.mxu1 %v7489_v51 }
  0x8e   : > { %1072 = vmatprep.mubr.bf16.mxu0 %v10627_v52  ;;  %1226 = vmatprep.mubr.bf16.mxu1 %v10627_v52 }
 0x11d   : > { %v725_v56 = vpop.f32.mrf.mxu0  ;;  %v828_v57 = vpop.f32.mrf.mxu1 }
 0x11e   : > { %v897_v59 = vmax.f32 %v725_v56, %v828_v57  ;;  %v10633_v56 = vsub.s32 1, %v8418_v54  ;;  %v7970_v54 = vld [vmem:[%s10619_s4 + $0x920] ss:$16 sps:$4 sm:$0xff]  }
 0x11f   : > { %v8426_v60 = vpop.f32.mrf.mxu0  ;;  %v8428_v61 = vpop.f32.mrf.mxu1 }
 0x120   : > { %10648 = vst [vmem:[#allocation14_spill] sm:$0xff] %v8426_v60  ;;  %10649 = vst [vmem:[#allocation15_spill] sm:$0xff] %v8428_v61  ;;  %v937_v5 = vadd.f32 %v8433_v62, %v897_v59  ;;  %v8503_v52 = vrot.slane %v8424_v58, %v10633_v56  ;;  %v7964_v56 = vld [vmem:[%s10619_s4 + $0x940] ss:$16 sps:$4 sm:$0xff]  }
 0x121   : > { %v729_v0 = vpop.f32.mrf.mxu0  ;;  %v832_v1 = vpop.f32.mrf.mxu1 }
 0x122   : > { %v899_v2 = vmax.f32 %v729_v0, %v832_v1 }
 0x123   : > { %v8437_v3 = vpop.f32.mrf.mxu0  ;;  %v8439_v4 = vpop.f32.mrf.mxu1 }
 0x124   : > { %v939_v6 = vadd.f32 %v8433_v62, %v899_v2 }
 0x125   : > { %v8443_v7 = vpop.f32.mrf.mxu0  ;;  %v8445_v8 = vpop.f32.mrf.mxu1 }
 0x126   : > { %10650 = vst [vmem:[#allocation16_spill] sm:$0xff] %v8445_v8  ;;  %v8447_v9 = vpack.c.bf16 %v939_v6, %v937_v5 }
 0x127   : > { %v8451_v11 = vpop.f32.mrf.mxu0  ;;  %v8453_v12 = vpop.f32.mrf.mxu1 }
 0x128   : > { %10651 = vst [vmem:[#allocation17_spill] sm:$0xff] %v8447_v9 }
 0x129   : > { %v8455_v13 = vpop.f32.mrf.mxu0  ;;  %v8457_v14 = vpop.f32.mrf.mxu1 }
 0x12b   : > { %v8459_v15 = vpop.f32.mrf.mxu0  ;;  %v8461_v16 = vpop.f32.mrf.mxu1 }
 0x12d   : > { %v8463_v17 = vpop.f32.mrf.mxu0  ;;  %v8465_v18 = vpop.f32.mrf.mxu1 }
 0x12f   : > { %v8467_v19 = vpop.f32.mrf.mxu0  ;;  %v8469_v20 = vpop.f32.mrf.mxu1 }
 0x131   : > { %v8471_v21 = vpop.f32.mrf.mxu0  ;;  %v8473_v22 = vpop.f32.mrf.mxu1 }
 0x133   : > { %v8475_v23 = vpop.f32.mrf.mxu0  ;;  %v8477_v24 = vpop.f32.mrf.mxu1 }
 0x135   : > { %v8479_v25 = vpop.f32.mrf.mxu0  ;;  %v8481_v26 = vpop.f32.mrf.mxu1 }
 0x137   : > { %v8483_v27 = vpop.f32.mrf.mxu0  ;;  %v8485_v28 = vpop.f32.mrf.mxu1 }
 0x139   : > { %v8487_v29 = vpop.f32.mrf.mxu0  ;;  %v8489_v30 = vpop.f32.mrf.mxu1 }
 0x13b   : > { %v8491_v31 = vpop.f32.mrf.mxu0  ;;  %v8493_v32 = vpop.f32.mrf.mxu1 }
 0x13d   : > { %v8495_v33 = vpop.f32.mrf.mxu0  ;;  %v8497_v34 = vpop.f32.mrf.mxu1 }
 0x13f   : > { %v767_v35 = vpop.f32.mrf.mxu0  ;;  %v870_v36 = vpop.f32.mrf.mxu1 }
 0x141   : > { %v769_v37 = vpop.f32.mrf.mxu0  ;;  %v872_v38 = vpop.f32.mrf.mxu1 }
 0x143   : > { %v771_v39 = vpop.f32.mrf.mxu0  ;;  %v874_v40 = vpop.f32.mrf.mxu1 }
 0x144   : > { %v916_v60 = vmax.f32 %v771_v39, %v874_v40  ;;  %v912_v39 = vmax.f32 %v8491_v31, %v8493_v32  ;;  %v908_v31 = vmax.f32 %v8475_v23, %v8477_v24  ;;  %v907_v23 = vmax.f32 %v8471_v21, %v8473_v22 }
 0x145   : > { %v775_v41 = vpop.f32.mrf.mxu0  ;;  %v878_v42 = vpop.f32.mrf.mxu1 }
 0x146   : > { %v956_v40 = vadd.f32 %v8503_v52, %v916_v60  ;;  %v911_v60 = vmax.f32 %v8487_v29, %v8489_v30  ;;  %v952_v32 = vadd.f32 %v8503_v52, %v912_v39  ;;  %v7492_v39 = vld [vmem:[%s10617_s2 + $0x8] sm:$0xff]  }
 0x147   : > { %v777_v43 = vpop.f32.mrf.mxu0  ;;  %v880_v44 = vpop.f32.mrf.mxu1 }
 0x148   : > { %v918_v63 = vmax.f32 %v777_v43, %v880_v44  ;;  %v951_v24 = vadd.f32 %v8433_v62, %v911_v60  ;;  %v7523_v60 = vld [vmem:[%s10619_s4 + $0x288] ss:$16 sps:$4 sm:$0xff]  }
 0x149   : > { %v779_v45 = vpop.f32.mrf.mxu0  ;;  %v882_v46 = vpop.f32.mrf.mxu1 }
 0x14a   : > { %v919_v9 = vmax.f32 %v779_v45, %v882_v46  ;;  %v10652_v45 = vld [vmem:[#allocation16_spill] sm:$0xff]  ;;  %v10654_v46 = vld [vmem:[#allocation14_spill] sm:$0xff] }
 0x14b   : > { %v781_v47 = vpop.f32.mrf.mxu0  ;;  %v884_v48 = vpop.f32.mrf.mxu1 }
 0x14c   : > { %v920_v0 = vmax.f32 %v781_v47, %v884_v48 }
 0x14d   : > { %v785_v49 = vpop.f32.mrf.mxu0  ;;  %v888_v50 = vpop.f32.mrf.mxu1 }
 0x14e   : > { %v921_v5 = vmax.f32 %v785_v49, %v888_v50  ;;  %v960_v8 = vadd.f32 %v8503_v52, %v920_v0  ;;  %v917_v49 = vmax.f32 %v775_v41, %v878_v42 }
 0x14f   : > { %v787_v51 = vpop.f32.mrf.mxu0  ;;  %v890_v53 = vpop.f32.mrf.mxu1 }
 0x150   : > { %v922_v1 = vmax.f32 %v787_v51, %v890_v53  ;;  %v961_v50 = vadd.f32 %v8433_v62, %v921_v5  ;;  %v914_v51 = vmax.f32 %v767_v35, %v870_v36  ;;  %v958_v53 = vadd.f32 %v8503_v52, %v918_v63 }
 0x151   : > { %v789_v57 = vpop.f32.mrf.mxu0  ;;  %v892_v59 = vpop.f32.mrf.mxu1  ;;  %v957_v35 = vadd.f32 %v8433_v62, %v917_v49  ;;  %v910_v63 = vmax.f32 %v8483_v27, %v8485_v28  ;;  %v906_v28 = vmax.f32 %v8467_v19, %v8469_v20  ;;  %v902_v20 = vmax.f32 %v8451_v11, %v8453_v12  ;;  %v7505_v49 = vld [vmem:[%s10619_s4 + $0x2e8] ss:$16 sps:$4 sm:$0xff]  }
 0x152   : > { %v923_v2 = vmax.f32 %v789_v57, %v892_v59  ;;  %v962_v47 = vadd.f32 %v8503_v52, %v922_v1  ;;  %v915_v57 = vmax.f32 %v769_v37, %v872_v38  ;;  %v976_v44 = vpack.c.bf16 %v960_v8, %v958_v53  ;;  %v10655_v59 = vld [vmem:[#allocation15_spill] sm:$0xff] }
 0x153   : > { %v791_v6 = vpop.f32.mrf.mxu0  ;;  %v894_v55 = vpop.f32.mrf.mxu1  ;;  %v950_v29 = vadd.f32 %v8503_v52, %v910_v63  ;;  %v905_v37 = vmax.f32 %v8463_v17, %v8465_v18  ;;  %v946_v21 = vadd.f32 %v8503_v52, %v906_v28  ;;  %v900_v17 = vmax.f32 %v8437_v3, %v8439_v4  ;;  %v7525_v63 = vld [vmem:[%s10619_s4 + $0x28c] ss:$16 sps:$4 sm:$0xff]  }
 0x154   : > { %v924_v10 = vmax.f32 %v791_v6, %v894_v55  ;;  %v963_v61 = vadd.f32 %v8433_v62, %v923_v2  ;;  %v959_v55 = vadd.f32 %v8433_v62, %v919_v9  ;;  %v955_v9 = vadd.f32 %v8433_v62, %v915_v57  ;;  %v7491_v6 = vld [vmem:[%s10617_s2 + $0x30] sm:$0xff]   ;;  %v7511_v57 = vld [vmem:[%s10619_s4 + $0x2c8] ss:$16 sps:$4 sm:$0xff]   ;;  %v7537_v28 = vld [vmem:[%s10619_s4 + $0x24c] ss:$16 sps:$4 sm:$0xff]  }
 0x155   : > { %v972_v36 = vpack.c.bf16 %v952_v32, %v950_v29  ;;  %v945_v41 = vadd.f32 %v8433_v62, %v905_v37  ;;  %v942_v11 = vadd.f32 %v8503_v52, %v902_v20  ;;  %v10653_v3 = vmax.f32 %v8443_v7, %v10652_v45  ;;  %v7504_v7 = vld [vmem:[%s10619_s4 + $0x2e4] ss:$16 sps:$4 sm:$0xff]   ;;  %v7532_v29 = vld [vmem:[%s10619_s4 + $0x240] ss:$16 sps:$4 sm:$0xff]   ;;  %v7541_v37 = vld [vmem:[%s10619_s4 + $0x228] ss:$16 sps:$4 sm:$0xff]  }
 0x156   : > { %v964_v48 = vadd.f32 %v8503_v52, %v924_v10  ;;  %v977_v43 = vpack.c.bf16 %v963_v61, %v961_v50  ;;  %v913_v10 = vmax.f32 %v8495_v33, %v8497_v34  ;;  %v954_v61 = vadd.f32 %v8503_v52, %v914_v51  ;;  %v7510_v50 = vld [vmem:[%s10619_s4 + $0x2c4] ss:$16 sps:$4 sm:$0xff]   ;;  %v7513_v51 = vld [vmem:[%s10619_s4 + $0x2cc] ss:$16 sps:$4 sm:$0xff]   ;;  %v7559_v45 = vld [vmem:[%s10619_s4 + $0x3c8] ss:$16 sps:$4 sm:$0xff]  }
 0x157   : > { %v975_v8 = vpack.c.bf16 %v959_v55, %v957_v35  ;;  %v909_v34 = vmax.f32 %v8479_v25, %v8481_v26  ;;  %v904_v25 = vmax.f32 %v8459_v15, %v8461_v16  ;;  %v948_v26 = vadd.f32 %v8503_v52, %v908_v31  ;;  %v7516_v55 = vld [vmem:[%s10619_s4 + $0x2a4] ss:$16 sps:$4 sm:$0xff]  }
 0x158   : > { %v978_v58 = vpack.c.bf16 %v964_v48, %v962_v47  ;;  %v974_v33 = vpack.c.bf16 %v956_v40, %v954_v61  ;;  %v953_v27 = vadd.f32 %v8433_v62, %v913_v10  ;;  %v903_v15 = vmax.f32 %v8455_v13, %v8457_v14  ;;  %v10657_v47 = vld [vmem:[#allocation17_spill] sm:$0xff]  ;;  %v7502_v48 = vld [vmem:[%s10619_s4 + $0x2e0] ss:$16 sps:$4 sm:$0xff]   ;;  %v7493_v40 = vld [vmem:[%s10617_s2 + $0x38] sm:$0xff]  }
 0x159   : > { %v949_v19 = vadd.f32 %v8433_v62, %v909_v34  ;;  %v947_v16 = vadd.f32 %v8433_v62, %v907_v23  ;;  %v944_v18 = vadd.f32 %v8503_v52, %v904_v25  ;;  %v970_v38 = vpack.c.bf16 %v948_v26, %v946_v21  ;;  %v7517_v10 = vld [vmem:[%s10619_s4 + $0x2a8] ss:$16 sps:$4 sm:$0xff]   ;;  %v7522_v35 = vld [vmem:[%s10619_s4 + $0x284] ss:$16 sps:$4 sm:$0xff]   ;;  %v7520_v61 = vld [vmem:[%s10619_s4 + $0x280] ss:$16 sps:$4 sm:$0xff]  }
 0x15a   : > { %1042 = vmatprep.subr.bf16.mxu0 %v978_v58  ;;  %1196 = vmatprep.subr.bf16.mxu1 %v978_v58  ;;  %v973_v30 = vpack.c.bf16 %v955_v9, %v953_v27  ;;  %v943_v12 = vadd.f32 %v8433_v62, %v903_v15  ;;  %v940_v14 = vadd.f32 %v8503_v52, %v900_v17  ;;  %v10658_v53 = vmov 0   ;;  %v7508_v58 = vld [vmem:[%s10619_s4 + $0x2c0] ss:$16 sps:$4 sm:$0xff]   ;;  %v7528_v9 = vld [vmem:[%s10619_s4 + $0x264] ss:$16 sps:$4 sm:$0xff]   ;;  %v7496_v25 = vld [vmem:[%s10617_s2 + $0x18] sm:$0xff]  }
 0x15b   : > { %1043 = vmatpush1.bf16.msra.mxu0 %v977_v43  ;;  %1197 = vmatpush1.bf16.msra.mxu1 %v977_v43  ;;  %v971_v22 = vpack.c.bf16 %v951_v24, %v949_v19  ;;  %v969_v13 = vpack.c.bf16 %v947_v16, %v945_v41  ;;  %v968_v42 = vpack.c.bf16 %v944_v18, %v942_v11  ;;  %v7519_v43 = vld [vmem:[%s10619_s4 + $0x2ac] ss:$16 sps:$4 sm:$0xff]   ;;  %v7494_v31 = vld [vmem:[%s10617_s2 + $0x10] sm:$0xff]   ;;  %v7495_v32 = vld [vmem:[%s10617_s2 + $0x40] sm:$0xff]  }
 0x15c   : > { %1044 = vmatprep.subr.bf16.mxu0 %v976_v44  ;;  %1198 = vmatprep.subr.bf16.mxu1 %v976_v44  ;;  %v941_v4 = vadd.f32 %v8433_v62, %v10653_v3  ;;  %v10656_v0 = vmax.f32 %v10654_v46, %v10655_v59  ;;  %v7507_v62 = vld [vmem:[%s10619_s4 + $0x2ec] ss:$16 sps:$4 sm:$0xff]   ;;  %v7514_v44 = vld [vmem:[%s10619_s4 + $0x2a0] ss:$16 sps:$4 sm:$0xff]   ;;  %v7529_v34 = vld [vmem:[%s10619_s4 + $0x268] ss:$16 sps:$4 sm:$0xff]  }
 0x15d   : > { %v7534_v27 = vld [vmem:[%s10619_s4 + $0x244] ss:$16 sps:$4 sm:$0xff]   ;;  %v7535_v23 = vld [vmem:[%s10619_s4 + $0x248] ss:$16 sps:$4 sm:$0xff]   ;;  %v7544_v17 = vld [vmem:[%s10619_s4 + $0x200] ss:$16 sps:$4 sm:$0xff]  }
 0x15e   : > { %v938_v1 = vadd.f32 %v8503_v52, %v10656_v0  ;;  %v967_v2 = vpack.c.bf16 %v943_v12, %v941_v4  ;;  %v7490_v52 = vld [vmem:[%s10617_s2] sm:$0xff]   ;;  %v7497_v26 = vld [vmem:[%s10617_s2 + $0x48] sm:$0xff]   ;;  %v7499_v20 = vld [vmem:[%s10617_s2 + $0x50] sm:$0xff]  }
 0x15f   : > { %1045 = vmatpush1.bf16.msra.mxu0 %v975_v8  ;;  %1199 = vmatpush1.bf16.msra.mxu1 %v975_v8  ;;  %v7531_v8 = vld [vmem:[%s10619_s4 + $0x26c] ss:$16 sps:$4 sm:$0xff]   ;;  %v7540_v24 = vld [vmem:[%s10619_s4 + $0x224] ss:$16 sps:$4 sm:$0xff]   ;;  %v7547_v18 = vld [vmem:[%s10619_s4 + $0x208] ss:$16 sps:$4 sm:$0xff]  }
 0x160   : > { %1046 = vmatprep.subr.bf16.mxu0 %v974_v33  ;;  %1200 = vmatprep.subr.bf16.mxu1 %v974_v33  ;;  %v966_v5 = vpack.c.bf16 %v940_v14, %v938_v1  ;;  %v7526_v33 = vld [vmem:[%s10619_s4 + $0x260] ss:$16 sps:$4 sm:$0xff]   ;;  %v7500_v21 = vld [vmem:[%s10617_s2 + $0x28] sm:$0xff]   ;;  %v7501_v15 = vld [vmem:[%s10617_s2 + $0x58] sm:$0xff]  }
 0x161   : > { %v7498_v19 = vld [vmem:[%s10617_s2 + $0x20] sm:$0xff]   ;;  %v7555_v41 = vld [vmem:[%s10619_s4 + $0x3ec] ss:$16 sps:$4 sm:$0xff]   ;;  %v7553_v12 = vld [vmem:[%s10619_s4 + $0x3e8] ss:$16 sps:$4 sm:$0xff]  }
 0x162   : > { %v7546_v16 = vld [vmem:[%s10619_s4 + $0x204] ss:$16 sps:$4 sm:$0xff]   ;;  %v7550_v11 = vld [vmem:[%s10619_s4 + $0x3e0] ss:$16 sps:$4 sm:$0xff]   ;;  %v7561_v14 = vld [vmem:[%s10619_s4 + $0x3cc] ss:$16 sps:$4 sm:$0xff]  }
 0x163   : > { %1047 = vmatpush1.bf16.msra.mxu0 %v973_v30  ;;  %1201 = vmatpush1.bf16.msra.mxu1 %v973_v30  ;;  %v7543_v30 = vld [vmem:[%s10619_s4 + $0x22c] ss:$16 sps:$4 sm:$0xff]   ;;  %v7564_v3 = vld [vmem:[%s10619_s4 + $0x3a4] ss:$16 sps:$4 sm:$0xff]   ;;  %v7562_v46 = vld [vmem:[%s10619_s4 + $0x3a0] ss:$16 sps:$4 sm:$0xff]  }
 0x164   : > { %1048 = vmatprep.subr.bf16.mxu0 %v972_v36  ;;  %1202 = vmatprep.subr.bf16.mxu1 %v972_v36  ;;  %v7538_v36 = vld [vmem:[%s10619_s4 + $0x220] ss:$16 sps:$4 sm:$0xff]   ;;  %v7567_v4 = vld [vmem:[%s10619_s4 + $0x3ac] ss:$16 sps:$4 sm:$0xff]   ;;  %v7565_v59 = vld [vmem:[%s10619_s4 + $0x3a8] ss:$16 sps:$4 sm:$0xff]  }
 0x165   : > { %v7570_v0 = vld [vmem:[%s10619_s4 + $0x384] ss:$16 sps:$4 sm:$0xff]   ;;  %v7573_v1 = vld [vmem:[%s10619_s4 + $0x38c] ss:$16 sps:$4 sm:$0xff]  }
 0x167   : > { %1049 = vmatpush1.bf16.msra.mxu0 %v971_v22  ;;  %1203 = vmatpush1.bf16.msra.mxu1 %v971_v22  ;;  %v7549_v22 = vld [vmem:[%s10619_s4 + $0x20c] ss:$16 sps:$4 sm:$0xff]  }
 0x168   : > { %1050 = vmatprep.subr.bf16.mxu0 %v970_v38  ;;  %1204 = vmatprep.subr.bf16.mxu1 %v970_v38  ;;  %v7552_v38 = vld [vmem:[%s10619_s4 + $0x3e4] ss:$16 sps:$4 sm:$0xff]  }
 0x16b   : > { %1051 = vmatpush1.bf16.msra.mxu0 %v969_v13  ;;  %1205 = vmatpush1.bf16.msra.mxu1 %v969_v13  ;;  %v7558_v13 = vld [vmem:[%s10619_s4 + $0x3c4] ss:$16 sps:$4 sm:$0xff]  }
 0x16c   : > { %1052 = vmatprep.subr.bf16.mxu0 %v968_v42  ;;  %1206 = vmatprep.subr.bf16.mxu1 %v968_v42  ;;  %v7556_v42 = vld [vmem:[%s10619_s4 + $0x3c0] ss:$16 sps:$4 sm:$0xff]  }
 0x16f   : > { %1053 = vmatpush1.bf16.msra.mxu0 %v967_v2  ;;  %1207 = vmatpush1.bf16.msra.mxu1 %v967_v2  ;;  %v7568_v2 = vld [vmem:[%s10619_s4 + $0x380] ss:$16 sps:$4 sm:$0xff]  }
 0x170   : > { %1054 = vmatprep.subr.bf16.mxu0 %v966_v5  ;;  %1208 = vmatprep.subr.bf16.mxu1 %v966_v5  ;;  %v7571_v5 = vld [vmem:[%s10619_s4 + $0x388] ss:$16 sps:$4 sm:$0xff]  }
 0x173   : > { %1055 = vmatpush1.bf16.msra.mxu0 %v10657_v47  ;;  %1209 = vmatpush1.bf16.msra.mxu1 %v10657_v47  ;;  %v7582_v47 = vld [vmem:[%s10619_s4 + $0x344] ss:$16 sps:$4 sm:$0xff]  }
 0x174   : > { %2036 = vmatprep.subr.bf16.mxu0 %v7504_v7  ;;  %2129 = vmatprep.subr.bf16.mxu1 %v7507_v62  ;;  %v7576_v7 = vld [vmem:[%s10619_s4 + $0x364] ss:$16 sps:$4 sm:$0xff]   ;;  %v7579_v62 = vld [vmem:[%s10619_s4 + $0x36c] ss:$16 sps:$4 sm:$0xff]  }
 0x176   : > { %6414 = vmatmul.mubr.msk.bf16.vlgmr.msra.gmra.mxu0 %vm1021_vm2, %v7490_v52  ;;  %6438 = vmatmul.mubr.msk.bf16.vlgmr.msra.gmra.mxu1 %vm1021_vm2, %v7491_v6  ;;  %v7574_v52 = vld [vmem:[%s10619_s4 + $0x360] ss:$16 sps:$4 sm:$0xff]   ;;  %v7577_v6 = vld [vmem:[%s10619_s4 + $0x368] ss:$16 sps:$4 sm:$0xff]  }
 0x177   : > { %1082 = vmatprep.mubr.bf16.mxu0 %v10658_v53  ;;  %1236 = vmatprep.mubr.bf16.mxu1 %v10658_v53 }
 0x178   : > { %2037 = vmatpush1.bf16.msra.mxu0 %v7502_v48  ;;  %2130 = vmatpush1.bf16.msra.mxu1 %v7505_v49  ;;  %v7585_v48 = vld [vmem:[%s10619_s4 + $0x34c] ss:$16 sps:$4 sm:$0xff]   ;;  %v7580_v49 = vld [vmem:[%s10619_s4 + $0x340] ss:$16 sps:$4 sm:$0xff]  }
 0x179   : > { %2038 = vmatprep.subr.bf16.mxu0 %v7510_v50  ;;  %2131 = vmatprep.subr.bf16.mxu1 %v7513_v51  ;;  %v7583_v50 = vld [vmem:[%s10619_s4 + $0x348] ss:$16 sps:$4 sm:$0xff]   ;;  %v7588_v51 = vld [vmem:[%s10619_s4 + $0x324] ss:$16 sps:$4 sm:$0xff]  }
 0x17c   : > { %2039 = vmatpush1.bf16.msra.mxu0 %v7508_v58  ;;  %2132 = vmatpush1.bf16.msra.mxu1 %v7511_v57  ;;  %v7591_v58 = vld [vmem:[%s10619_s4 + $0x32c] ss:$16 sps:$4 sm:$0xff]   ;;  %v7586_v57 = vld [vmem:[%s10619_s4 + $0x320] ss:$16 sps:$4 sm:$0xff]  }
 0x17d   : > { %2040 = vmatprep.subr.bf16.mxu0 %v7516_v55  ;;  %2133 = vmatprep.subr.bf16.mxu1 %v7519_v43  ;;  %v7589_v55 = vld [vmem:[%s10619_s4 + $0x328] ss:$16 sps:$4 sm:$0xff]   ;;  %v7594_v43 = vld [vmem:[%s10619_s4 + $0x304] ss:$16 sps:$4 sm:$0xff]  }
 0x17e   : > { %6415 = vmatmul.mubr.msk.bf16.gmra.mxu0 %vm1021_vm2, %v7492_v39  ;;  %6439 = vmatmul.mubr.msk.bf16.gmra.mxu1 %vm1021_vm2, %v7493_v40  ;;  %v7597_v39 = vld [vmem:[%s10619_s4 + $0x30c] ss:$16 sps:$4 sm:$0xff]   ;;  %v7592_v40 = vld [vmem:[%s10619_s4 + $0x300] ss:$16 sps:$4 sm:$0xff]  }
 0x17f   : > { %1092 = vmatprep.mubr.bf16.mxu0 %v10658_v53  ;;  %1246 = vmatprep.mubr.bf16.mxu1 %v10658_v53 }
 0x180   : > { %2041 = vmatpush1.bf16.msra.mxu0 %v7514_v44  ;;  %2134 = vmatpush1.bf16.msra.mxu1 %v7517_v10  ;;  %v7595_v44 = vld [vmem:[%s10619_s4 + $0x308] ss:$16 sps:$4 sm:$0xff]   ;;  %v7600_v10 = vld [vmem:[%s10619_s4 + $0xe4] ss:$16 sps:$4 sm:$0xff]  }
 0x181   : > { %2042 = vmatprep.subr.bf16.mxu0 %v7522_v35  ;;  %2135 = vmatprep.subr.bf16.mxu1 %v7525_v63  ;;  %v7603_v35 = vld [vmem:[%s10619_s4 + $0xec] ss:$16 sps:$4 sm:$0xff]  }
 0x184   : > { %2043 = vmatpush1.bf16.msra.mxu0 %v7520_v61  ;;  %2136 = vmatpush1.bf16.msra.mxu1 %v7523_v60 }
 0x185   : > { %2044 = vmatprep.subr.bf16.mxu0 %v7528_v9  ;;  %2137 = vmatprep.subr.bf16.mxu1 %v7531_v8 }
 0x186   : > { %6416 = vmatmul.mubr.msk.bf16.gmra.mxu0 %vm1021_vm2, %v7494_v31  ;;  %6440 = vmatmul.mubr.msk.bf16.gmra.mxu1 %vm1021_vm2, %v7495_v32 }
 0x187   : > { %1102 = vmatprep.mubr.bf16.mxu0 %v10658_v53  ;;  %1256 = vmatprep.mubr.bf16.mxu1 %v10658_v53 }
 0x188   : > { %2045 = vmatpush1.bf16.msra.mxu0 %v7526_v33  ;;  %2138 = vmatpush1.bf16.msra.mxu1 %v7529_v34 }
 0x189   : > { %2046 = vmatprep.subr.bf16.mxu0 %v7534_v27  ;;  %2139 = vmatprep.subr.bf16.mxu1 %v7537_v28 }
 0x18c   : > { %2047 = vmatpush1.bf16.msra.mxu0 %v7532_v29  ;;  %2140 = vmatpush1.bf16.msra.mxu1 %v7535_v23 }
 0x18d   : > { %2048 = vmatprep.subr.bf16.mxu0 %v7540_v24  ;;  %2141 = vmatprep.subr.bf16.mxu1 %v7543_v30 }
 0x18e   : > { %6417 = vmatmul.mubr.msk.bf16.gmra.mxu0 %vm1021_vm2, %v7496_v25  ;;  %6441 = vmatmul.mubr.msk.bf16.gmra.mxu1 %vm1021_vm2, %v7497_v26 }
 0x18f   : > { %1112 = vmatprep.mubr.bf16.mxu0 %v10658_v53  ;;  %1266 = vmatprep.mubr.bf16.mxu1 %v10658_v53 }
 0x190   : > { %2049 = vmatpush1.bf16.msra.mxu0 %v7538_v36  ;;  %2142 = vmatpush1.bf16.msra.mxu1 %v7541_v37 }
 0x191   : > { %2050 = vmatprep.subr.bf16.mxu0 %v7546_v16  ;;  %2143 = vmatprep.subr.bf16.mxu1 %v7549_v22 }
 0x194   : > { %2051 = vmatpush1.bf16.msra.mxu0 %v7544_v17  ;;  %2144 = vmatpush1.bf16.msra.mxu1 %v7547_v18 }
 0x195   : > { %2052 = vmatprep.subr.bf16.mxu0 %v7552_v38  ;;  %2145 = vmatprep.subr.bf16.mxu1 %v7555_v41 }
 0x196   : > { %6418 = vmatmul.mubr.msk.bf16.gmra.mxu0 %vm1021_vm2, %v7498_v19  ;;  %6442 = vmatmul.mubr.msk.bf16.gmra.mxu1 %vm1021_vm2, %v7499_v20 }
 0x197   : > { %1122 = vmatprep.mubr.bf16.mxu0 %v10658_v53  ;;  %1276 = vmatprep.mubr.bf16.mxu1 %v10658_v53 }
 0x198   : > { %2053 = vmatpush2.bf16.msra.mxu0 %v7550_v11  ;;  %2146 = vmatpush2.bf16.msra.mxu1 %v7553_v12 }
 0x199   : > { %2054 = vmatprep.subr.bf16.mxu0 %v7558_v13  ;;  %2147 = vmatprep.subr.bf16.mxu1 %v7561_v14 }
 0x19c   : > { %2055 = vmatpush2.bf16.msra.mxu0 %v7556_v42  ;;  %2148 = vmatpush2.bf16.msra.mxu1 %v7559_v45 }
 0x19d   : > { %2056 = vmatprep.subr.bf16.mxu0 %v7564_v3  ;;  %2149 = vmatprep.subr.bf16.mxu1 %v7567_v4 }
 0x19e   : > { %6419 = vmatmul.mubr.msk.bf16.gmra.mxu0 %vm1021_vm2, %v7500_v21  ;;  %6443 = vmatmul.mubr.msk.bf16.gmra.mxu1 %vm1021_vm2, %v7501_v15 }
 0x1a0   : > { %2057 = vmatpush2.bf16.msra.mxu0 %v7562_v46  ;;  %2150 = vmatpush2.bf16.msra.mxu1 %v7565_v59 }
 0x1a1   : > { %2058 = vmatprep.subr.bf16.mxu0 %v7570_v0  ;;  %2151 = vmatprep.subr.bf16.mxu1 %v7573_v1 }
 0x1a4   : > { %2059 = vmatpush2.bf16.msra.mxu0 %v7568_v2  ;;  %2152 = vmatpush2.bf16.msra.mxu1 %v7571_v5 }
 0x1a5   : > { %2060 = vmatprep.subr.bf16.mxu0 %v7576_v7  ;;  %2153 = vmatprep.subr.bf16.mxu1 %v7579_v62 }
 0x1a8   : > { %2061 = vmatpush2.bf16.msra.mxu0 %v7574_v52  ;;  %2154 = vmatpush2.bf16.msra.mxu1 %v7577_v6 }
 0x1a9   : > { %2062 = vmatprep.subr.bf16.mxu0 %v7582_v47  ;;  %2155 = vmatprep.subr.bf16.mxu1 %v7585_v48 }
 0x1ac   : > { %2063 = vmatpush2.bf16.msra.mxu0 %v7580_v49  ;;  %2156 = vmatpush2.bf16.msra.mxu1 %v7583_v50 }
 0x1ad   : > { %2064 = vmatprep.subr.bf16.mxu0 %v7588_v51  ;;  %2157 = vmatprep.subr.bf16.mxu1 %v7591_v58 }
 0x1b0   : > { %2065 = vmatpush2.bf16.msra.mxu0 %v7586_v57  ;;  %2158 = vmatpush2.bf16.msra.mxu1 %v7589_v55 }
 0x1b1   : > { %2066 = vmatprep.subr.bf16.mxu0 %v7594_v43  ;;  %2159 = vmatprep.subr.bf16.mxu1 %v7597_v39 }
 0x1b4   : > { %2067 = vmatpush2.bf16.msra.mxu0 %v7592_v40  ;;  %2160 = vmatpush2.bf16.msra.mxu1 %v7595_v44 }
 0x1b5   : > { %2559 = vmatprep.subr.bf16.mxu0 %v7600_v10  ;;  %2652 = vmatprep.subr.bf16.mxu1 %v7603_v35 }
 0x236   : > { %v1074_v63 = vpop.f32.mrf.mxu0  ;;  %v1228_v61 = vpop.f32.mrf.mxu1 }
 0x237   : > { %v1287_v60 = vmax.f32 %v1074_v63, %v1228_v61 }
 0x238   : > { %v1076_v9 = vpop.f32.mrf.mxu0  ;;  %v1230_v8 = vpop.f32.mrf.mxu1 }
 0x239   : > { %v1288_v31 = vmax.f32 %v1076_v9, %v1230_v8  ;;  %v1311_v34 = vmax.f32 %v1287_v60, 0.0 }
 0x23a   : > { %v1078_v32 = vpop.f32.mrf.mxu0  ;;  %v1232_v33 = vpop.f32.mrf.mxu1 }
 0x23b   : > { %v1312_v27 = vmax.f32 %v1288_v31, 0.0  ;;  %v1289_v28 = vmax.f32 %v1078_v32, %v1232_v33 }
 0x23c   : > { %v1080_v29 = vpop.f32.mrf.mxu0  ;;  %v1234_v23 = vpop.f32.mrf.mxu1 }
 0x23d   : > { %v7184_v24 = vpack.c.bf16 %v1312_v27, %v1311_v34  ;;  %v1290_v30 = vmax.f32 %v1080_v29, %v1234_v23  ;;  %v1313_v36 = vmax.f32 %v1289_v28, 0.0  ;;  %v7601_v23 = vld [vmem:[%s10619_s4 + $0xe8] ss:$16 sps:$4 sm:$0xff]  }
 0x23e   : > { %v1084_v25 = vpop.f32.mrf.mxu0  ;;  %v1238_v26 = vpop.f32.mrf.mxu1 }
 0x23f   : > { %1407 = vst [vmem:[#allocation2 + $0x30] sm:$0xff] %v7184_v24  ;;  %v1314_v37 = vmax.f32 %v1290_v30, 0.0  ;;  %v1291_v19 = vmax.f32 %v1084_v25, %v1238_v26  ;;  %v8826_v14 = vpack.c.bf16 %v1313_v36, %v1311_v34 }
 0x240   : > { %v1086_v20 = vpop.f32.mrf.mxu0  ;;  %v1240_v21 = vpop.f32.mrf.mxu1 }
 0x241   : > { %v8821_v15 = vpack.c.bf16 %v1314_v37, %v1313_v36  ;;  %v1292_v16 = vmax.f32 %v1086_v20, %v1240_v21  ;;  %v1315_v18 = vmax.f32 %v1291_v19, 0.0  ;;  %v8824_v11 = vpack.c.bf16 %v1314_v37, %v1312_v27  ;;  %v7598_v27 = vld [vmem:[%s10619_s4 + $0xe0] ss:$16 sps:$4 sm:$0xff]   ;;  %v7606_v20 = vld [vmem:[%s10619_s4 + $0xc4] ss:$16 sps:$4 sm:$0xff]  }
 0x242   : > { %v1088_v22 = vpop.f32.mrf.mxu0  ;;  %v1242_v17 = vpop.f32.mrf.mxu1  ;;  %v1613_v5 = vshll.u32 %v8826_v14, 16  ;;  %v1611_v61 = vshrl.u32 %v8826_v14, 16  ;;  %v7609_v21 = vld [vmem:[%s10619_s4 + $0xcc] ss:$16 sps:$4 sm:$0xff]  }
 0x243   : > { %1408 = vst [vmem:[#allocation2] sm:$0xff] %v8821_v15  ;;  %v1316_v38 = vmax.f32 %v1292_v16, 0.0  ;;  %v1293_v41 = vmax.f32 %v1088_v22, %v1242_v17  ;;  %v1625_v4 = vshll.u32 %v8824_v11, 16  ;;  %v1623_v43 = vshrl.u32 %v8824_v11, 16 }
 0x244   : > { %v1090_v12 = vpop.f32.mrf.mxu0  ;;  %v1244_v13 = vpop.f32.mrf.mxu1  ;;  %v1615_v39 = vrot.slane %v1613_v5, 1 }
 0x245   : > { %v1294_v42 = vmax.f32 %v1090_v12, %v1244_v13  ;;  %v1317_v46 = vmax.f32 %v1293_v41, 0.0  ;;  %v1627_v47 = vrot.slane %v1625_v4, 1  ;;  %v7607_v4 = vld [vmem:[%s10619_s4 + $0xc8] ss:$16 sps:$4 sm:$0xff]  }
 0x246   : > { %v1094_v45 = vpop.f32.mrf.mxu0  ;;  %v1248_v3 = vpop.f32.mrf.mxu1  ;;  %v8834_v58 = vld [vmem:[#allocation2 + $0x30] sm:$0xee]  ;;  %v1616_v24 = vor.u32 %v1615_v39, %v1611_v61 }
 0x247   : > { %v1318_v59 = vmax.f32 %v1294_v42, 0.0  ;;  %v1295_v0 = vmax.f32 %v1094_v45, %v1248_v3  ;;  %v8830_v50 = vpack.c.bf16 %v1317_v46, %v1315_v18  ;;  %v8843_v8 = vcombine.high %v8834_v58, %v8821_v15  ;;  %v7604_v3 = vld [vmem:[%s10619_s4 + $0xc0] ss:$16 sps:$4 sm:$0xff]  }
 0x248   : > { %v1096_v1 = vpop.f32.mrf.mxu0  ;;  %v1250_v2 = vpop.f32.mrf.mxu1  ;;  %v1628_v33 = vor.u32 %v1627_v47, %v1623_v43 }
 0x249   : > { %v1319_v7 = vmax.f32 %v1295_v0, 0.0  ;;  %v1296_v62 = vmax.f32 %v1096_v1, %v1250_v2  ;;  %v8832_v51 = vpack.c.bf16 %v1318_v59, %v1316_v38  ;;  %v1618_v60 = vshll.u32 %v8830_v50, 16 }
 0x24a   : > { %v1098_v52 = vpop.f32.mrf.mxu0  ;;  %v1252_v6 = vpop.f32.mrf.mxu1  ;;  %v1634_v9 = vshrl.u32 %v8830_v50, 16  ;;  %v3490_v18 = vshrl.u32 %v8843_v8, 16  ;;  %v3493_v0 = vshll.u32 %v8843_v8, 16 }
 0x24b   : > { %v1320_v48 = vmax.f32 %v1296_v62, 0.0  ;;  %v1297_v49 = vmax.f32 %v1098_v52, %v1252_v6  ;;  %v1630_v10 = vshll.u32 %v8832_v51, 16  ;;  %v1620_v30 = vrot.slane %v1618_v60, 1  ;;  %v7615_v62 = vld [vmem:[%s10619_s4 + $0xac] ss:$16 sps:$4 sm:$0xff]  }
 0x24c   : > { %v1100_v57 = vpop.f32.mrf.mxu0  ;;  %v1254_v55 = vpop.f32.mrf.mxu1  ;;  %v3485_v25 = vrot.slane %v1634_v9, 1  ;;  %v3486_v26 = vrot.slane %v1618_v60, 2  ;;  %v1642_v46 = vshrl.u32 %v8832_v51, 16  ;;  %v3495_v61 = vrot.slane %v3493_v0, 2 }
 0x24d   : > { %v1321_v40 = vmax.f32 %v1297_v49, 0.0  ;;  %v1298_v44 = vmax.f32 %v1100_v57, %v1254_v55  ;;  %v1632_v34 = vrot.slane %v1630_v10, 1  ;;  %v1621_v17 = vsel %vm1609_vm3, %v1616_v24, %v1620_v30 }
 0x24e   : > { %v1104_v35 = vpop.f32.mrf.mxu0  ;;  %v1258_v63 = vpop.f32.mrf.mxu1  ;;  %v8877_v59 = vor.u32 %v3486_v26, %v3485_v25  ;;  %v8892_v49 = vrot.slane %v3490_v18, 1  ;;  %v3497_v60 = vrot.slane %v1642_v46, 1 }
 0x24f   : > { %v1322_v31 = vmax.f32 %v1298_v44, 0.0  ;;  %v1299_v32 = vmax.f32 %v1104_v35, %v1258_v63  ;;  %v1633_v19 = vsel %vm1609_vm3, %v1628_v33, %v1632_v34  ;;  %v8868_v13 = vpack.c.bf16 %v1321_v40, %v1319_v7  ;;  %v7612_v7 = vld [vmem:[%s10619_s4 + $0xa4] ss:$16 sps:$4 sm:$0xff]   ;;  %v7610_v40 = vld [vmem:[%s10619_s4 + $0xa0] ss:$16 sps:$4 sm:$0xff]  }
 0x250   : > { %v1106_v28 = vpop.f32.mrf.mxu0  ;;  %v1260_v29 = vpop.f32.mrf.mxu1  ;;  %2068 = vmatprep.mubr.bf16.mxu0 %v1633_v19  ;;  %2161 = vmatprep.mubr.bf16.mxu1 %v1633_v19  ;;  %v1644_v43 = vor.u32 %v1642_v46, %v1632_v34  ;;  %v7618_v34 = vld [vmem:[%s10619_s4 + $0x84] ss:$16 sps:$4 sm:$0xff]   ;;  %v3496_v18 = vor.u32 %v3495_v61, %v8892_v49 }
 0x251   : > { %v8855_v36 = vmax.f32 %v1299_v32, 0.0  ;;  %v1300_v37 = vmax.f32 %v1106_v28, %v1260_v29  ;;  %2069 = vmatmul.mubr.bf16.vlgmr.msra.gmra.mxu0 %v1621_v17  ;;  %2162 = vmatmul.mubr.bf16.vlgmr.msra.gmra.mxu1 %v1621_v17  ;;  %v8866_v12 = vpack.c.bf16 %v1322_v31, %v1320_v48  ;;  %v1638_v47 = vshll.u32 %v8868_v13, 16  ;;  %v7630_v61 = vld [vmem:[%s10619_s4 + $0x44] ss:$16 sps:$4 sm:$0xff]  }
 0x252   : > { %v1108_v16 = vpop.f32.mrf.mxu0  ;;  %v1262_v22 = vpop.f32.mrf.mxu1  ;;  %2560 = vmatpush1.bf16.msra.mxu0 %v7598_v27  ;;  %2653 = vmatpush1.bf16.msra.mxu1 %v7601_v23  ;;  %v8890_v48 = vcombine.low %v8834_v58, %v8821_v15  ;;  %v7613_v15 = vld [vmem:[%s10619_s4 + $0xa8] ss:$16 sps:$4 sm:$0xff]   ;;  %v1636_v58 = vor.u32 %v1634_v9, %v1620_v30  ;;  %v7621_v9 = vld [vmem:[%s10619_s4 + $0x8c] ss:$16 sps:$4 sm:$0xff]   ;;  %v3498_v23 = vrot.slane %v1630_v10, 2  ;;  %v1650_v17 = vshrl.u32 %v8868_v13, 16 }
 0x253   : > { %v1324_v38 = vmax.f32 %v1300_v37, 0.0  ;;  %v1301_v41 = vmax.f32 %v1108_v16, %v1262_v22  ;;  %2561 = vmatprep.subr.bf16.mxu0 %v7606_v20  ;;  %2654 = vmatprep.subr.bf16.mxu1 %v7609_v21  ;;  %v1646_v5 = vshll.u32 %v8866_v12, 16  ;;  %v1640_v63 = vrot.slane %v1638_v47, 1  ;;  %v7616_v10 = vld [vmem:[%s10619_s4 + $0x80] ss:$16 sps:$4 sm:$0xff]  }
 0x254   : > { %v1110_v42 = vpop.f32.mrf.mxu0  ;;  %v1264_v45 = vpop.f32.mrf.mxu1  ;;  %v3478_v24 = vshrl.u32 %v8890_v48, 16  ;;  %v3481_v30 = vshll.u32 %v8890_v48, 16  ;;  %v7619_v16 = vld [vmem:[%s10619_s4 + $0x88] ss:$16 sps:$4 sm:$0xff]   ;;  %v1658_v22 = vshrl.u32 %v8866_v12, 16 }
 0x255   : > { %v1325_v1 = vmax.f32 %v1301_v41, 0.0  ;;  %v1302_v2 = vmax.f32 %v1110_v42, %v1264_v45  ;;  %v1648_v39 = vrot.slane %v1646_v5, 1  ;;  %v1641_v29 = vsel %vm1609_vm3, %v1636_v58, %v1640_v63  ;;  %v7624_v45 = vld [vmem:[%s10619_s4 + $0x64] ss:$16 sps:$4 sm:$0xff]  }
 0x256   : > { %v1114_v52 = vpop.f32.mrf.mxu0  ;;  %v1268_v6 = vpop.f32.mrf.mxu1  ;;  %2562 = vmatpush1.bf16.msra.mxu0 %v7604_v3  ;;  %2655 = vmatpush1.bf16.msra.mxu1 %v7607_v4  ;;  %v7627_v3 = vld [vmem:[%s10619_s4 + $0x6c] ss:$16 sps:$4 sm:$0xff]  }
 0x257   : > { %v1326_v57 = vmax.f32 %v1302_v2, 0.0  ;;  %v1303_v55 = vmax.f32 %v1114_v52, %v1268_v6  ;;  %v1649_v33 = vsel %vm1609_vm3, %v1644_v43, %v1648_v39  ;;  %2563 = vmatprep.subr.bf16.mxu0 %v7612_v7  ;;  %2656 = vmatprep.subr.bf16.mxu1 %v7615_v62  ;;  %v8923_v19 = vpack.c.bf16 %v1325_v1, %v8855_v36  ;;  %v7622_v43 = vld [vmem:[%s10619_s4 + $0x60] ss:$16 sps:$4 sm:$0xff]  }
 0x258   : > { %v1116_v44 = vpop.f32.mrf.mxu0  ;;  %v1270_v35 = vpop.f32.mrf.mxu1  ;;  %2078 = vmatprep.mubr.bf16.mxu0 %v1649_v33  ;;  %2171 = vmatprep.mubr.bf16.mxu1 %v1649_v33  ;;  %v8934_v36 = vor.u32 %v3498_v23, %v3497_v60  ;;  %v1660_v0 = vor.u32 %v1658_v22, %v1648_v39  ;;  %v3480_v2 = vrot.slane %v3478_v24, 1  ;;  %v3483_v7 = vrot.slane %v3481_v30, 2  ;;  %v7625_v39 = vld [vmem:[%s10619_s4 + $0x68] ss:$16 sps:$4 sm:$0xff]   ;;  %v7633_v60 = vld [vmem:[%s10619_s4 + $0x4c] ss:$16 sps:$4 sm:$0xff]  }
 0x259   : > { %v8906_v31 = vmax.f32 %v1303_v55, 0.0  ;;  %v1304_v32 = vmax.f32 %v1116_v44, %v1270_v35  ;;  %2079 = vmatmul.mubr.bf16.gmra.mxu0 %v1641_v29  ;;  %2172 = vmatmul.mubr.bf16.gmra.mxu1 %v1641_v29  ;;  %v8920_v37 = vpack.c.bf16 %v1326_v57, %v1324_v38  ;;  %v1654_v1 = vshll.u32 %v8923_v19, 16 }
 0x25a   : > { %v1118_v27 = vpop.f32.mrf.mxu0  ;;  %v1272_v28 = vpop.f32.mrf.mxu1  ;;  %2564 = vmatpush1.bf16.msra.mxu0 %v7610_v40  ;;  %2657 = vmatpush1.bf16.msra.mxu1 %v7613_v15  ;;  %v8948_v49 = vsel %vm3476_vm4, %v3496_v18, %v8934_v36  ;;  %v1652_v40 = vor.u32 %v1650_v17, %v1640_v63 }
 0x25b   : > { %v1328_v25 = vmax.f32 %v1304_v32, 0.0  ;;  %v1305_v26 = vmax.f32 %v1118_v27, %v1272_v28  ;;  %2565 = vmatprep.subr.bf16.mxu0 %v7618_v34  ;;  %2658 = vmatprep.subr.bf16.mxu1 %v7621_v9  ;;  %v1662_v42 = vshll.u32 %v8920_v37, 16  ;;  %v1656_v44 = vrot.slane %v1654_v1, 1 }
 0x25c   : > { %v1120_v20 = vpop.f32.mrf.mxu0  ;;  %v1274_v21 = vpop.f32.mrf.mxu1  ;;  %v3484_v34 = vor.u32 %v3483_v7, %v3480_v2  ;;  %v3505_v9 = vrot.slane %v1658_v22, 1  ;;  %v3501_v7 = vrot.slane %v1650_v17, 1  ;;  %v7642_v17 = vld [vmem:[%s10619_s4 + $0x4] ss:$16 sps:$4 sm:$0xff]  }
 0x25d   : > { %v1329_v38 = vmax.f32 %v1305_v26, 0.0  ;;  %v1306_v41 = vmax.f32 %v1120_v20, %v1274_v21  ;;  %v1664_v6 = vrot.slane %v1662_v42, 1  ;;  %v1657_v63 = vsel %vm1609_vm3, %v1652_v40, %v1656_v44  ;;  %v7628_v26 = vld [vmem:[%s10619_s4 + $0x40] ss:$16 sps:$4 sm:$0xff]   ;;  %v7631_v20 = vld [vmem:[%s10619_s4 + $0x48] ss:$16 sps:$4 sm:$0xff]  }
 0x25e   : > { %v1124_v4 = vpop.f32.mrf.mxu0  ;;  %v1278_v46 = vpop.f32.mrf.mxu1  ;;  %2566 = vmatpush1.bf16.msra.mxu0 %v7616_v10  ;;  %2659 = vmatpush1.bf16.msra.mxu1 %v7619_v16  ;;  %v1674_v21 = vshrl.u32 %v8920_v37, 16  ;;  %v7645_v40 = vld [vmem:[%s10619_s4 + $0xc] ss:$16 sps:$4 sm:$0xff]  }
 0x25f   : > { %v1330_v62 = vmax.f32 %v1306_v41, 0.0  ;;  %v1307_v52 = vmax.f32 %v1124_v4, %v1278_v46  ;;  %v1665_v58 = vsel %vm1609_vm3, %v1660_v0, %v1664_v6  ;;  %2567 = vmatprep.subr.bf16.mxu0 %v7624_v45  ;;  %2660 = vmatprep.subr.bf16.mxu1 %v7627_v3  ;;  %v8971_v23 = vpack.c.bf16 %v1329_v38, %v8906_v31  ;;  %v7636_v38 = vld [vmem:[%s10619_s4 + $0x24] ss:$16 sps:$4 sm:$0xff]   ;;  %v7639_v41 = vld [vmem:[%s10619_s4 + $0x2c] ss:$16 sps:$4 sm:$0xff]  }
 0x260   : > { %v1126_v57 = vpop.f32.mrf.mxu0  ;;  %v1280_v55 = vpop.f32.mrf.mxu1  ;;  %2088 = vmatprep.mubr.bf16.mxu0 %v1665_v58  ;;  %2181 = vmatprep.mubr.bf16.mxu1 %v1665_v58  ;;  %v3506_v31 = vrot.slane %v1646_v5, 2  ;;  %v1676_v45 = vor.u32 %v1674_v21, %v1664_v6  ;;  %v1666_v3 = vshrl.u32 %v8923_v19, 16  ;;  %v7634_v0 = vld [vmem:[%s10619_s4 + $0x20] ss:$16 sps:$4 sm:$0xff]  }
 0x261   : > { %v1331_v35 = vmax.f32 %v1307_v52, 0.0  ;;  %v1308_v15 = vmax.f32 %v1126_v57, %v1280_v55  ;;  %2089 = vmatmul.mubr.bf16.gmra.mxu0 %v1657_v63  ;;  %2182 = vmatmul.mubr.bf16.gmra.mxu1 %v1657_v63  ;;  %v8968_v29 = vpack.c.bf16 %v1330_v62, %v1328_v25  ;;  %v8982_v25 = vsel %vm3476_vm4, %v3484_v34, %v8877_v59  ;;  %v7637_v62 = vld [vmem:[%s10619_s4 + $0x28] ss:$16 sps:$4 sm:$0xff]   ;;  %v7640_v58 = vld [vmem:[%s10619_s4] ss:$16 sps:$4 sm:$0xff]  }
 0x262   : > { %v1128_v32 = vpop.f32.mrf.mxu0  ;;  %v1282_v33 = vpop.f32.mrf.mxu1  ;;  %2568 = vmatpush1.bf16.msra.mxu0 %v7622_v43  ;;  %2661 = vmatpush1.bf16.msra.mxu1 %v7625_v39  ;;  %v1670_v5 = vshll.u32 %v8971_v23, 16  ;;  %v3507_v2 = vor.u32 %v3506_v31, %v3505_v9  ;;  %v1668_v52 = vor.u32 %v1666_v3, %v1656_v44  ;;  %v1682_v55 = vshrl.u32 %v8971_v23, 16  ;;  %v7649_v31 = vld [vmem:[%s10619_s4 + $0x1e8] ss:$16 sps:$4 sm:$0xff]  }
 0x263   : > { %v1332_v27 = vmax.f32 %v1308_v15, 0.0  ;;  %v1309_v28 = vmax.f32 %v1128_v32, %v1282_v33  ;;  %2569 = vmatprep.subr.bf16.mxu0 %v7630_v61  ;;  %2662 = vmatprep.subr.bf16.mxu1 %v7633_v60  ;;  %v1678_v18 = vshll.u32 %v8968_v29, 16  ;;  %v1690_v57 = vshrl.u32 %v8968_v29, 16  ;;  %v7643_v33 = vld [vmem:[%s10619_s4 + $0x8] ss:$16 sps:$4 sm:$0xff]  }
 0x264   : > { %v1130_v24 = vpop.f32.mrf.mxu0  ;;  %v1284_v30 = vpop.f32.mrf.mxu1  ;;  %v9007_v6 = vrot.slane %v1670_v5, 1  ;;  %v3502_v44 = vrot.slane %v1638_v47, 2  ;;  %v3513_v15 = vrot.slane %v1674_v21, 1  ;;  %v9028_v61 = vsel %vm3476_vm4, %v8934_v36, %v3507_v2  ;;  %v7646_v21 = vld [vmem:[%s10619_s4 + $0x1e0] ss:$16 sps:$4 sm:$0xff]  }
 0x265   : > { %v8986_v10 = vpack.c.bf16 %v1332_v27, %v1331_v35  ;;  %v1333_v16 = vmax.f32 %v1309_v28, 0.0  ;;  %v1310_v22 = vmax.f32 %v1130_v24, %v1284_v30  ;;  %v8997_v46 = vrot.slane %v1678_v18, 1  ;;  %v7651_v27 = vld [vmem:[%s10619_s4 + $0x1ec] ss:$16 sps:$4 sm:$0xff]  }
 0x266   : > { %2570 = vmatpush1.bf16.msra.mxu0 %v7628_v26  ;;  %2663 = vmatpush1.bf16.msra.mxu1 %v7631_v20  ;;  %v1673_v35 = vsel %vm1609_vm3, %v1668_v52, %v9007_v6  ;;  %v3503_v60 = vor.u32 %v3502_v44, %v3501_v7  ;;  %v3514_v47 = vrot.slane %v1662_v42, 2  ;;  %v3509_v32 = vrot.slane %v1666_v3, 1  ;;  %v7648_v42 = vld [vmem:[%s10619_s4 + $0x1e4] ss:$16 sps:$4 sm:$0xff]  }
 0x267   : > { %v1334_v4 = vmax.f32 %v1310_v22, 0.0  ;;  %v1681_v39 = vsel %vm1609_vm3, %v1676_v45, %v8997_v46  ;;  %2571 = vmatprep.subr.bf16.mxu0 %v7636_v38  ;;  %2664 = vmatprep.subr.bf16.mxu1 %v7639_v41  ;;  %v3510_v63 = vrot.slane %v1654_v1, 2  ;;  %v3521_v34 = vrot.slane %v1690_v57, 1  ;;  %v7657_v38 = vld [vmem:[%s10619_s4 + $0x1cc] ss:$16 sps:$4 sm:$0xff]  }
 0x268   : > { %2098 = vmatprep.mubr.bf16.mxu0 %v1681_v39  ;;  %2191 = vmatprep.mubr.bf16.mxu1 %v1681_v39  ;;  %v3522_v9 = vrot.slane %v1678_v18, 2  ;;  %v3517_v36 = vrot.slane %v1682_v55, 1  ;;  %v9049_v1 = vsel %vm3476_vm4, %v8877_v59, %v3503_v60  ;;  %v3515_v28 = vor.u32 %v3514_v47, %v3513_v15  ;;  %v7654_v18 = vld [vmem:[%s10619_s4 + $0x1c4] ss:$16 sps:$4 sm:$0xff]  }
 0x269   : > { %v7195_v43 = vpack.c.bf16 %v1334_v4, %v1333_v16  ;;  %2099 = vmatmul.mubr.bf16.gmra.mxu0 %v1673_v35  ;;  %2192 = vmatmul.mubr.bf16.gmra.mxu1 %v1673_v35  ;;  %v3511_v24 = vor.u32 %v3510_v63, %v3509_v32  ;;  %v3518_v26 = vrot.slane %v1670_v5, 2  ;;  %v7660_v52 = vld [vmem:[%s10619_s4 + $0x1a4] ss:$16 sps:$4 sm:$0xff]   ;;  %v1684_v35 = vor.u32 %v1682_v55, %v9007_v6  ;;  %v7661_v32 = vld [vmem:[%s10619_s4 + $0x1a8] ss:$16 sps:$4 sm:$0xff]  }
 0x26a   : > { %2572 = vmatpush1.bf16.msra.mxu0 %v7634_v0  ;;  %2665 = vmatpush1.bf16.msra.mxu1 %v7637_v62  ;;  %v9051_v30 = vor.u32 %v3522_v9, %v3521_v34  ;;  %v9054_v20 = vsel %vm3476_vm4, %v3507_v2, %v3515_v28  ;;  %v7652_v0 = vld [vmem:[%s10619_s4 + $0x1c0] ss:$16 sps:$4 sm:$0xff]   ;;  %v7655_v2 = vld [vmem:[%s10619_s4 + $0x1c8] ss:$16 sps:$4 sm:$0xff]   ;;  %v7666_v6 = vld [vmem:[%s10619_s4 + $0x184] ss:$16 sps:$4 sm:$0xff]  }
 0x26b   : > { %1418 = vst [vmem:[#allocation2 + $0x40] sm:$0xff] %v7195_v43  ;;  %2573 = vmatprep.subr.bf16.mxu0 %v7642_v17  ;;  %2666 = vmatprep.subr.bf16.mxu1 %v7645_v40  ;;  %v9063_v59 = vsel %vm3476_vm4, %v3503_v60, %v3511_v24  ;;  %v9069_v22 = vor.u32 %v3518_v26, %v3517_v36  ;;  %v7663_v43 = vld [vmem:[%s10619_s4 + $0x1ac] ss:$16 sps:$4 sm:$0xff]   ;;  %v7658_v60 = vld [vmem:[%s10619_s4 + $0x1a0] ss:$16 sps:$4 sm:$0xff]  }
 0x26c   : > { %v9067_v16 = vsel %vm3476_vm4, %v3515_v28, %v9051_v30  ;;  %v1692_v17 = vor.u32 %v1690_v57, %v8997_v46  ;;  %v7667_v26 = vld [vmem:[%s10619_s4 + $0x188] ss:$16 sps:$4 sm:$0xff]  }
 0x26d   : > { %v9079_v45 = vsel %vm3476_vm4, %v3511_v24, %v9069_v22  ;;  %v7664_v24 = vld [vmem:[%s10619_s4 + $0x180] ss:$16 sps:$4 sm:$0xff]  }
 0x26e   : > { %2574 = vmatpush1.bf16.msra.mxu0 %v7640_v58  ;;  %2667 = vmatpush1.bf16.msra.mxu1 %v7643_v33  ;;  %v7669_v33 = vld [vmem:[%s10619_s4 + $0x18c] ss:$16 sps:$4 sm:$0xff]  }
 0x26f   : > { %2575 = vmatprep.subr.bf16.mxu0 %v7648_v42  ;;  %2668 = vmatprep.subr.bf16.mxu1 %v7651_v27 }
 0x272   : > { %v1495_v41 = vld [vmem:[#allocation2 + $0x40] sm:$0x77]  ;;  %2576 = vmatpush2.bf16.msra.mxu0 %v7646_v21  ;;  %2669 = vmatpush2.bf16.msra.mxu1 %v7649_v31  ;;  %v7675_v31 = vld [vmem:[%s10619_s4 + $0x16c] ss:$16 sps:$4 sm:$0xff]  }
 0x273   : > { %v3405_v3 = vld [vmem:[#allocation2 + $0x40] sm:$0xff]  ;;  %v9082_v5 = vcombine.high %v8986_v10, %v1495_v41  ;;  %v9085_v4 = vcombine.low %v8986_v10, %v1495_v41  ;;  %2577 = vmatprep.subr.bf16.mxu0 %v7654_v18  ;;  %2670 = vmatprep.subr.bf16.mxu1 %v7657_v38 }
 0x274   : > { %v9102_v39 = vcombine.high %v8986_v10, %v3405_v3  ;;  %v9108_v40 = vcombine.low %v8986_v10, %v3405_v3  ;;  %v7672_v21 = vld [vmem:[%s10619_s4 + $0x164] ss:$16 sps:$4 sm:$0xff]  }
 0x275   : > { %v1694_v7 = vshll.u32 %v9082_v5, 16  ;;  %v1686_v62 = vshll.u32 %v9085_v4, 16  ;;  %v1701_v58 = vshrl.u32 %v9082_v5, 16  ;;  %v1698_v41 = vshrl.u32 %v9085_v4, 16 }
 0x276   : > { %2578 = vmatpush2.bf16.msra.mxu0 %v7652_v0  ;;  %2671 = vmatpush2.bf16.msra.mxu1 %v7655_v2  ;;  %v3535_v55 = vshrl.u32 %v9102_v39, 16  ;;  %v3538_v63 = vshll.u32 %v9102_v39, 16  ;;  %v3526_v34 = vshrl.u32 %v9108_v40, 16  ;;  %v3529_v9 = vshll.u32 %v9108_v40, 16 }
 0x277   : > { %v1696_v44 = vrot.slane %v1694_v7, 1  ;;  %v1688_v15 = vrot.slane %v1686_v62, 1  ;;  %2579 = vmatprep.subr.bf16.mxu0 %v7660_v52  ;;  %2672 = vmatprep.subr.bf16.mxu1 %v7663_v43  ;;  %v7670_v7 = vld [vmem:[%s10619_s4 + $0x160] ss:$16 sps:$4 sm:$0xff]   ;;  %v7673_v62 = vld [vmem:[%s10619_s4 + $0x168] ss:$16 sps:$4 sm:$0xff]  }
 0x278   : > { %v3537_v36 = vrot.slane %v3535_v55, 1  ;;  %v3540_v42 = vrot.slane %v3538_v63, 2  ;;  %v3528_v27 = vrot.slane %v3526_v34, 1  ;;  %v3531_v28 = vrot.slane %v3529_v9, 2  ;;  %v7676_v52 = vld [vmem:[%s10619_s4 + $0x140] ss:$16 sps:$4 sm:$0xff]  }
 0x279   : > { %v1697_v47 = vsel %vm1609_vm3, %v1692_v17, %v1696_v44  ;;  %v1689_v46 = vsel %vm1609_vm3, %v1684_v35, %v1688_v15  ;;  %v1703_v57 = vor.u32 %v1701_v58, %v1696_v44  ;;  %v1700_v2 = vor.u32 %v1698_v41, %v1688_v15  ;;  %v7679_v43 = vld [vmem:[%s10619_s4 + $0x148] ss:$16 sps:$4 sm:$0xff]   ;;  %v7684_v17 = vld [vmem:[%s10619_s4 + $0x124] ss:$16 sps:$4 sm:$0xff]   ;;  %v7682_v44 = vld [vmem:[%s10619_s4 + $0x120] ss:$16 sps:$4 sm:$0xff]  }
 0x27a   : > { %2108 = vmatprep.mubr.bf16.mxu0 %v1697_v47  ;;  %2201 = vmatprep.mubr.bf16.mxu1 %v1697_v47  ;;  %v9144_v18 = vor.u32 %v3540_v42, %v3537_v36  ;;  %v9146_v38 = vor.u32 %v3531_v28, %v3528_v27  ;;  %v7685_v35 = vld [vmem:[%s10619_s4 + $0x128] ss:$16 sps:$4 sm:$0xff]   ;;  %v7690_v15 = vld [vmem:[%s10619_s4 + $0x104] ss:$16 sps:$4 sm:$0xff]   ;;  %v7693_v58 = vld [vmem:[%s10619_s4 + $0x10c] ss:$16 sps:$4 sm:$0xff]  }
 0x27b   : > { %2109 = vmatmul.mubr.bf16.gmra.mxu0 %v1689_v46  ;;  %2202 = vmatmul.mubr.bf16.gmra.mxu1 %v1689_v46  ;;  %v7691_v47 = vld [vmem:[%s10619_s4 + $0x108] ss:$16 sps:$4 sm:$0xff]   ;;  %v7696_v46 = vld [vmem:[%s10619_s4 + $0x4e4] ss:$16 sps:$4 sm:$0xff]   ;;  %v7700_v63 = vld [vmem:[%s10619_s4 + $0x4c0] ss:$16 sps:$4 sm:$0xff]  }
 0x27c   : > { %2118 = vmatprep.mubr.bf16.mxu0 %v1703_v57  ;;  %2211 = vmatprep.mubr.bf16.mxu1 %v1703_v57  ;;  %v9152_v3 = vsel %vm3476_vm4, %v9051_v30, %v9144_v18  ;;  %v9157_v0 = vsel %vm3476_vm4, %v9069_v22, %v9146_v38  ;;  %v7678_v30 = vld [vmem:[%s10619_s4 + $0x144] ss:$16 sps:$4 sm:$0xff]   ;;  %v7681_v22 = vld [vmem:[%s10619_s4 + $0x14c] ss:$16 sps:$4 sm:$0xff]   ;;  %v7703_v34 = vld [vmem:[%s10619_s4 + $0x4c8] ss:$16 sps:$4 sm:$0xff]  }
 0x27d   : > { %2580 = vmatpush2.bf16.msra.mxu0 %v7658_v60  ;;  %2673 = vmatpush2.bf16.msra.mxu1 %v7661_v32  ;;  %v7688_v60 = vld [vmem:[%s10619_s4 + $0x100] ss:$16 sps:$4 sm:$0xff]   ;;  %v7699_v57 = vld [vmem:[%s10619_s4 + $0x4ec] ss:$16 sps:$4 sm:$0xff]   ;;  %v7702_v55 = vld [vmem:[%s10619_s4 + $0x4c4] ss:$16 sps:$4 sm:$0xff]  }
 0x27e   : > { %2581 = vmatprep.subr.bf16.mxu0 %v7666_v6  ;;  %2674 = vmatprep.subr.bf16.mxu1 %v7669_v33  ;;  %v7694_v32 = vld [vmem:[%s10619_s4 + $0x4e0] ss:$16 sps:$4 sm:$0xff]   ;;  %v7697_v6 = vld [vmem:[%s10619_s4 + $0x4e8] ss:$16 sps:$4 sm:$0xff]   ;;  %v7705_v33 = vld [vmem:[%s10619_s4 + $0x4cc] ss:$16 sps:$4 sm:$0xff]  }
 0x27f   : > { %v7711_v9 = vld [vmem:[%s10619_s4 + $0x4ac] ss:$16 sps:$4 sm:$0xff]   ;;  %v7706_v36 = vld [vmem:[%s10619_s4 + $0x4a0] ss:$16 sps:$4 sm:$0xff]   ;;  %v7709_v42 = vld [vmem:[%s10619_s4 + $0x4a8] ss:$16 sps:$4 sm:$0xff]  }
 0x280   : > { %v7714_v27 = vld [vmem:[%s10619_s4 + $0x484] ss:$16 sps:$4 sm:$0xff]   ;;  %v7717_v28 = vld [vmem:[%s10619_s4 + $0x48c] ss:$16 sps:$4 sm:$0xff]   ;;  %v7718_v41 = vld [vmem:[%s10619_s4 + $0x460] ss:$16 sps:$4 sm:$0xff]  }
 0x281   : > { %2582 = vmatpush2.bf16.msra.mxu0 %v7664_v24  ;;  %2675 = vmatpush2.bf16.msra.mxu1 %v7667_v26  ;;  %v7712_v24 = vld [vmem:[%s10619_s4 + $0x480] ss:$16 sps:$4 sm:$0xff]   ;;  %v7715_v26 = vld [vmem:[%s10619_s4 + $0x488] ss:$16 sps:$4 sm:$0xff]  }
 0x282   : > { %2583 = vmatprep.subr.bf16.mxu0 %v7672_v21  ;;  %2676 = vmatprep.subr.bf16.mxu1 %v7675_v31  ;;  %v7720_v21 = vld [vmem:[%s10619_s4 + $0x464] ss:$16 sps:$4 sm:$0xff]   ;;  %v7723_v31 = vld [vmem:[%s10619_s4 + $0x46c] ss:$16 sps:$4 sm:$0xff]  }
 0x283   : > { %2119 = vmatmul.mubr.bf16.gmra.mxu0 %v1700_v2  ;;  %2212 = vmatmul.mubr.bf16.gmra.mxu1 %v1700_v2  ;;  %v7721_v2 = vld [vmem:[%s10619_s4 + $0x468] ss:$16 sps:$4 sm:$0xff]  }
 0x284   : > { %2591 = vmatprep.mubr.bf16.mxu0 %v8824_v11  ;;  %2684 = vmatprep.mubr.bf16.mxu1 %v8824_v11  ;;  %v7687_v11 = vld [vmem:[%s10619_s4 + $0x12c] ss:$16 sps:$4 sm:$0xff]  }
 0x285   : > { %2584 = vmatpush2.bf16.msra.mxu0 %v7670_v7  ;;  %2677 = vmatpush2.bf16.msra.mxu1 %v7673_v62  ;;  %v7726_v7 = vld [vmem:[%s10619_s4 + $0x444] ss:$16 sps:$4 sm:$0xff]   ;;  %v7729_v62 = vld [vmem:[%s10619_s4 + $0x44c] ss:$16 sps:$4 sm:$0xff]  }
 0x286   : > { %2585 = vmatprep.subr.bf16.mxu0 %v7678_v30  ;;  %2678 = vmatprep.subr.bf16.mxu1 %v7681_v22  ;;  %v7724_v30 = vld [vmem:[%s10619_s4 + $0x440] ss:$16 sps:$4 sm:$0xff]   ;;  %v7727_v22 = vld [vmem:[%s10619_s4 + $0x448] ss:$16 sps:$4 sm:$0xff]  }
 0x289   : > { %2586 = vmatpush2.bf16.msra.mxu0 %v7676_v52  ;;  %2679 = vmatpush2.bf16.msra.mxu1 %v7679_v43  ;;  %v7732_v52 = vld [vmem:[%s10619_s4 + $0x424] ss:$16 sps:$4 sm:$0xff]   ;;  %v7735_v43 = vld [vmem:[%s10619_s4 + $0x42c] ss:$16 sps:$4 sm:$0xff]  }
 0x28a   : > { %2587 = vmatprep.subr.bf16.mxu0 %v7684_v17  ;;  %2680 = vmatprep.subr.bf16.mxu1 %v7687_v11  ;;  %v7730_v17 = vld [vmem:[%s10619_s4 + $0x420] ss:$16 sps:$4 sm:$0xff]   ;;  %v7733_v11 = vld [vmem:[%s10619_s4 + $0x428] ss:$16 sps:$4 sm:$0xff]  }
 0x28d   : > { %2588 = vmatpush2.bf16.msra.mxu0 %v7682_v44  ;;  %2681 = vmatpush2.bf16.msra.mxu1 %v7685_v35  ;;  %v7738_v44 = vld [vmem:[%s10619_s4 + $0x404] ss:$16 sps:$4 sm:$0xff]   ;;  %v7741_v35 = vld [vmem:[%s10619_s4 + $0x40c] ss:$16 sps:$4 sm:$0xff]  }
 0x28e   : > { %2589 = vmatprep.subr.bf16.mxu0 %v7690_v15  ;;  %2682 = vmatprep.subr.bf16.mxu1 %v7693_v58  ;;  %v7736_v15 = vld [vmem:[%s10619_s4 + $0x400] ss:$16 sps:$4 sm:$0xff]   ;;  %v7739_v58 = vld [vmem:[%s10619_s4 + $0x408] ss:$16 sps:$4 sm:$0xff]  }
 0x291   : > { %2590 = vmatpush2.bf16.msra.mxu0 %v7688_v60  ;;  %2683 = vmatpush2.bf16.msra.mxu1 %v7691_v47  ;;  %v7744_v60 = vld [vmem:[%s10619_s4 + $0x5e4] ss:$16 sps:$4 sm:$0xff]   ;;  %v7747_v47 = vld [vmem:[%s10619_s4 + $0x5ec] ss:$16 sps:$4 sm:$0xff]  }
 0x292   : > { %3171 = vmatprep.subr.bf16.mxu0 %v7696_v46  ;;  %3264 = vmatprep.subr.bf16.mxu1 %v7699_v57  ;;  %v1430_v46 = vld [vmem:[#allocation2 + $0x40] sm:$0x33] }
 0x293   : > { %v7742_v57 = vld [vmem:[%s10619_s4 + $0x5e0] ss:$16 sps:$4 sm:$0xff]  }
 0x294   : > { %2592 = vmatmul.mubr.bf16.vlgmr.msra.gmra.mxu0 %v8826_v14  ;;  %2685 = vmatmul.mubr.bf16.vlgmr.msra.gmra.mxu1 %v8826_v14  ;;  %v7708_v14 = vld [vmem:[%s10619_s4 + $0x4a4] ss:$16 sps:$4 sm:$0xff]  }
 0x295   : > { %2601 = vmatprep.mubr.bf16.mxu0 %v8832_v51  ;;  %2694 = vmatprep.mubr.bf16.mxu1 %v8832_v51 }
 0x296   : > { %3172 = vmatpush1.bf16.msra.mxu0 %v7694_v32  ;;  %3265 = vmatpush1.bf16.msra.mxu1 %v7697_v6  ;;  %v7745_v32 = vld [vmem:[%s10619_s4 + $0x5e8] ss:$16 sps:$4 sm:$0xff]   ;;  %v6597_v6 = vcombine.high %v8986_v10, %v1430_v46 }
 0x297   : > { %3173 = vmatprep.subr.bf16.mxu0 %v7702_v55  ;;  %3266 = vmatprep.subr.bf16.mxu1 %v7705_v33  ;;  %v7750_v55 = vld [vmem:[%s10619_s4 + $0x5c4] ss:$16 sps:$4 sm:$0xff]   ;;  %v7753_v33 = vld [vmem:[%s10619_s4 + $0x5cc] ss:$16 sps:$4 sm:$0xff]  }
 0x29a   : > { %3174 = vmatpush1.bf16.msra.mxu0 %v7700_v63  ;;  %3267 = vmatpush1.bf16.msra.mxu1 %v7703_v34  ;;  %v7748_v63 = vld [vmem:[%s10619_s4 + $0x5c0] ss:$16 sps:$4 sm:$0xff]   ;;  %v7751_v34 = vld [vmem:[%s10619_s4 + $0x5c8] ss:$16 sps:$4 sm:$0xff]  }
 0x29b   : > { %3175 = vmatprep.subr.bf16.mxu0 %v7708_v14  ;;  %3268 = vmatprep.subr.bf16.mxu1 %v7711_v9  ;;  %v7756_v14 = vld [vmem:[%s10619_s4 + $0x5a4] ss:$16 sps:$4 sm:$0xff]   ;;  %v7759_v9 = vld [vmem:[%s10619_s4 + $0x5ac] ss:$16 sps:$4 sm:$0xff]  }
 0x29c   : > { %2602 = vmatmul.mubr.bf16.gmra.mxu0 %v8830_v50  ;;  %2695 = vmatmul.mubr.bf16.gmra.mxu1 %v8830_v50 }
 0x29d   : > { %2611 = vmatprep.mubr.bf16.mxu0 %v8866_v12  ;;  %2704 = vmatprep.mubr.bf16.mxu1 %v8866_v12 }
 0x29e   : > { %3176 = vmatpush1.bf16.msra.mxu0 %v7706_v36  ;;  %3269 = vmatpush1.bf16.msra.mxu1 %v7709_v42  ;;  %v2821_v36 = vrot.slane %v8832_v51, 1  ;;  %v6596_v42 = vcombine.low %v8986_v10, %v1430_v46  ;;  %v7765_v10 = vld [vmem:[%s10619_s4 + $0x58c] ss:$16 sps:$4 sm:$0xff]   ;;  %v7792_v46 = vld [vmem:[%s10619_s4 + $0x6e4] ss:$16 sps:$4 sm:$0xff]  }
 0x29f   : > { %3177 = vmatprep.subr.bf16.mxu0 %v7714_v27  ;;  %3270 = vmatprep.subr.bf16.mxu1 %v7717_v28  ;;  %v7754_v27 = vld [vmem:[%s10619_s4 + $0x5a0] ss:$16 sps:$4 sm:$0xff]   ;;  %v7757_v28 = vld [vmem:[%s10619_s4 + $0x5a8] ss:$16 sps:$4 sm:$0xff]  }
 0x2a2   : > { %3178 = vmatpush1.bf16.msra.mxu0 %v7712_v24  ;;  %3271 = vmatpush1.bf16.msra.mxu1 %v7715_v26  ;;  %v2820_v24 = vrot.slane %v8843_v8, 1  ;;  %v7762_v26 = vld [vmem:[%s10619_s4 + $0x584] ss:$16 sps:$4 sm:$0xff]   ;;  %v7760_v8 = vld [vmem:[%s10619_s4 + $0x580] ss:$16 sps:$4 sm:$0xff]  }
 0x2a3   : > { %3179 = vmatprep.subr.bf16.mxu0 %v7720_v21  ;;  %3272 = vmatprep.subr.bf16.mxu1 %v7723_v31  ;;  %v7763_v31 = vld [vmem:[%s10619_s4 + $0x588] ss:$16 sps:$4 sm:$0xff]  }
 0x2a4   : > { %2612 = vmatmul.mubr.bf16.gmra.mxu0 %v8868_v13  ;;  %2705 = vmatmul.mubr.bf16.gmra.mxu1 %v8868_v13  ;;  %v2822_v21 = vsel %vm2816_vm5, %v2820_v24, %v2821_v36  ;;  %v7807_v24 = vld [vmem:[%s10619_s4 + $0x6ac] ss:$16 sps:$4 sm:$0xff]  }
 0x2a5   : > { %2621 = vmatprep.mubr.bf16.mxu0 %v8920_v37  ;;  %2714 = vmatprep.mubr.bf16.mxu1 %v8920_v37 }
 0x2a6   : > { %3180 = vmatpush1.bf16.msra.mxu0 %v7718_v41  ;;  %3273 = vmatpush1.bf16.msra.mxu1 %v7721_v2  ;;  %v7768_v41 = vld [vmem:[%s10619_s4 + $0x564] ss:$16 sps:$4 sm:$0xff]   ;;  %v7771_v2 = vld [vmem:[%s10619_s4 + $0x56c] ss:$16 sps:$4 sm:$0xff]  }
 0x2a7   : > { %3181 = vmatprep.subr.bf16.mxu0 %v7726_v7  ;;  %3274 = vmatprep.subr.bf16.mxu1 %v7729_v62  ;;  %v7766_v7 = vld [vmem:[%s10619_s4 + $0x560] ss:$16 sps:$4 sm:$0xff]   ;;  %v7769_v62 = vld [vmem:[%s10619_s4 + $0x568] ss:$16 sps:$4 sm:$0xff]  }
 0x2aa   : > { %3182 = vmatpush1.bf16.msra.mxu0 %v7724_v30  ;;  %3275 = vmatpush1.bf16.msra.mxu1 %v7727_v22  ;;  %v7774_v30 = vld [vmem:[%s10619_s4 + $0x544] ss:$16 sps:$4 sm:$0xff]   ;;  %v7777_v22 = vld [vmem:[%s10619_s4 + $0x54c] ss:$16 sps:$4 sm:$0xff]  }
 0x2ab   : > { %3183 = vmatprep.subr.bf16.mxu0 %v7732_v52  ;;  %3276 = vmatprep.subr.bf16.mxu1 %v7735_v43  ;;  %v7772_v52 = vld [vmem:[%s10619_s4 + $0x540] ss:$16 sps:$4 sm:$0xff]   ;;  %v7775_v43 = vld [vmem:[%s10619_s4 + $0x548] ss:$16 sps:$4 sm:$0xff]  }
 0x2ac   : > { %2622 = vmatmul.mubr.bf16.gmra.mxu0 %v8923_v19  ;;  %2715 = vmatmul.mubr.bf16.gmra.mxu1 %v8923_v19 }
 0x2ad   : > { %2631 = vmatprep.mubr.bf16.mxu0 %v8968_v29  ;;  %2724 = vmatprep.mubr.bf16.mxu1 %v8968_v29 }
 0x2ae   : > { %3184 = vmatpush1.bf16.msra.mxu0 %v7730_v17  ;;  %3277 = vmatpush1.bf16.msra.mxu1 %v7733_v11  ;;  %v7780_v17 = vld [vmem:[%s10619_s4 + $0x524] ss:$16 sps:$4 sm:$0xff]   ;;  %v7783_v11 = vld [vmem:[%s10619_s4 + $0x52c] ss:$16 sps:$4 sm:$0xff]  }
 0x2af   : > { %3185 = vmatprep.subr.bf16.mxu0 %v7738_v44  ;;  %3278 = vmatprep.subr.bf16.mxu1 %v7741_v35  ;;  %v7778_v44 = vld [vmem:[%s10619_s4 + $0x520] ss:$16 sps:$4 sm:$0xff]   ;;  %v7781_v35 = vld [vmem:[%s10619_s4 + $0x528] ss:$16 sps:$4 sm:$0xff]  }
 0x2b2   : > { %3186 = vmatpush1.bf16.msra.mxu0 %v7736_v15  ;;  %3279 = vmatpush1.bf16.msra.mxu1 %v7739_v58  ;;  %v7786_v15 = vld [vmem:[%s10619_s4 + $0x504] ss:$16 sps:$4 sm:$0xff]   ;;  %v7789_v58 = vld [vmem:[%s10619_s4 + $0x50c] ss:$16 sps:$4 sm:$0xff]  }
 0x2b3   : > { %3187 = vmatprep.subr.bf16.mxu0 %v7744_v60  ;;  %3280 = vmatprep.subr.bf16.mxu1 %v7747_v47  ;;  %v7784_v60 = vld [vmem:[%s10619_s4 + $0x500] ss:$16 sps:$4 sm:$0xff]   ;;  %v7787_v47 = vld [vmem:[%s10619_s4 + $0x508] ss:$16 sps:$4 sm:$0xff]  }
 0x2b4   : > { %2632 = vmatmul.mubr.bf16.gmra.mxu0 %v8971_v23  ;;  %2725 = vmatmul.mubr.bf16.gmra.mxu1 %v8971_v23 }
 0x2b5   : > { %2641 = vmatprep.mubr.bf16.mxu0 %v6597_v6  ;;  %2734 = vmatprep.mubr.bf16.mxu1 %v6597_v6  ;;  %v2825_v6 = vrot.slane %v8866_v12, 1 }
 0x2b6   : > { %3188 = vmatpush2.bf16.msra.mxu0 %v7742_v57  ;;  %3281 = vmatpush2.bf16.msra.mxu1 %v7745_v32  ;;  %v7795_v57 = vld [vmem:[%s10619_s4 + $0x6ec] ss:$16 sps:$4 sm:$0xff]   ;;  %v2818_v32 = vrot.slane %v8830_v50, 1 }
 0x2b7   : > { %3189 = vmatprep.subr.bf16.mxu0 %v7750_v55  ;;  %3282 = vmatprep.subr.bf16.mxu1 %v7753_v33  ;;  %v2817_v55 = vrot.slane %v8890_v48, 1  ;;  %v7790_v33 = vld [vmem:[%s10619_s4 + $0x6e0] ss:$16 sps:$4 sm:$0xff]   ;;  %v7801_v48 = vld [vmem:[%s10619_s4 + $0x6cc] ss:$16 sps:$4 sm:$0xff]  }
 0x2ba   : > { %3190 = vmatpush2.bf16.msra.mxu0 %v7748_v63  ;;  %3283 = vmatpush2.bf16.msra.mxu1 %v7751_v34  ;;  %v7793_v63 = vld [vmem:[%s10619_s4 + $0x6e8] ss:$16 sps:$4 sm:$0xff]   ;;  %v2819_v34 = vsel %vm2816_vm5, %v2817_v55, %v2818_v32  ;;  %v7826_v55 = vld [vmem:[%s10619_s4 + $0x620] ss:$16 sps:$4 sm:$0xff]  }
 0x2bb   : > { %3191 = vmatprep.subr.bf16.mxu0 %v7756_v14  ;;  %3284 = vmatprep.subr.bf16.mxu1 %v7759_v9  ;;  %v7798_v14 = vld [vmem:[%s10619_s4 + $0x6c4] ss:$16 sps:$4 sm:$0xff]   ;;  %v2826_v9 = vsel %vm2816_vm5, %v2821_v36, %v2825_v6 }
 0x2bc   : > { %2642 = vmatmul.mubr.bf16.gmra.mxu0 %v6596_v42  ;;  %2735 = vmatmul.mubr.bf16.gmra.mxu1 %v6596_v42  ;;  %v7796_v42 = vld [vmem:[%s10619_s4 + $0x6c0] ss:$16 sps:$4 sm:$0xff]   ;;  %v7804_v36 = vld [vmem:[%s10619_s4 + $0x6a4] ss:$16 sps:$4 sm:$0xff]  }
 0x2bd   : > { %3203 = vmatprep.mubr.bf16.mxu0 %v2822_v21  ;;  %3296 = vmatprep.mubr.bf16.mxu1 %v2822_v21  ;;  %v7805_v21 = vld [vmem:[%s10619_s4 + $0x6a8] ss:$16 sps:$4 sm:$0xff]  }
 0x2be   : > { %3192 = vmatpush2.bf16.msra.mxu0 %v7754_v27  ;;  %3285 = vmatpush2.bf16.msra.mxu1 %v7757_v28  ;;  %v7799_v27 = vld [vmem:[%s10619_s4 + $0x6c8] ss:$16 sps:$4 sm:$0xff]   ;;  %v2823_v28 = vrot.slane %v8868_v13, 1 }
 0x2bf   : > { %3193 = vmatprep.subr.bf16.mxu0 %v7762_v26  ;;  %3286 = vmatprep.subr.bf16.mxu1 %v7765_v10  ;;  %v2829_v26 = vrot.slane %v8920_v37, 1  ;;  %v7802_v10 = vld [vmem:[%s10619_s4 + $0x6a0] ss:$16 sps:$4 sm:$0xff]  }
 0x2c2   : > { %3194 = vmatpush2.bf16.msra.mxu0 %v7760_v8  ;;  %3287 = vmatpush2.bf16.msra.mxu1 %v7763_v31  ;;  %v2824_v8 = vsel %vm2816_vm5, %v2818_v32, %v2823_v28  ;;  %v7810_v31 = vld [vmem:[%s10619_s4 + $0x684] ss:$16 sps:$4 sm:$0xff]   ;;  %v7831_v32 = vld [vmem:[%s10619_s4 + $0x62c] ss:$16 sps:$4 sm:$0xff]  }
 0x2c3   : > { %3195 = vmatprep.subr.bf16.mxu0 %v7768_v41  ;;  %3288 = vmatprep.subr.bf16.mxu1 %v7771_v2  ;;  %v7813_v41 = vld [vmem:[%s10619_s4 + $0x68c] ss:$16 sps:$4 sm:$0xff]   ;;  %v2830_v2 = vsel %vm2816_vm5, %v2825_v6, %v2829_v26  ;;  %v2837_v6 = vrot.slane %v9082_v5, 1 }
 0x2c4   : > { %v7837_v5 = vld [vmem:[%s10619_s4 + $0x60c] ss:$16 sps:$4 sm:$0xff]  }
 0x2c6   : > { %3196 = vmatpush2.bf16.msra.mxu0 %v7766_v7  ;;  %3289 = vmatpush2.bf16.msra.mxu1 %v7769_v62  ;;  %v7808_v7 = vld [vmem:[%s10619_s4 + $0x680] ss:$16 sps:$4 sm:$0xff]   ;;  %v7811_v62 = vld [vmem:[%s10619_s4 + $0x688] ss:$16 sps:$4 sm:$0xff]  }
 0x2c7   : > { %3197 = vmatprep.subr.bf16.mxu0 %v7774_v30  ;;  %3290 = vmatprep.subr.bf16.mxu1 %v7777_v22  ;;  %v2827_v30 = vrot.slane %v8923_v19, 1  ;;  %v7816_v22 = vld [vmem:[%s10619_s4 + $0x664] ss:$16 sps:$4 sm:$0xff]  }
 0x2ca   : > { %3198 = vmatpush2.bf16.msra.mxu0 %v7772_v52  ;;  %3291 = vmatpush2.bf16.msra.mxu1 %v7775_v43  ;;  %v7819_v52 = vld [vmem:[%s10619_s4 + $0x66c] ss:$16 sps:$4 sm:$0xff]   ;;  %v2833_v43 = vrot.slane %v8968_v29, 1 }
 0x2cb   : > { %3199 = vmatprep.subr.bf16.mxu0 %v7780_v17  ;;  %3292 = vmatprep.subr.bf16.mxu1 %v7783_v11  ;;  %v7814_v17 = vld [vmem:[%s10619_s4 + $0x660] ss:$16 sps:$4 sm:$0xff]   ;;  %v7817_v11 = vld [vmem:[%s10619_s4 + $0x668] ss:$16 sps:$4 sm:$0xff]  }
 0x2ce   : > { %3200 = vmatpush2.bf16.msra.mxu0 %v7778_v44  ;;  %3293 = vmatpush2.bf16.msra.mxu1 %v7781_v35  ;;  %v2828_v44 = vsel %vm2816_vm5, %v2823_v28, %v2827_v30  ;;  %v7822_v35 = vld [vmem:[%s10619_s4 + $0x644] ss:$16 sps:$4 sm:$0xff]   ;;  %v7843_v28 = vld [vmem:[%s10619_s4 + $0x7ec] ss:$16 sps:$4 sm:$0xff]  }
 0x2cf   : > { %3201 = vmatprep.subr.bf16.mxu0 %v7786_v15  ;;  %3294 = vmatprep.subr.bf16.mxu1 %v7789_v58  ;;  %v7825_v15 = vld [vmem:[%s10619_s4 + $0x64c] ss:$16 sps:$4 sm:$0xff]   ;;  %v2834_v58 = vsel %vm2816_vm5, %v2829_v26, %v2833_v43  ;;  %v7846_v26 = vld [vmem:[%s10619_s4 + $0x7c4] ss:$16 sps:$4 sm:$0xff]  }
 0x2d2   : > { %3202 = vmatpush2.bf16.msra.mxu0 %v7784_v60  ;;  %3295 = vmatpush2.bf16.msra.mxu1 %v7787_v47  ;;  %v7820_v60 = vld [vmem:[%s10619_s4 + $0x640] ss:$16 sps:$4 sm:$0xff]   ;;  %v7823_v47 = vld [vmem:[%s10619_s4 + $0x648] ss:$16 sps:$4 sm:$0xff]  }
 0x2d3   : > { %3875 = vmatprep.subr.bf16.mxu0 %v7792_v46  ;;  %3968 = vmatprep.subr.bf16.mxu1 %v7795_v57  ;;  %v2831_v46 = vrot.slane %v8971_v23, 1  ;;  %v7828_v57 = vld [vmem:[%s10619_s4 + $0x624] ss:$16 sps:$4 sm:$0xff]  }
 0x2d5   : > { %3204 = vmatmul.mubr.bf16.vlgmr.msra.gmra.mxu0 %v2819_v34  ;;  %3297 = vmatmul.mubr.bf16.vlgmr.msra.gmra.mxu1 %v2819_v34  ;;  %v7834_v34 = vld [vmem:[%s10619_s4 + $0x604] ss:$16 sps:$4 sm:$0xff]  }
 0x2d6   : > { %3213 = vmatprep.mubr.bf16.mxu0 %v2826_v9  ;;  %3306 = vmatprep.mubr.bf16.mxu1 %v2826_v9  ;;  %v7835_v9 = vld [vmem:[%s10619_s4 + $0x608] ss:$16 sps:$4 sm:$0xff]  }
 0x2d7   : > { %3876 = vmatpush1.bf16.msra.mxu0 %v7790_v33  ;;  %3969 = vmatpush1.bf16.msra.mxu1 %v7793_v63  ;;  %v7829_v33 = vld [vmem:[%s10619_s4 + $0x628] ss:$16 sps:$4 sm:$0xff]   ;;  %v2832_v63 = vsel %vm2816_vm5, %v2827_v30, %v2831_v46  ;;  %v7861_v30 = vld [vmem:[%s10619_s4 + $0x78c] ss:$16 sps:$4 sm:$0xff]  }
 0x2d8   : > { %3877 = vmatprep.subr.bf16.mxu0 %v7798_v14  ;;  %3970 = vmatprep.subr.bf16.mxu1 %v7801_v48  ;;  %v2838_v14 = vsel %vm2816_vm5, %v2833_v43, %v2837_v6  ;;  %v7832_v48 = vld [vmem:[%s10619_s4 + $0x600] ss:$16 sps:$4 sm:$0xff]   ;;  %v7864_v43 = vld [vmem:[%s10619_s4 + $0x764] ss:$16 sps:$4 sm:$0xff]  }
 0x2db   : > { %3878 = vmatpush1.bf16.msra.mxu0 %v7796_v42  ;;  %3971 = vmatpush1.bf16.msra.mxu1 %v7799_v27  ;;  %v2835_v42 = vrot.slane %v9085_v4, 1  ;;  %v7840_v27 = vld [vmem:[%s10619_s4 + $0x7e4] ss:$16 sps:$4 sm:$0xff]  }
 0x2dc   : > { %3879 = vmatprep.subr.bf16.mxu0 %v7804_v36  ;;  %3972 = vmatprep.subr.bf16.mxu1 %v7807_v24  ;;  %v7838_v36 = vld [vmem:[%s10619_s4 + $0x7e0] ss:$16 sps:$4 sm:$0xff]   ;;  %v7841_v24 = vld [vmem:[%s10619_s4 + $0x7e8] ss:$16 sps:$4 sm:$0xff]  }
 0x2dd   : > { %3214 = vmatmul.mubr.bf16.gmra.mxu0 %v2824_v8  ;;  %3307 = vmatmul.mubr.bf16.gmra.mxu1 %v2824_v8  ;;  %v2836_v4 = vsel %vm2816_vm5, %v2831_v46, %v2835_v42  ;;  %v7847_v8 = vld [vmem:[%s10619_s4 + $0x7c8] ss:$16 sps:$4 sm:$0xff]   ;;  %v7874_v46 = vld [vmem:[%s10619_s4 + $0x720] ss:$16 sps:$4 sm:$0xff]  }
 0x2de   : > { %3223 = vmatprep.mubr.bf16.mxu0 %v2830_v2  ;;  %3316 = vmatprep.mubr.bf16.mxu1 %v2830_v2  ;;  %v7850_v2 = vld [vmem:[%s10619_s4 + $0x7a0] ss:$16 sps:$4 sm:$0xff]  }
 0x2df   : > { %3880 = vmatpush1.bf16.msra.mxu0 %v7802_v10  ;;  %3973 = vmatpush1.bf16.msra.mxu1 %v7805_v21  ;;  %v7849_v10 = vld [vmem:[%s10619_s4 + $0x7cc] ss:$16 sps:$4 sm:$0xff]   ;;  %v7844_v21 = vld [vmem:[%s10619_s4 + $0x7c0] ss:$16 sps:$4 sm:$0xff]  }
 0x2e0   : > { %3881 = vmatprep.subr.bf16.mxu0 %v7810_v31  ;;  %3974 = vmatprep.subr.bf16.mxu1 %v7813_v41  ;;  %v7852_v31 = vld [vmem:[%s10619_s4 + $0x7a4] ss:$16 sps:$4 sm:$0xff]   ;;  %v7855_v41 = vld [vmem:[%s10619_s4 + $0x7ac] ss:$16 sps:$4 sm:$0xff]  }
 0x2e3   : > { %3882 = vmatpush1.bf16.msra.mxu0 %v7808_v7  ;;  %3975 = vmatpush1.bf16.msra.mxu1 %v7811_v62  ;;  %v7853_v7 = vld [vmem:[%s10619_s4 + $0x7a8] ss:$16 sps:$4 sm:$0xff]   ;;  %v7858_v62 = vld [vmem:[%s10619_s4 + $0x784] ss:$16 sps:$4 sm:$0xff]  }
 0x2e4   : > { %3883 = vmatprep.subr.bf16.mxu0 %v7816_v22  ;;  %3976 = vmatprep.subr.bf16.mxu1 %v7819_v52  ;;  %v7856_v22 = vld [vmem:[%s10619_s4 + $0x780] ss:$16 sps:$4 sm:$0xff]   ;;  %v7859_v52 = vld [vmem:[%s10619_s4 + $0x788] ss:$16 sps:$4 sm:$0xff]  }
 0x2e5   : > { %3224 = vmatmul.mubr.bf16.gmra.mxu0 %v2828_v44  ;;  %3317 = vmatmul.mubr.bf16.gmra.mxu1 %v2828_v44  ;;  %v7870_v44 = vld [vmem:[%s10619_s4 + $0x744] ss:$16 sps:$4 sm:$0xff]  }
 0x2e6   : > { %3233 = vmatprep.mubr.bf16.mxu0 %v2834_v58  ;;  %3326 = vmatprep.mubr.bf16.mxu1 %v2834_v58  ;;  %v7871_v58 = vld [vmem:[%s10619_s4 + $0x748] ss:$16 sps:$4 sm:$0xff]  }
 0x2e7   : > { %3884 = vmatpush1.bf16.msra.mxu0 %v7814_v17  ;;  %3977 = vmatpush1.bf16.msra.mxu1 %v7817_v11  ;;  %v7862_v17 = vld [vmem:[%s10619_s4 + $0x760] ss:$16 sps:$4 sm:$0xff]   ;;  %v7865_v11 = vld [vmem:[%s10619_s4 + $0x768] ss:$16 sps:$4 sm:$0xff]  }
 0x2e8   : > { %3885 = vmatprep.subr.bf16.mxu0 %v7822_v35  ;;  %3978 = vmatprep.subr.bf16.mxu1 %v7825_v15  ;;  %v7873_v35 = vld [vmem:[%s10619_s4 + $0x74c] ss:$16 sps:$4 sm:$0xff]   ;;  %v7868_v15 = vld [vmem:[%s10619_s4 + $0x740] ss:$16 sps:$4 sm:$0xff]  }
 0x2eb   : > { %3886 = vmatpush1.bf16.msra.mxu0 %v7820_v60  ;;  %3979 = vmatpush1.bf16.msra.mxu1 %v7823_v47  ;;  %v7876_v60 = vld [vmem:[%s10619_s4 + $0x724] ss:$16 sps:$4 sm:$0xff]   ;;  %v7879_v47 = vld [vmem:[%s10619_s4 + $0x72c] ss:$16 sps:$4 sm:$0xff]  }
 0x2ec   : > { %3887 = vmatprep.subr.bf16.mxu0 %v7828_v57  ;;  %3980 = vmatprep.subr.bf16.mxu1 %v7831_v32  ;;  %v7877_v57 = vld [vmem:[%s10619_s4 + $0x728] ss:$16 sps:$4 sm:$0xff]   ;;  %v7882_v32 = vld [vmem:[%s10619_s4 + $0x704] ss:$16 sps:$4 sm:$0xff]  }
 0x2ed   : > { %3234 = vmatmul.mubr.bf16.gmra.mxu0 %v2832_v63  ;;  %3327 = vmatmul.mubr.bf16.gmra.mxu1 %v2832_v63  ;;  %v7888_v63 = vld [vmem:[%s10619_s4 + $0x8e4] ss:$16 sps:$4 sm:$0xff]  }
 0x2ee   : > { %3243 = vmatprep.mubr.bf16.mxu0 %v2838_v14  ;;  %3336 = vmatprep.mubr.bf16.mxu1 %v2838_v14 }
 0x2ef   : > { %3888 = vmatpush1.bf16.msra.mxu0 %v7826_v55  ;;  %3981 = vmatpush1.bf16.msra.mxu1 %v7829_v33  ;;  %v7880_v55 = vld [vmem:[%s10619_s4 + $0x700] ss:$16 sps:$4 sm:$0xff]   ;;  %v7883_v33 = vld [vmem:[%s10619_s4 + $0x708] ss:$16 sps:$4 sm:$0xff]  }
 0x2f0   : > { %3889 = vmatprep.subr.bf16.mxu0 %v7834_v34  ;;  %3982 = vmatprep.subr.bf16.mxu1 %v7837_v5  ;;  %v7891_v34 = vld [vmem:[%s10619_s4 + $0x8ec] ss:$16 sps:$4 sm:$0xff]  }
 0x2f3   : > { %3890 = vmatpush1.bf16.msra.mxu0 %v7832_v48  ;;  %3983 = vmatpush1.bf16.msra.mxu1 %v7835_v9  ;;  %v7886_v48 = vld [vmem:[%s10619_s4 + $0x8e0] ss:$16 sps:$4 sm:$0xff]   ;;  %v7889_v9 = vld [vmem:[%s10619_s4 + $0x8e8] ss:$16 sps:$4 sm:$0xff]  }
 0x2f4   : > { %3891 = vmatprep.subr.bf16.mxu0 %v7840_v27  ;;  %3984 = vmatprep.subr.bf16.mxu1 %v7843_v28  ;;  %v7894_v28 = vld [vmem:[%s10619_s4 + $0x8c4] ss:$16 sps:$4 sm:$0xff]  }
 0x2f5   : > { %3244 = vmatmul.mubr.bf16.gmra.mxu0 %v2836_v4  ;;  %3337 = vmatmul.mubr.bf16.gmra.mxu1 %v2836_v4 }
 0x2f6   : > { %3253 = vmatprep.mubr.bf16.mxu0 %v2837_v6  ;;  %3346 = vmatprep.mubr.bf16.mxu1 %v2837_v6  ;;  %v7885_v6 = vld [vmem:[%s10619_s4 + $0x70c] ss:$16 sps:$4 sm:$0xff]  }
 0x2f7   : > { %3892 = vmatpush2.bf16.msra.mxu0 %v7838_v36  ;;  %3985 = vmatpush2.bf16.msra.mxu1 %v7841_v24  ;;  %v7897_v36 = vld [vmem:[%s10619_s4 + $0x8cc] ss:$16 sps:$4 sm:$0xff]  }
 0x2f8   : > { %3893 = vmatprep.subr.bf16.mxu0 %v7846_v26  ;;  %3986 = vmatprep.subr.bf16.mxu1 %v7849_v10  ;;  %v7892_v26 = vld [vmem:[%s10619_s4 + $0x8c0] ss:$16 sps:$4 sm:$0xff]   ;;  %v7895_v10 = vld [vmem:[%s10619_s4 + $0x8c8] ss:$16 sps:$4 sm:$0xff]  }
 0x2fb   : > { %3894 = vmatpush2.bf16.msra.mxu0 %v7844_v21  ;;  %3987 = vmatpush2.bf16.msra.mxu1 %v7847_v8  ;;  %v7903_v8 = vld [vmem:[%s10619_s4 + $0x8ac] ss:$16 sps:$4 sm:$0xff]  }
 0x2fc   : > { %3895 = vmatprep.subr.bf16.mxu0 %v7852_v31  ;;  %3988 = vmatprep.subr.bf16.mxu1 %v7855_v41 }
 0x2fd   : > { %3254 = vmatmul.mubr.bf16.gmra.mxu0 %v2835_v42  ;;  %3347 = vmatmul.mubr.bf16.gmra.mxu1 %v2835_v42 }
 0x2fe   : > { %3907 = vmatprep.mubr.bf16.mxu0 %v8948_v49  ;;  %4000 = vmatprep.mubr.bf16.mxu1 %v8948_v49  ;;  %v7867_v49 = vld [vmem:[%s10619_s4 + $0x76c] ss:$16 sps:$4 sm:$0xff]  }
 0x2ff   : > { %3896 = vmatpush2.bf16.msra.mxu0 %v7850_v2  ;;  %3989 = vmatpush2.bf16.msra.mxu1 %v7853_v7  ;;  %v7898_v2 = vld [vmem:[%s10619_s4 + $0x8a0] ss:$16 sps:$4 sm:$0xff]   ;;  %v7901_v7 = vld [vmem:[%s10619_s4 + $0x8a8] ss:$16 sps:$4 sm:$0xff]  }
 0x300   : > { %3897 = vmatprep.subr.bf16.mxu0 %v7858_v62  ;;  %3990 = vmatprep.subr.bf16.mxu1 %v7861_v30 }
 0x303   : > { %3898 = vmatpush2.bf16.msra.mxu0 %v7856_v22  ;;  %3991 = vmatpush2.bf16.msra.mxu1 %v7859_v52  ;;  %v7906_v22 = vld [vmem:[%s10619_s4 + $0x884] ss:$16 sps:$4 sm:$0xff]   ;;  %v7909_v52 = vld [vmem:[%s10619_s4 + $0x88c] ss:$16 sps:$4 sm:$0xff]  }
 0x304   : > { %3899 = vmatprep.subr.bf16.mxu0 %v7864_v43  ;;  %3992 = vmatprep.subr.bf16.mxu1 %v7867_v49 }
 0x307   : > { %3900 = vmatpush2.bf16.msra.mxu0 %v7862_v17  ;;  %3993 = vmatpush2.bf16.msra.mxu1 %v7865_v11  ;;  %v7904_v17 = vld [vmem:[%s10619_s4 + $0x880] ss:$16 sps:$4 sm:$0xff]   ;;  %v7907_v11 = vld [vmem:[%s10619_s4 + $0x888] ss:$16 sps:$4 sm:$0xff]  }
 0x308   : > { %3901 = vmatprep.subr.bf16.mxu0 %v7870_v44  ;;  %3994 = vmatprep.subr.bf16.mxu1 %v7873_v35  ;;  %v7915_v35 = vld [vmem:[%s10619_s4 + $0x86c] ss:$16 sps:$4 sm:$0xff]  }
 0x30b   : > { %3902 = vmatpush2.bf16.msra.mxu0 %v7868_v15  ;;  %3995 = vmatpush2.bf16.msra.mxu1 %v7871_v58 }
 0x30c   : > { %3903 = vmatprep.subr.bf16.mxu0 %v7876_v60  ;;  %3996 = vmatprep.subr.bf16.mxu1 %v7879_v47  ;;  %v7910_v60 = vld [vmem:[%s10619_s4 + $0x860] ss:$16 sps:$4 sm:$0xff]   ;;  %v7913_v47 = vld [vmem:[%s10619_s4 + $0x868] ss:$16 sps:$4 sm:$0xff]  }
 0x30f   : > { %3904 = vmatpush2.bf16.msra.mxu0 %v7874_v46  ;;  %3997 = vmatpush2.bf16.msra.mxu1 %v7877_v57 }
 0x310   : > { %3905 = vmatprep.subr.bf16.mxu0 %v7882_v32  ;;  %3998 = vmatprep.subr.bf16.mxu1 %v7885_v6  ;;  %v7918_v32 = vld [vmem:[%s10619_s4 + $0x844] ss:$16 sps:$4 sm:$0xff]   ;;  %v7921_v6 = vld [vmem:[%s10619_s4 + $0x84c] ss:$16 sps:$4 sm:$0xff]  }
 0x311   : > { %v9641_v5 = vpop.f32.mrf.mxu0  ;;  %v9643_v14 = vpop.f32.mrf.mxu1 }
 0x313   : > { %3906 = vmatpush2.bf16.msra.mxu0 %v7880_v55  ;;  %3999 = vmatpush2.bf16.msra.mxu1 %v7883_v33  ;;  %v9651_v42 = vpop.f32.mrf.mxu0  ;;  %v9653_v27 = vpop.f32.mrf.mxu1 }
 0x314   : > { %4535 = vmatprep.subr.bf16.mxu0 %v7888_v63  ;;  %4628 = vmatprep.subr.bf16.mxu1 %v7891_v34  ;;  %v7916_v63 = vld [vmem:[%s10619_s4 + $0x840] ss:$16 sps:$4 sm:$0xff]   ;;  %v7919_v34 = vld [vmem:[%s10619_s4 + $0x848] ss:$16 sps:$4 sm:$0xff]  }
 0x315   : > { %v9665_v24 = vpop.f32.mrf.mxu0  ;;  %v9667_v4 = vpop.f32.mrf.mxu1 }
 0x316   : > { %3908 = vmatmul.mubr.bf16.vlgmr.msra.gmra.mxu0 %v8982_v25  ;;  %4001 = vmatmul.mubr.bf16.vlgmr.msra.gmra.mxu1 %v8982_v25 }
 0x317   : > { %3917 = vmatprep.mubr.bf16.mxu0 %v9028_v61  ;;  %4010 = vmatprep.mubr.bf16.mxu1 %v9028_v61  ;;  %v9675_v25 = vpop.f32.mrf.mxu0  ;;  %v9677_v21 = vpop.f32.mrf.mxu1  ;;  %v7900_v61 = vld [vmem:[%s10619_s4 + $0x8a4] ss:$16 sps:$4 sm:$0xff]  }
 0x318   : > { %4536 = vmatpush1.bf16.msra.mxu0 %v7886_v48  ;;  %4629 = vmatpush1.bf16.msra.mxu1 %v7889_v9  ;;  %10659 = vst [vmem:[#allocation16_spill] sm:$0xff] %v9677_v21  ;;  %v7927_v9 = vld [vmem:[%s10619_s4 + $0x82c] ss:$16 sps:$4 sm:$0xff]  }
 0x319   : > { %4537 = vmatprep.subr.bf16.mxu0 %v7894_v28  ;;  %4630 = vmatprep.subr.bf16.mxu1 %v7897_v36  ;;  %v9685_v31 = vpop.f32.mrf.mxu0  ;;  %v9687_v41 = vpop.f32.mrf.mxu1  ;;  %v7922_v28 = vld [vmem:[%s10619_s4 + $0x820] ss:$16 sps:$4 sm:$0xff]   ;;  %v7925_v36 = vld [vmem:[%s10619_s4 + $0x828] ss:$16 sps:$4 sm:$0xff]  }
 0x31b   : > { %v9695_v62 = vpop.f32.mrf.mxu0  ;;  %v9697_v30 = vpop.f32.mrf.mxu1 }
 0x31c   : > { %4538 = vmatpush1.bf16.msra.mxu0 %v7892_v26  ;;  %4631 = vmatpush1.bf16.msra.mxu1 %v7895_v10 }
 0x31d   : > { %4539 = vmatprep.subr.bf16.mxu0 %v7900_v61  ;;  %4632 = vmatprep.subr.bf16.mxu1 %v7903_v8  ;;  %v9709_v43 = vpop.f32.mrf.mxu0  ;;  %v9711_v49 = vpop.f32.mrf.mxu1  ;;  %v7930_v61 = vld [vmem:[%s10619_s4 + $0x804] ss:$16 sps:$4 sm:$0xff]   ;;  %v7933_v8 = vld [vmem:[%s10619_s4 + $0x80c] ss:$16 sps:$4 sm:$0xff]  }
 0x31e   : > { %3918 = vmatmul.mubr.bf16.gmra.mxu0 %v9049_v1  ;;  %4011 = vmatmul.mubr.bf16.gmra.mxu1 %v9049_v1 }
 0x31f   : > { %3927 = vmatprep.mubr.bf16.mxu0 %v9054_v20  ;;  %4020 = vmatprep.mubr.bf16.mxu1 %v9054_v20  ;;  %v9719_v1 = vpop.f32.mrf.mxu0  ;;  %v9721_v44 = vpop.f32.mrf.mxu1  ;;  %v7912_v20 = vld [vmem:[%s10619_s4 + $0x864] ss:$16 sps:$4 sm:$0xff]  }
 0x320   : > { %4540 = vmatpush1.bf16.msra.mxu0 %v7898_v2  ;;  %4633 = vmatpush1.bf16.msra.mxu1 %v7901_v7  ;;  %10660 = vst [vmem:[#allocation14_spill] sm:$0xff] %v9721_v44  ;;  %v7928_v2 = vld [vmem:[%s10619_s4 + $0x800] ss:$16 sps:$4 sm:$0xff]   ;;  %v7931_v7 = vld [vmem:[%s10619_s4 + $0x808] ss:$16 sps:$4 sm:$0xff]  }
 0x321   : > { %4541 = vmatprep.subr.bf16.mxu0 %v7906_v22  ;;  %4634 = vmatprep.subr.bf16.mxu1 %v7909_v52  ;;  %v9729_v15 = vpop.f32.mrf.mxu0  ;;  %v9731_v58 = vpop.f32.mrf.mxu1 }
 0x323   : > { %v9739_v46 = vpop.f32.mrf.mxu0  ;;  %v9741_v57 = vpop.f32.mrf.mxu1 }
 0x324   : > { %4542 = vmatpush1.bf16.msra.mxu0 %v7904_v17  ;;  %4635 = vmatpush1.bf16.msra.mxu1 %v7907_v11  ;;  %v7934_v17 = vld [vmem:[%s10619_s4 + $0x9e0] ss:$16 sps:$4 sm:$0xff]   ;;  %v7937_v11 = vld [vmem:[%s10619_s4 + $0x9e8] ss:$16 sps:$4 sm:$0xff]  }
 0x325   : > { %4543 = vmatprep.subr.bf16.mxu0 %v7912_v20  ;;  %4636 = vmatprep.subr.bf16.mxu1 %v7915_v35  ;;  %v9753_v55 = vpop.f32.mrf.mxu0  ;;  %v9755_v33 = vpop.f32.mrf.mxu1 }
 0x326   : > { %3928 = vmatmul.mubr.bf16.gmra.mxu0 %v9063_v59  ;;  %4021 = vmatmul.mubr.bf16.gmra.mxu1 %v9063_v59 }
 0x327   : > { %3937 = vmatprep.mubr.bf16.mxu0 %v9067_v16  ;;  %4030 = vmatprep.mubr.bf16.mxu1 %v9067_v16  ;;  %v9763_v59 = vpop.f32.mrf.mxu0  ;;  %v9765_v48 = vpop.f32.mrf.mxu1  ;;  %v7924_v16 = vld [vmem:[%s10619_s4 + $0x824] ss:$16 sps:$4 sm:$0xff]  }
 0x328   : > { %4544 = vmatpush1.bf16.msra.mxu0 %v7910_v60  ;;  %4637 = vmatpush1.bf16.msra.mxu1 %v7913_v47  ;;  %10661 = vst [vmem:[#allocation15_spill] sm:$0xff] %v9765_v48  ;;  %v7942_v60 = vld [vmem:[%s10619_s4 + $0x9c4] ss:$16 sps:$4 sm:$0xff]   ;;  %v7945_v47 = vld [vmem:[%s10619_s4 + $0x9cc] ss:$16 sps:$4 sm:$0xff]  }
 0x329   : > { %4545 = vmatprep.subr.bf16.mxu0 %v7918_v32  ;;  %4638 = vmatprep.subr.bf16.mxu1 %v7921_v6  ;;  %v9779_v26 = vpop.f32.mrf.mxu0  ;;  %v9781_v10 = vpop.f32.mrf.mxu1  ;;  %v9825_v32 = vld [vmem:[#allocation2 + $0x30] sm:$0xcc]  ;;  %v7981_v48 = vld [vmem:[%s10619_s4 + $0x90c] ss:$16 sps:$4 sm:$0xff]  }
 0x32a   : > { %v7940_v6 = vld [vmem:[%s10619_s4 + $0x9c0] ss:$16 sps:$4 sm:$0xff]  }
 0x32b   : > { %v9799_v22 = vpop.f32.mrf.mxu0  ;;  %v9801_v52 = vpop.f32.mrf.mxu1 }
 0x32c   : > { %4546 = vmatpush1.bf16.msra.mxu0 %v7916_v63  ;;  %4639 = vmatpush1.bf16.msra.mxu1 %v7919_v34  ;;  %v7943_v63 = vld [vmem:[%s10619_s4 + $0x9c8] ss:$16 sps:$4 sm:$0xff]   ;;  %v9837_v34 = vld [vmem:[#allocation2] sm:$0xff] }
 0x32d   : > { %4547 = vmatprep.subr.bf16.mxu0 %v7924_v16  ;;  %4640 = vmatprep.subr.bf16.mxu1 %v7927_v9  ;;  %v9815_v20 = vpop.f32.mrf.mxu0  ;;  %v9817_v35 = vpop.f32.mrf.mxu1  ;;  %v6987_v16 = vcombine.high %v9825_v32, %v9837_v34  ;;  %v6986_v44 = vcombine.low %v9825_v32, %v9837_v34  ;;  %v4189_v32 = vrot.slane %v8866_v12, 2 }
 0x32e   : > { %3938 = vmatmul.mubr.bf16.gmra.mxu0 %v9079_v45  ;;  %4031 = vmatmul.mubr.bf16.gmra.mxu1 %v9079_v45  ;;  %v7936_v45 = vld [vmem:[%s10619_s4 + $0x9e4] ss:$16 sps:$4 sm:$0xff]  }
 0x32f   : > { %3947 = vmatprep.mubr.bf16.mxu0 %v9152_v3  ;;  %4040 = vmatprep.mubr.bf16.mxu1 %v9152_v3  ;;  %v7939_v3 = vld [vmem:[%s10619_s4 + $0x9ec] ss:$16 sps:$4 sm:$0xff]   ;;  %v9843_v9 = vpop.f32.mrf.mxu1 }
 0x330   : > { %4548 = vmatpush1.bf16.msra.mxu0 %v7922_v28  ;;  %4641 = vmatpush1.bf16.msra.mxu1 %v7925_v36  ;;  %10663 = vst [vmem:[#allocation18_spill] sm:$0xff] %v9843_v9  ;;  %v7951_v28 = vld [vmem:[%s10619_s4 + $0x9ac] ss:$16 sps:$4 sm:$0xff]   ;;  %v10634_v36 = vrot.slane %v8832_v51, 2 }
 0x331   : > { %4549 = vmatprep.subr.bf16.mxu0 %v7930_v61  ;;  %4642 = vmatprep.subr.bf16.mxu1 %v7933_v8 }
 0x334   : > { %4550 = vmatpush1.bf16.msra.mxu0 %v7928_v2  ;;  %4643 = vmatpush1.bf16.msra.mxu1 %v7931_v7  ;;  %v7946_v2 = vld [vmem:[%s10619_s4 + $0x9a0] ss:$16 sps:$4 sm:$0xff]   ;;  %v7949_v7 = vld [vmem:[%s10619_s4 + $0x9a8] ss:$16 sps:$4 sm:$0xff]  }
 0x335   : > { %4551 = vmatprep.subr.bf16.mxu0 %v7936_v45  ;;  %4644 = vmatprep.subr.bf16.mxu1 %v7939_v3  ;;  %v4184_v45 = vrot.slane %v6987_v16, 2  ;;  %v7952_v16 = vld [vmem:[%s10619_s4 + $0x980] ss:$16 sps:$4 sm:$0xff]  }
 0x336   : > { %3948 = vmatmul.mubr.bf16.gmra.mxu0 %v9157_v0  ;;  %4041 = vmatmul.mubr.bf16.gmra.mxu1 %v9157_v0  ;;  %v9841_v0 = vpop.f32.mrf.mxu0 }
 0x337   : > { %3957 = vmatprep.mubr.bf16.mxu0 %v9144_v18  ;;  %4050 = vmatprep.mubr.bf16.mxu1 %v9144_v18  ;;  %10662 = vst [vmem:[#allocation17_spill] sm:$0xff] %v9841_v0  ;;  %v7948_v18 = vld [vmem:[%s10619_s4 + $0x9a4] ss:$16 sps:$4 sm:$0xff]  }
 0x338   : > { %4552 = vmatpush2.bf16.msra.mxu0 %v7934_v17  ;;  %4645 = vmatpush2.bf16.msra.mxu1 %v7937_v11  ;;  %v7954_v11 = vld [vmem:[%s10619_s4 + $0x984] ss:$16 sps:$4 sm:$0xff]  }
 0x339   : > { %4553 = vmatprep.subr.bf16.mxu0 %v7942_v60  ;;  %4646 = vmatprep.subr.bf16.mxu1 %v7945_v47  ;;  %v7957_v60 = vld [vmem:[%s10619_s4 + $0x98c] ss:$16 sps:$4 sm:$0xff]   ;;  %v4186_v47 = vsel %vm678_vm1, %v4184_v45, %v10634_v36  ;;  %v7958_v45 = vld [vmem:[%s10619_s4 + $0x960] ss:$16 sps:$4 sm:$0xff]  }
 0x33a   : > { %v7975_v36 = vld [vmem:[%s10619_s4 + $0x92c] ss:$16 sps:$4 sm:$0xff]  }
 0x33b   : > { %v9852_v61 = vpop.f32.mrf.mxu0  ;;  %v9854_v8 = vpop.f32.mrf.mxu1 }
 0x33c   : > { %4554 = vmatpush2.bf16.msra.mxu0 %v7940_v6  ;;  %4647 = vmatpush2.bf16.msra.mxu1 %v7943_v63 }
 0x33d   : > { %v9862_v3 = vpop.f32.mrf.mxu0  ;;  %v9864_v17 = vpop.f32.mrf.mxu1  ;;  %4555 = vmatprep.subr.bf16.mxu0 %v7948_v18  ;;  %4648 = vmatprep.subr.bf16.mxu1 %v7951_v28  ;;  %v7960_v18 = vld [vmem:[%s10619_s4 + $0x964] ss:$16 sps:$4 sm:$0xff]   ;;  %v7963_v28 = vld [vmem:[%s10619_s4 + $0x96c] ss:$16 sps:$4 sm:$0xff]  }
 0x33e   : > { %3958 = vmatmul.mubr.bf16.gmra.mxu0 %v9146_v38  ;;  %4051 = vmatmul.mubr.bf16.gmra.mxu1 %v9146_v38  ;;  %v7955_v38 = vld [vmem:[%s10619_s4 + $0x988] ss:$16 sps:$4 sm:$0xff]  }
 0x33f   : > { %v9877_v6 = vpop.f32.mrf.mxu0  ;;  %v9879_v63 = vpop.f32.mrf.mxu1  ;;  %4567 = vmatprep.mubr.bf16.mxu0 %v4186_v47  ;;  %4660 = vmatprep.mubr.bf16.mxu1 %v4186_v47  ;;  %v7969_v47 = vld [vmem:[%s10619_s4 + $0x94c] ss:$16 sps:$4 sm:$0xff]  }
 0x340   : > { %4556 = vmatpush2.bf16.msra.mxu0 %v7946_v2  ;;  %4649 = vmatpush2.bf16.msra.mxu1 %v7949_v7 }
 0x341   : > { %4557 = vmatprep.subr.bf16.mxu0 %v7954_v11  ;;  %4650 = vmatprep.subr.bf16.mxu1 %v7957_v60  ;;  %v9893_v2 = vpop.f32.mrf.mxu0  ;;  %v9895_v7 = vpop.f32.mrf.mxu1  ;;  %v7961_v11 = vld [vmem:[%s10619_s4 + $0x968] ss:$16 sps:$4 sm:$0xff]   ;;  %v7966_v60 = vld [vmem:[%s10619_s4 + $0x944] ss:$16 sps:$4 sm:$0xff]  }
 0x342   : > { %10664 = vst [vmem:[#allocation19_spill] sm:$0xff] %v9893_v2  ;;  %10665 = vst [vmem:[#allocation20_spill] sm:$0xff] %v9895_v7  ;;  %v4182_v2 = vrot.slane %v8830_v50, 2  ;;  %v10667_v50 = vrot.slane %v8832_v51, 2 }
 0x344   : > { %4558 = vmatpush2.bf16.msra.mxu0 %v7952_v16  ;;  %4651 = vmatpush2.bf16.msra.mxu1 %v7955_v38  ;;  %v9909_v16 = vpop.f32.mrf.mxu0  ;;  %v9911_v38 = vpop.f32.mrf.mxu1  ;;  %v4190_v12 = vsel %vm678_vm1, %v10667_v50, %v4189_v32 }
 0x345   : > { %4559 = vmatprep.subr.bf16.mxu0 %v7960_v18  ;;  %4652 = vmatprep.subr.bf16.mxu1 %v7963_v28  ;;  %v7967_v18 = vld [vmem:[%s10619_s4 + $0x948] ss:$16 sps:$4 sm:$0xff]   ;;  %v7972_v28 = vld [vmem:[%s10619_s4 + $0x924] ss:$16 sps:$4 sm:$0xff]  }
 0x348   : > { %4560 = vmatpush2.bf16.msra.mxu0 %v7958_v45  ;;  %4653 = vmatpush2.bf16.msra.mxu1 %v7961_v11  ;;  %v9925_v45 = vpop.f32.mrf.mxu0  ;;  %v9927_v11 = vpop.f32.mrf.mxu1 }
 0x349   : > { %4561 = vmatprep.subr.bf16.mxu0 %v7966_v60  ;;  %4654 = vmatprep.subr.bf16.mxu1 %v7969_v47  ;;  %v7973_v60 = vld [vmem:[%s10619_s4 + $0x928] ss:$16 sps:$4 sm:$0xff]   ;;  %v7978_v47 = vld [vmem:[%s10619_s4 + $0x904] ss:$16 sps:$4 sm:$0xff]  }
 0x34c   : > { %4562 = vmatpush2.bf16.msra.mxu0 %v7964_v56  ;;  %4655 = vmatpush2.bf16.msra.mxu1 %v7967_v18  ;;  %v9941_v56 = vpop.f32.mrf.mxu0  ;;  %v9943_v18 = vpop.f32.mrf.mxu1 }
 0x34d   : > { %4563 = vmatprep.subr.bf16.mxu0 %v7972_v28  ;;  %4656 = vmatprep.subr.bf16.mxu1 %v7975_v36  ;;  %v7976_v36 = vld [vmem:[%s10619_s4 + $0x900] ss:$16 sps:$4 sm:$0xff]   ;;  %v7979_v28 = vld [vmem:[%s10619_s4 + $0x908] ss:$16 sps:$4 sm:$0xff]  }
 0x34e   : > { %v9953_v21 = vpop.f32.mrf.mxu0  ;;  %v9955_v7 = vpop.f32.mrf.mxu1 }
 0x34f   : > { %10666 = vst [vmem:[#allocation21_spill] sm:$0xff] %v9953_v21 }
 0x350   : > { %4564 = vmatpush2.bf16.msra.mxu0 %v7970_v54  ;;  %4657 = vmatpush2.bf16.msra.mxu1 %v7973_v60  ;;  %v4181_v54 = vrot.slane %v6986_v44, 2 }
 0x351   : > { %4565 = vmatprep.subr.bf16.mxu0 %v7978_v47  ;;  %4658 = vmatprep.subr.bf16.mxu1 %v7981_v48 }
 0x352   : > { %v4183_v48 = vsel %vm678_vm1, %v4181_v54, %v4182_v2 }
 0x354   : > { %4566 = vmatpush2.bf16.msra.mxu0 %v7976_v36  ;;  %4659 = vmatpush2.bf16.msra.mxu1 %v7979_v28  ;;  %v2593_v34 = vpop.f32.mrf.mxu0  ;;  %v2686_v60 = vpop.f32.mrf.mxu1 }
 0x355   : > { %v9960_v9 = vadd.f32 %v2593_v34, %v9641_v5  ;;  %v9963_v0 = vadd.f32 %v2686_v60, %v9643_v14  ;;  %v4193_v60 = vrot.slane %v8920_v37, 2 }
 0x356   : > { %v2595_v47 = vpop.f32.mrf.mxu0  ;;  %v2688_v21 = vpop.f32.mrf.mxu1 }
 0x357   : > { %4568 = vmatmul.mubr.bf16.vlgmr.msra.gmra.mxu0 %v4183_v48  ;;  %4661 = vmatmul.mubr.bf16.vlgmr.msra.gmra.mxu1 %v4183_v48  ;;  %v9970_v44 = vadd.f32 %v2595_v47, %v9651_v42  ;;  %v9973_v36 = vadd.f32 %v2688_v21, %v9653_v27  ;;  %v4187_v42 = vrot.slane %v8868_v13, 2 }
 0x358   : > { %4577 = vmatprep.mubr.bf16.mxu0 %v4190_v12  ;;  %4670 = vmatprep.mubr.bf16.mxu1 %v4190_v12  ;;  %v2597_v5 = vpop.f32.mrf.mxu0  ;;  %v2690_v14 = vpop.f32.mrf.mxu1  ;;  %v4194_v12 = vsel %vm678_vm1, %v4189_v32, %v4193_v60  ;;  %v4197_v32 = vrot.slane %v8968_v29, 2 }
 0x359   : > { %v9976_v28 = vadd.f32 %v2597_v5, %v9665_v24  ;;  %v9979_v54 = vadd.f32 %v2690_v14, %v9667_v4  ;;  %v4188_v24 = vsel %vm678_vm1, %v4182_v2, %v4187_v42 }
 0x35a   : > { %v9981_v34 = vpop.f32.mrf.mxu0  ;;  %v9983_v51 = vpop.f32.mrf.mxu1 }
 0x35c   : > { %v2603_v27 = vpop.f32.mrf.mxu0  ;;  %v2696_v21 = vpop.f32.mrf.mxu1 }
 0x35d   : > { %v9988_v48 = vadd.f32 %v2603_v27, %v9685_v31  ;;  %v9991_v47 = vadd.f32 %v2696_v21, %v9687_v41 }
 0x35e   : > { %v2605_v4 = vpop.f32.mrf.mxu0  ;;  %v2698_v50 = vpop.f32.mrf.mxu1 }
 0x35f   : > { %4578 = vmatmul.mubr.bf16.gmra.mxu0 %v4188_v24  ;;  %4671 = vmatmul.mubr.bf16.gmra.mxu1 %v4188_v24  ;;  %v9996_v13 = vadd.f32 %v2605_v4, %v9695_v62  ;;  %v9999_v37 = vadd.f32 %v2698_v50, %v9697_v30  ;;  %v4191_v62 = vrot.slane %v8923_v19, 2 }
 0x360   : > { %4587 = vmatprep.mubr.bf16.mxu0 %v4194_v12  ;;  %4680 = vmatprep.mubr.bf16.mxu1 %v4194_v12  ;;  %v2607_v31 = vpop.f32.mrf.mxu0  ;;  %v2700_v5 = vpop.f32.mrf.mxu1  ;;  %v4198_v12 = vsel %vm678_vm1, %v4193_v60, %v4197_v32  ;;  %v4201_v60 = vrot.slane %v9102_v39, 2 }
 0x361   : > { %v10002_v41 = vadd.f32 %v2607_v31, %v9709_v43  ;;  %v10005_v2 = vadd.f32 %v2700_v5, %v9711_v49  ;;  %v4192_v43 = vsel %vm678_vm1, %v4187_v42, %v4191_v62 }
 0x362   : > { %v10007_v14 = vpop.f32.mrf.mxu0  ;;  %v10009_v27 = vpop.f32.mrf.mxu1 }
 0x364   : > { %v2613_v30 = vpop.f32.mrf.mxu0  ;;  %v2706_v21 = vpop.f32.mrf.mxu1 }
 0x365   : > { %v10014_v24 = vadd.f32 %v2613_v30, %v9729_v15  ;;  %v10017_v4 = vadd.f32 %v2706_v21, %v9731_v58 }
 0x366   : > { %v2615_v49 = vpop.f32.mrf.mxu0  ;;  %v2708_v50 = vpop.f32.mrf.mxu1 }
 0x367   : > { %4588 = vmatmul.mubr.bf16.gmra.mxu0 %v4192_v43  ;;  %4681 = vmatmul.mubr.bf16.gmra.mxu1 %v4192_v43  ;;  %v10022_v19 = vadd.f32 %v2615_v49, %v9739_v46  ;;  %v10025_v29 = vadd.f32 %v2708_v50, %v9741_v57  ;;  %v4195_v46 = vrot.slane %v8971_v23, 2 }
 0x368   : > { %4597 = vmatprep.mubr.bf16.mxu0 %v4198_v12  ;;  %4690 = vmatprep.mubr.bf16.mxu1 %v4198_v12  ;;  %v2617_v15 = vpop.f32.mrf.mxu0  ;;  %v2710_v31 = vpop.f32.mrf.mxu1  ;;  %v4202_v12 = vsel %vm678_vm1, %v4197_v32, %v4201_v60 }
 0x369   : > { %v10028_v58 = vadd.f32 %v2617_v15, %v9753_v55  ;;  %v10031_v42 = vadd.f32 %v2710_v31, %v9755_v33  ;;  %v4196_v55 = vsel %vm678_vm1, %v4191_v62, %v4195_v46 }
 0x36a   : > { %v10033_v5 = vpop.f32.mrf.mxu0  ;;  %v10035_v30 = vpop.f32.mrf.mxu1 }
 0x36c   : > { %v2623_v57 = vpop.f32.mrf.mxu0  ;;  %v2716_v21 = vpop.f32.mrf.mxu1 }
 0x36d   : > { %v10040_v43 = vadd.f32 %v2623_v57, %v9779_v26  ;;  %v10043_v49 = vadd.f32 %v2716_v21, %v9781_v10 }
 0x36e   : > { %v2625_v33 = vpop.f32.mrf.mxu0  ;;  %v2718_v50 = vpop.f32.mrf.mxu1 }
 0x36f   : > { %4598 = vmatmul.mubr.bf16.gmra.mxu0 %v4196_v55  ;;  %4691 = vmatmul.mubr.bf16.gmra.mxu1 %v4196_v55  ;;  %v10048_v23 = vadd.f32 %v2625_v33, %v9799_v22  ;;  %v10051_v39 = vadd.f32 %v2718_v50, %v9801_v52  ;;  %v4199_v22 = vrot.slane %v9108_v40, 2 }
 0x370   : > { %4607 = vmatprep.mubr.bf16.mxu0 %v4202_v12  ;;  %4700 = vmatprep.mubr.bf16.mxu1 %v4202_v12  ;;  %v2627_v26 = vpop.f32.mrf.mxu0  ;;  %v2720_v15 = vpop.f32.mrf.mxu1 }
 0x371   : > { %v10054_v10 = vadd.f32 %v2627_v26, %v9815_v20  ;;  %v10057_v62 = vadd.f32 %v2720_v15, %v9817_v35  ;;  %v4200_v20 = vsel %vm678_vm1, %v4195_v46, %v4199_v22 }
 0x372   : > { %v10059_v31 = vpop.f32.mrf.mxu0  ;;  %v10061_v57 = vpop.f32.mrf.mxu1 }
 0x374   : > { %v2633_v32 = vpop.f32.mrf.mxu0  ;;  %v2726_v21 = vpop.f32.mrf.mxu1 }
 0x375   : > { %v10065_v52 = vadd.f32 %v2633_v32, %v9852_v61  ;;  %v10068_v55 = vadd.f32 %v2726_v21, %v9854_v8 }
 0x376   : > { %v2635_v33 = vpop.f32.mrf.mxu0  ;;  %v2728_v50 = vpop.f32.mrf.mxu1 }
 0x377   : > { %4608 = vmatmul.mubr.bf16.gmra.mxu0 %v4200_v20  ;;  %4701 = vmatmul.mubr.bf16.gmra.mxu1 %v4200_v20  ;;  %v10072_v35 = vadd.f32 %v2635_v33, %v9862_v3  ;;  %v10075_v12 = vadd.f32 %v2728_v50, %v9864_v17 }
 0x378   : > { %4617 = vmatprep.mubr.bf16.mxu0 %v4201_v60  ;;  %4710 = vmatprep.mubr.bf16.mxu1 %v4201_v60  ;;  %v2637_v40 = vpop.f32.mrf.mxu0  ;;  %v2730_v61 = vpop.f32.mrf.mxu1 }
 0x379   : > { %v10078_v26 = vadd.f32 %v2637_v40, %v9877_v6  ;;  %v10081_v8 = vadd.f32 %v2730_v61, %v9879_v63 }
 0x37a   : > { %v10083_v46 = vpop.f32.mrf.mxu0  ;;  %v10085_v15 = vpop.f32.mrf.mxu1 }
 0x37c   : > { %v2643_v32 = vpop.f32.mrf.mxu0  ;;  %v2736_v3 = vpop.f32.mrf.mxu1 }
 0x37d   : > { %v10088_v21 = vadd.f32 %v2643_v32, %v9909_v16  ;;  %v10091_v17 = vadd.f32 %v2736_v3, %v9911_v38 }
 0x37e   : > { %v2645_v60 = vpop.f32.mrf.mxu0  ;;  %v2738_v20 = vpop.f32.mrf.mxu1 }
 0x37f   : > { %4618 = vmatmul.mubr.bf16.gmra.mxu0 %v4199_v22  ;;  %4711 = vmatmul.mubr.bf16.gmra.mxu1 %v4199_v22  ;;  %v10094_v6 = vadd.f32 %v2645_v60, %v9925_v45  ;;  %v10097_v63 = vadd.f32 %v2738_v20, %v9927_v11 }
 0x380   : > { %v2647_v33 = vpop.f32.mrf.mxu0  ;;  %v2740_v50 = vpop.f32.mrf.mxu1  ;;  %4900 = vmatprep.mubr.bf16.mxu1 %v10658_v53 }
 0x381   : > { %v10101_v16 = vadd.f32 %v2647_v33, %v9941_v56  ;;  %v10104_v38 = vadd.f32 %v2740_v50, %v9943_v18  ;;  %v2600_v50 = vadd.f32 %v9981_v34, %v9675_v25 }
 0x382   : > { %v10106_v40 = vpop.f32.mrf.mxu0  ;;  %v10108_v61 = vpop.f32.mrf.mxu1 }
 0x395   : > { %v3205_v22 = vpop.f32.mrf.mxu0  ;;  %v3298_v45 = vpop.f32.mrf.mxu1 }
 0x396   : > { %v10111_v32 = vadd.f32 %v3205_v22, %v9960_v9  ;;  %v10114_v11 = vadd.f32 %v3298_v45, %v9963_v0 }
 0x397   : > { %v3207_v3 = vpop.f32.mrf.mxu0  ;;  %v3300_v60 = vpop.f32.mrf.mxu1 }
 0x398   : > { %v10117_v56 = vadd.f32 %v3207_v3, %v9970_v44  ;;  %v10120_v18 = vadd.f32 %v3300_v60, %v9973_v36 }
 0x399   : > { %v3209_v20 = vpop.f32.mrf.mxu0  ;;  %v3302_v33 = vpop.f32.mrf.mxu1 }
 0x39a   : > { %v10125_v53 = vadd.f32 %v3209_v20, %v9976_v28  ;;  %v10128_v9 = vadd.f32 %v3302_v33, %v9979_v54 }
 0x39b   : > { %v3211_v0 = vpop.f32.mrf.mxu0  ;;  %v10130_v22 = vpop.f32.mrf.mxu1 }
 0x39c   : > { %v10132_v45 = vadd.f32 %v3211_v0, %v2600_v50  ;;  %v2610_v50 = vadd.f32 %v10007_v14, %v9719_v1 }
 0x39d   : > { %v3215_v44 = vpop.f32.mrf.mxu0  ;;  %v3308_v3 = vpop.f32.mrf.mxu1 }
 0x39e   : > { %v10135_v36 = vadd.f32 %v3215_v44, %v9988_v48  ;;  %v10138_v60 = vadd.f32 %v3308_v3, %v9991_v47 }
 0x39f   : > { %v3217_v25 = vpop.f32.mrf.mxu0  ;;  %v3310_v34 = vpop.f32.mrf.mxu1 }
 0x3a0   : > { %v10141_v28 = vadd.f32 %v3217_v25, %v9996_v13  ;;  %v10144_v54 = vadd.f32 %v3310_v34, %v9999_v37 }
 0x3a1   : > { %v3219_v20 = vpop.f32.mrf.mxu0  ;;  %v3312_v33 = vpop.f32.mrf.mxu1 }
 0x3a2   : > { %v10149_v0 = vadd.f32 %v3219_v20, %v10002_v41  ;;  %v10152_v48 = vadd.f32 %v3312_v33, %v10005_v2 }
 0x3a3   : > { %v3221_v47 = vpop.f32.mrf.mxu0  ;;  %v10154_v44 = vpop.f32.mrf.mxu1 }
 0x3a4   : > { %v10156_v3 = vadd.f32 %v3221_v47, %v2610_v50  ;;  %v2620_v50 = vadd.f32 %v10033_v5, %v9763_v59 }
 0x3a5   : > { %v3225_v13 = vpop.f32.mrf.mxu0  ;;  %v3318_v25 = vpop.f32.mrf.mxu1 }
 0x3a6   : > { %v10159_v37 = vadd.f32 %v3225_v13, %v10014_v24  ;;  %v10162_v34 = vadd.f32 %v3318_v25, %v10017_v4 }
 0x3a7   : > { %v3227_v1 = vpop.f32.mrf.mxu0  ;;  %v3320_v14 = vpop.f32.mrf.mxu1 }
 0x3a8   : > { %v10165_v41 = vadd.f32 %v3227_v1, %v10022_v19  ;;  %v10168_v2 = vadd.f32 %v3320_v14, %v10025_v29 }
 0x3a9   : > { %v3229_v20 = vpop.f32.mrf.mxu0  ;;  %v3322_v33 = vpop.f32.mrf.mxu1 }
 0x3aa   : > { %v10173_v47 = vadd.f32 %v3229_v20, %v10028_v58  ;;  %v10176_v24 = vadd.f32 %v3322_v33, %v10031_v42 }
 0x3ab   : > { %v3231_v4 = vpop.f32.mrf.mxu0  ;;  %v10178_v13 = vpop.f32.mrf.mxu1 }
 0x3ac   : > { %v10180_v25 = vadd.f32 %v3231_v4, %v2620_v50  ;;  %v10671_v50 = vld [vmem:[#allocation17_spill] sm:$0xff] }
 0x3ad   : > { %v3235_v19 = vpop.f32.mrf.mxu0  ;;  %v3328_v1 = vpop.f32.mrf.mxu1  ;;  %v2630_v4 = vadd.f32 %v10059_v31, %v10671_v50  ;;  %v10673_v50 = vld [vmem:[#allocation19_spill] sm:$0xff] }
 0x3ae   : > { %10668 = vst [vmem:[#allocation22_spill] sm:$0xff] %v10180_v25  ;;  %v10183_v29 = vadd.f32 %v3235_v19, %v10040_v43  ;;  %v10186_v14 = vadd.f32 %v3328_v1, %v10043_v49  ;;  %v10672_v25 = vld [vmem:[#allocation18_spill] sm:$0xff] }
 0x3af   : > { %v3237_v59 = vpop.f32.mrf.mxu0  ;;  %v3330_v5 = vpop.f32.mrf.mxu1  ;;  %v2723_v43 = vadd.f32 %v10061_v57, %v10672_v25 }
 0x3b0   : > { %v10189_v58 = vadd.f32 %v3237_v59, %v10048_v23  ;;  %v10192_v42 = vadd.f32 %v3330_v5, %v10051_v39 }
 0x3b1   : > { %v3239_v20 = vpop.f32.mrf.mxu0  ;;  %v3332_v33 = vpop.f32.mrf.mxu1 }
 0x3b2   : > { %10669 = vst [vmem:[#allocation23_spill] sm:$0xff] %v10189_v58  ;;  %10670 = vst [vmem:[#allocation24_spill] sm:$0xff] %v10192_v42  ;;  %v10199_v19 = vadd.f32 %v3239_v20, %v10054_v10  ;;  %v10202_v49 = vadd.f32 %v3332_v33, %v10057_v62 }
 0x3b3   : > { %v3241_v1 = vpop.f32.mrf.mxu0  ;;  %v3334_v23 = vpop.f32.mrf.mxu1 }
 0x3b4   : > { %v10204_v59 = vadd.f32 %v3241_v1, %v2630_v4  ;;  %v10206_v39 = vadd.f32 %v3334_v23, %v2723_v43  ;;  %v2640_v4 = vadd.f32 %v10083_v46, %v10673_v50  ;;  %v10674_v43 = vld [vmem:[#allocation20_spill] sm:$0xff] }
 0x3b5   : > { %v3245_v5 = vpop.f32.mrf.mxu0  ;;  %v3338_v42 = vpop.f32.mrf.mxu1 }
 0x3b6   : > { %v10209_v58 = vadd.f32 %v3245_v5, %v10065_v52  ;;  %v10212_v31 = vadd.f32 %v3338_v42, %v10068_v55  ;;  %v2733_v52 = vadd.f32 %v10085_v15, %v10674_v43 }
 0x3b7   : > { %v3247_v57 = vpop.f32.mrf.mxu0  ;;  %v3340_v10 = vpop.f32.mrf.mxu1 }
 0x3b8   : > { %v10215_v25 = vadd.f32 %v3247_v57, %v10072_v35  ;;  %v10218_v62 = vadd.f32 %v3340_v10, %v10075_v12 }
 0x3b9   : > { %v3249_v20 = vpop.f32.mrf.mxu0  ;;  %v3342_v33 = vpop.f32.mrf.mxu1 }
 0x3ba   : > { %v10225_v1 = vadd.f32 %v3249_v20, %v10078_v26  ;;  %v10228_v55 = vadd.f32 %v3342_v33, %v10081_v8 }
 0x3bb   : > { %v3251_v42 = vpop.f32.mrf.mxu0  ;;  %v3344_v35 = vpop.f32.mrf.mxu1 }
 0x3bc   : > { %v10230_v23 = vadd.f32 %v3251_v42, %v2640_v4  ;;  %v10232_v12 = vadd.f32 %v3344_v35, %v2733_v52  ;;  %v10678_v4 = vld [vmem:[#allocation21_spill] sm:$0xff] }
 0x3bd   : > { %v3255_v5 = vpop.f32.mrf.mxu0  ;;  %v3348_v57 = vpop.f32.mrf.mxu1  ;;  %v2650_v43 = vadd.f32 %v10106_v40, %v10678_v4 }
 0x3be   : > { %v10235_v10 = vadd.f32 %v3255_v5, %v10088_v21  ;;  %v10238_v46 = vadd.f32 %v3348_v57, %v10091_v17  ;;  %v2743_v21 = vadd.f32 %v10108_v61, %v9955_v7  ;;  %v10683_v61 = vld [vmem:[#allocation16_spill] sm:$0xff] }
 0x3bf   : > { %v3257_v15 = vpop.f32.mrf.mxu0  ;;  %v3350_v26 = vpop.f32.mrf.mxu1 }
 0x3c0   : > { %10675 = vst [vmem:[#allocation17_spill] sm:$0xff] %v10238_v46  ;;  %v10241_v20 = vadd.f32 %v3257_v15, %v10094_v6  ;;  %v10244_v8 = vadd.f32 %v3350_v26, %v10097_v63 }
 0x3c1   : > { %v3259_v33 = vpop.f32.mrf.mxu0  ;;  %v3352_v50 = vpop.f32.mrf.mxu1 }
 0x3c2   : > { %10676 = vst [vmem:[#allocation18_spill] sm:$0xff] %v10241_v20  ;;  %10677 = vst [vmem:[#allocation19_spill] sm:$0xff] %v10244_v8  ;;  %v10251_v52 = vadd.f32 %v3259_v33, %v10101_v16  ;;  %v10254_v17 = vadd.f32 %v3352_v50, %v10104_v38  ;;  %v2693_v38 = vadd.f32 %v9983_v51, %v10683_v61 }
 0x3c3   : > { %v3261_v42 = vpop.f32.mrf.mxu0  ;;  %v3354_v6 = vpop.f32.mrf.mxu1 }
 0x3c4   : > { %10679 = vst [vmem:[#allocation20_spill] sm:$0xff] %v10251_v52  ;;  %10680 = vst [vmem:[#allocation21_spill] sm:$0xff] %v10254_v17  ;;  %v10256_v35 = vadd.f32 %v3261_v42, %v2650_v43  ;;  %v10258_v63 = vadd.f32 %v3354_v6, %v2743_v21  ;;  %v3364_v43 = vadd.f32 %v10130_v22, %v2693_v38 }
 0x3c6   : > { %10681 = vst [vmem:[#allocation25_spill] sm:$0xff] %v10256_v35  ;;  %10682 = vst [vmem:[#allocation26_spill] sm:$0xff] %v10258_v63 }
 0x3d6   : > { %v3909_v5 = vpop.f32.mrf.mxu0  ;;  %v4002_v57 = vpop.f32.mrf.mxu1 }
 0x3d7   : > { %v10261_v15 = vadd.f32 %v3909_v5, %v10111_v32  ;;  %v10264_v40 = vadd.f32 %v4002_v57, %v10114_v11 }
 0x3d8   : > { %v3911_v7 = vpop.f32.mrf.mxu0  ;;  %v4004_v16 = vpop.f32.mrf.mxu1 }
 0x3d9   : > { %v10269_v26 = vadd.f32 %v3911_v7, %v10117_v56  ;;  %v10272_v33 = vadd.f32 %v4004_v16, %v10120_v18  ;;  %v10684_v7 = vld [vmem:[#allocation14_spill] sm:$0xff] }
 0x3da   : > { %v3913_v50 = vpop.f32.mrf.mxu0  ;;  %v4006_v4 = vpop.f32.mrf.mxu1 }
 0x3db   : > { %v10276_v32 = vadd.f32 %v3913_v50, %v10125_v53  ;;  %v10279_v11 = vadd.f32 %v4006_v4, %v10128_v9  ;;  %v2703_v9 = vadd.f32 %v10009_v27, %v10684_v7 }
 0x3dc   : > { %v3915_v21 = vpop.f32.mrf.mxu0  ;;  %v4008_v42 = vpop.f32.mrf.mxu1 }
 0x3dd   : > { %v10282_v51 = vadd.f32 %v3915_v21, %v10132_v45  ;;  %v10284_v56 = vadd.f32 %v4008_v42, %v3364_v43  ;;  %v3372_v50 = vadd.f32 %v10154_v44, %v2703_v9 }
 0x3de   : > { %v3919_v6 = vpop.f32.mrf.mxu0  ;;  %v4012_v18 = vpop.f32.mrf.mxu1 }
 0x3df   : > { %v10287_v5 = vadd.f32 %v3919_v6, %v10135_v36  ;;  %v10290_v22 = vadd.f32 %v4012_v18, %v10138_v60  ;;  %v10685_v18 = vld [vmem:[#allocation15_spill] sm:$0xff] }
 0x3e0   : > { %v3921_v53 = vpop.f32.mrf.mxu0  ;;  %v4014_v57 = vpop.f32.mrf.mxu1 }
 0x3e1   : > { %v10295_v16 = vadd.f32 %v3921_v53, %v10141_v28  ;;  %v10298_v45 = vadd.f32 %v4014_v57, %v10144_v54 }
 0x3e2   : > { %v3923_v61 = vpop.f32.mrf.mxu0  ;;  %v4016_v38 = vpop.f32.mrf.mxu1 }
 0x3e3   : > { %v10302_v36 = vadd.f32 %v3923_v61, %v10149_v0  ;;  %v10305_v60 = vadd.f32 %v4016_v38, %v10152_v48  ;;  %v2713_v48 = vadd.f32 %v10035_v30, %v10685_v18 }
 0x3e4   : > { %v3925_v4 = vpop.f32.mrf.mxu0  ;;  %v4018_v43 = vpop.f32.mrf.mxu1 }
 0x3e5   : > { %v10308_v27 = vadd.f32 %v3925_v4, %v10156_v3  ;;  %v10310_v28 = vadd.f32 %v4018_v43, %v3372_v50  ;;  %v3380_v9 = vadd.f32 %v10178_v13, %v2713_v48  ;;  %v10686_v50 = vld [vmem:[#allocation22_spill] sm:$0xff] }
 0x3e6   : > { %v3929_v21 = vpop.f32.mrf.mxu0  ;;  %v4022_v54 = vpop.f32.mrf.mxu1 }
 0x3e7   : > { %v10313_v42 = vadd.f32 %v3929_v21, %v10159_v37  ;;  %v10316_v44 = vadd.f32 %v4022_v54, %v10162_v34  ;;  %v10687_v54 = vld [vmem:[#allocation23_spill] sm:$0xff] }
 0x3e8   : > { %v3931_v0 = vpop.f32.mrf.mxu0  ;;  %v4024_v6 = vpop.f32.mrf.mxu1 }
 0x3e9   : > { %v10321_v53 = vadd.f32 %v3931_v0, %v10165_v41  ;;  %v10324_v3 = vadd.f32 %v4024_v6, %v10168_v2  ;;  %v10688_v0 = vld [vmem:[#allocation24_spill] sm:$0xff] }
 0x3ea   : > { %v3933_v57 = vpop.f32.mrf.mxu0  ;;  %v4026_v7 = vpop.f32.mrf.mxu1 }
 0x3eb   : > { %v10328_v37 = vadd.f32 %v3933_v57, %v10173_v47  ;;  %v10331_v34 = vadd.f32 %v4026_v7, %v10176_v24 }
 0x3ec   : > { %v3935_v61 = vpop.f32.mrf.mxu0  ;;  %v4028_v38 = vpop.f32.mrf.mxu1 }
 0x3ed   : > { %v10334_v30 = vadd.f32 %v3935_v61, %v10686_v50  ;;  %v10336_v41 = vadd.f32 %v4028_v38, %v3380_v9 }
 0x3ee   : > { %v3939_v4 = vpop.f32.mrf.mxu0  ;;  %v4032_v2 = vpop.f32.mrf.mxu1 }
 0x3ef   : > { %v10339_v43 = vadd.f32 %v3939_v4, %v10183_v29  ;;  %v10342_v13 = vadd.f32 %v4032_v2, %v10186_v14 }
 0x3f0   : > { %v3941_v47 = vpop.f32.mrf.mxu0  ;;  %v4034_v21 = vpop.f32.mrf.mxu1 }
 0x3f1   : > { %v10345_v24 = vadd.f32 %v3941_v47, %v10687_v54  ;;  %v10348_v6 = vadd.f32 %v4034_v21, %v10688_v0  ;;  %v7986_v54 = vld [vmem:[#allocation6 + $0x78] sm:$0xff]  }
 0x3f2   : > { %v3943_v18 = vpop.f32.mrf.mxu0  ;;  %v4036_v48 = vpop.f32.mrf.mxu1  ;;  %v7987_v0 = vld [vmem:[#allocation6 + $0x38] sm:$0xff]   ;;  %7196 = vmatprep.subr.bf16.mxu0 %v7986_v54 }
 0x3f3   : > { %v10351_v57 = vadd.f32 %v3943_v18, %v10199_v19  ;;  %v10354_v7 = vadd.f32 %v4036_v48, %v10202_v49  ;;  %7197 = vmatpush3.bf16.msra.mxu0 %v7987_v0  ;;  %v4793_v0 = vld [vmem:[%s10621_s6] sm:$0x3] }
 0x3f4   : > { %v3945_v29 = vpop.f32.mrf.mxu0  ;;  %v4038_v9 = vpop.f32.mrf.mxu1 }
 0x3f5   : > { %v10357_v14 = vadd.f32 %v3945_v29, %v10204_v59  ;;  %v10360_v61 = vadd.f32 %v4038_v9, %v10206_v39 }
 0x3f6   : > { %v3949_v38 = vpop.f32.mrf.mxu0  ;;  %v4042_v50 = vpop.f32.mrf.mxu1 }
 0x3f7   : > { %v10363_v4 = vadd.f32 %v3949_v38, %v10209_v58  ;;  %v10366_v2 = vadd.f32 %v4042_v50, %v10212_v31 }
 0x3f8   : > { %v10368_v19 = vpop.f32.mrf.mxu0  ;;  %v10370_v49 = vpop.f32.mrf.mxu1 }
 0x3fa   : > { %v10372_v47 = vpop.f32.mrf.mxu0  ;;  %v10374_v21 = vpop.f32.mrf.mxu1 }
 0x3fc   : > { %v10376_v59 = vpop.f32.mrf.mxu0  ;;  %v10378_v39 = vpop.f32.mrf.mxu1 }
 0x3fe   : > { %v10380_v58 = vpop.f32.mrf.mxu0  ;;  %v10382_v18 = vpop.f32.mrf.mxu1 }
 0x3ff   : > { %10689 = vst [vmem:[#allocation16_spill] sm:$0xff] %v10380_v58  ;;  %10690 = vst [vmem:[#allocation14_spill] sm:$0xff] %v10382_v18 }
 0x400   : > { %v10384_v31 = vpop.f32.mrf.mxu0  ;;  %v10386_v48 = vpop.f32.mrf.mxu1 }
 0x401   : > { %10691 = vst [vmem:[#allocation15_spill] sm:$0xff] %v10384_v31  ;;  %10692 = vst [vmem:[#allocation22_spill] sm:$0xff] %v10386_v48 }
 0x402   : > { %v10388_v29 = vpop.f32.mrf.mxu0  ;;  %v10390_v9 = vpop.f32.mrf.mxu1 }
 0x403   : > { %10693 = vst [vmem:[#allocation23_spill] sm:$0xff] %v10388_v29  ;;  %10694 = vst [vmem:[#allocation24_spill] sm:$0xff] %v10390_v9 }
 0x404   : > { %v10392_v38 = vpop.f32.mrf.mxu0  ;;  %v10394_v50 = vpop.f32.mrf.mxu1 }
 0x405   : > { %10695 = vst [vmem:[#allocation27_spill] sm:$0xff] %v10392_v38  ;;  %10696 = vst [vmem:[#allocation28_spill] sm:$0xff] %v10394_v50  ;;  %v10697_v38 = vld [vmem:[#allocation13_spill] sm:$0xff] }
 0x406   : > { %v10698_v31 = vsub.s32 0, %v10697_v38 }
 0x408   : > { %v10405_v50 = vrot.slane %v4793_v0, %v10698_v31 }
 0x417   : > { %v4569_v63 = vpop.f32.mrf.mxu0  ;;  %v4662_v35 = vpop.f32.mrf.mxu1 }
 0x418   : > { %v4721_v54 = vadd.f32 %v4569_v63, %v10261_v15  ;;  %v4723_v17 = vadd.f32 %v4662_v35, %v10264_v40  ;;  %v10699_v40 = vsub.s32 1, %v10697_v38 }
 0x419   : > { %v4571_v52 = vpop.f32.mrf.mxu0  ;;  %v4664_v48 = vpop.f32.mrf.mxu1 }
 0x41a   : > { %v4769_v8 = vmax.f32 %v4721_v54, %v4723_v17  ;;  %v4722_v29 = vadd.f32 %v4571_v52, %v10269_v26  ;;  %v4724_v9 = vadd.f32 %v4664_v48, %v10272_v33  ;;  %v10411_v46 = vrot.slane %v4793_v0, %v10699_v40 }
 0x41b   : > { %v4573_v20 = vpop.f32.mrf.mxu0  ;;  %v4666_v18 = vpop.f32.mrf.mxu1 }
 0x41c   : > { %v4770_v63 = vmax.f32 %v4722_v29, %v4724_v9  ;;  %v4725_v35 = vadd.f32 %v4573_v20, %v10276_v32  ;;  %v4727_v15 = vadd.f32 %v4666_v18, %v10279_v11  ;;  %v4805_v31 = vadd.f32 %v10405_v50, %v4769_v8 }
 0x41d   : > { %v4575_v17 = vpop.f32.mrf.mxu0  ;;  %v4668_v54 = vpop.f32.mrf.mxu1 }
 0x41e   : > { %v4771_v52 = vmax.f32 %v4725_v35, %v4727_v15  ;;  %v4726_v26 = vadd.f32 %v4575_v17, %v10282_v51  ;;  %v4728_v33 = vadd.f32 %v4668_v54, %v10284_v56  ;;  %v4806_v18 = vadd.f32 %v10411_v46, %v4770_v63 }
 0x41f   : > { %v4579_v48 = vpop.f32.mrf.mxu0  ;;  %v4672_v58 = vpop.f32.mrf.mxu1 }
 0x420   : > { %v4807_v29 = vadd.f32 %v10405_v50, %v4771_v52  ;;  %v4772_v20 = vmax.f32 %v4726_v26, %v4728_v33  ;;  %v4729_v32 = vadd.f32 %v4579_v48, %v10287_v5  ;;  %v4731_v11 = vadd.f32 %v4672_v58, %v10290_v22 }
 0x421   : > { %v4581_v9 = vpop.f32.mrf.mxu0  ;;  %v4674_v38 = vpop.f32.mrf.mxu1 }
 0x422   : > { %v10420_v0 = vpack.c.bf16 %v4807_v29, %v4805_v31  ;;  %v4808_v51 = vadd.f32 %v10411_v46, %v4772_v20  ;;  %v4773_v56 = vmax.f32 %v4729_v32, %v4731_v11  ;;  %v4730_v8 = vadd.f32 %v4581_v9, %v10295_v16 }
 0x423   : > { %v4732_v35 = vadd.f32 %v4674_v38, %v10298_v45  ;;  %v4583_v15 = vpop.f32.mrf.mxu0  ;;  %v4676_v40 = vpop.f32.mrf.mxu1 }
 0x424   : > { %v4733_v17 = vadd.f32 %v4583_v15, %v10302_v36  ;;  %v4735_v5 = vadd.f32 %v4676_v40, %v10305_v60  ;;  %v10427_v22 = vpack.c.bf16 %v4808_v51, %v4806_v18  ;;  %v4809_v16 = vadd.f32 %v10405_v50, %v4773_v56 }
 0x425   : > { %v4774_v58 = vmax.f32 %v4730_v8, %v4732_v35  ;;  %v4585_v63 = vpop.f32.mrf.mxu0  ;;  %v4678_v54 = vpop.f32.mrf.mxu1 }
 0x426   : > { %v4775_v52 = vmax.f32 %v4733_v17, %v4735_v5  ;;  %v4734_v26 = vadd.f32 %v4585_v63, %v10308_v27  ;;  %v4736_v33 = vadd.f32 %v4678_v54, %v10310_v28 }
 0x427   : > { %v4589_v31 = vpop.f32.mrf.mxu0  ;;  %v4682_v45 = vpop.f32.mrf.mxu1  ;;  %v4810_v20 = vadd.f32 %v10411_v46, %v4774_v58 }
 0x428   : > { %v4811_v48 = vadd.f32 %v10405_v50, %v4775_v52  ;;  %v4776_v29 = vmax.f32 %v4734_v26, %v4736_v33  ;;  %v4737_v36 = vadd.f32 %v4589_v31, %v10313_v42  ;;  %v4739_v60 = vadd.f32 %v4682_v45, %v10316_v44 }
 0x429   : > { %v4591_v32 = vpop.f32.mrf.mxu0  ;;  %v4684_v11 = vpop.f32.mrf.mxu1 }
 0x42a   : > { %v10436_v18 = vpack.c.bf16 %v4811_v48, %v4809_v16  ;;  %v4812_v27 = vadd.f32 %v10411_v46, %v4776_v29  ;;  %v4777_v28 = vmax.f32 %v4737_v36, %v4739_v60  ;;  %v4738_v9 = vadd.f32 %v4591_v32, %v10321_v53 }
 0x42b   : > { %v4740_v38 = vadd.f32 %v4684_v11, %v10324_v3  ;;  %v4593_v51 = vpop.f32.mrf.mxu0  ;;  %v4686_v56 = vpop.f32.mrf.mxu1 }
 0x42c   : > { %v4741_v8 = vadd.f32 %v4593_v51, %v10328_v37  ;;  %v4743_v42 = vadd.f32 %v4686_v56, %v10331_v34  ;;  %v10443_v44 = vpack.c.bf16 %v4812_v27, %v4810_v20  ;;  %v4813_v53 = vadd.f32 %v10405_v50, %v4777_v28 }
 0x42d   : > { %v4778_v35 = vmax.f32 %v4738_v9, %v4740_v38  ;;  %v4595_v15 = vpop.f32.mrf.mxu0  ;;  %v4688_v40 = vpop.f32.mrf.mxu1 }
 0x42e   : > { %v4779_v17 = vmax.f32 %v4741_v8, %v4743_v42  ;;  %v4742_v5 = vadd.f32 %v4595_v15, %v10334_v30  ;;  %v4744_v58 = vadd.f32 %v4688_v40, %v10336_v41  ;;  %v4096_v42 = vadd.f32 %v10370_v49, %v10218_v62 }
 0x42f   : > { %v4599_v63 = vpop.f32.mrf.mxu0  ;;  %v4692_v3 = vpop.f32.mrf.mxu1  ;;  %v4814_v26 = vadd.f32 %v10411_v46, %v4778_v35 }
 0x430   : > { %v4815_v54 = vadd.f32 %v10405_v50, %v4779_v17  ;;  %v4780_v52 = vmax.f32 %v4742_v5, %v4744_v58  ;;  %v4745_v37 = vadd.f32 %v4599_v63, %v10339_v43  ;;  %v4747_v34 = vadd.f32 %v4692_v3, %v10342_v13  ;;  %v10700_v58 = vld [vmem:[#allocation16_spill] sm:$0xff] }
 0x431   : > { %v4601_v33 = vpop.f32.mrf.mxu0  ;;  %v4694_v16 = vpop.f32.mrf.mxu1 }
 0x432   : > { %v10452_v31 = vpack.c.bf16 %v4815_v54, %v4813_v53  ;;  %v4816_v30 = vadd.f32 %v10411_v46, %v4780_v52  ;;  %v4781_v41 = vmax.f32 %v4745_v37, %v4747_v34  ;;  %v4746_v45 = vadd.f32 %v4601_v33, %v10345_v24  ;;  %v10701_v52 = vld [vmem:[#allocation17_spill] sm:$0xff]  ;;  %v10702_v37 = vld [vmem:[#allocation14_spill] sm:$0xff] }
 0x433   : > { %v4748_v48 = vadd.f32 %v4694_v16, %v10348_v6  ;;  %v4603_v29 = vpop.f32.mrf.mxu0  ;;  %v4696_v36 = vpop.f32.mrf.mxu1  ;;  %v4094_v24 = vadd.f32 %v10368_v19, %v10215_v25  ;;  %v4099_v25 = vadd.f32 %v10374_v21, %v10228_v55  ;;  %v4101_v53 = vadd.f32 %v10700_v58, %v10235_v10  ;;  %v10703_v33 = vld [vmem:[#allocation18_spill] sm:$0xff]  ;;  %v10704_v16 = vld [vmem:[#allocation15_spill] sm:$0xff] }
 0x434   : > { %v4749_v60 = vadd.f32 %v4603_v29, %v10351_v57  ;;  %v4751_v43 = vadd.f32 %v4696_v36, %v10354_v7  ;;  %v10459_v13 = vpack.c.bf16 %v4816_v30, %v4814_v26  ;;  %v4817_v6 = vadd.f32 %v10405_v50, %v4781_v41  ;;  %v10705_v36 = vld [vmem:[#allocation19_spill] sm:$0xff] }
 0x435   : > { %v4782_v20 = vmax.f32 %v4746_v45, %v4748_v48  ;;  %v4605_v32 = vpop.f32.mrf.mxu0  ;;  %v4698_v11 = vpop.f32.mrf.mxu1  ;;  %v4103_v34 = vadd.f32 %v10702_v37, %v10701_v52  ;;  %v4102_v30 = vadd.f32 %v10704_v16, %v10703_v33  ;;  %v7995_v33 = vld [vmem:[#allocation6 + $0x28] sm:$0xff]  }
 0x436   : > { %v4783_v27 = vmax.f32 %v4749_v60, %v4751_v43  ;;  %v4750_v28 = vadd.f32 %v4605_v32, %v10357_v14  ;;  %v4752_v9 = vadd.f32 %v4698_v11, %v10360_v61  ;;  %v4097_v14 = vadd.f32 %v10372_v47, %v10225_v1  ;;  %v10706_v60 = vld [vmem:[#allocation22_spill] sm:$0xff]  ;;  %v10708_v32 = vld [vmem:[#allocation23_spill] sm:$0xff]  ;;  %v7996_v16 = vld [vmem:[#allocation6 + $0xe8] sm:$0xff]  }
 0x437   : > { %v4609_v38 = vpop.f32.mrf.mxu0  ;;  %v4702_v51 = vpop.f32.mrf.mxu1  ;;  %v4818_v61 = vadd.f32 %v10411_v46, %v4782_v20  ;;  %v4100_v1 = vadd.f32 %v10378_v39, %v10232_v12  ;;  %v4104_v43 = vadd.f32 %v10706_v60, %v10705_v36  ;;  %v10707_v20 = vld [vmem:[#allocation20_spill] sm:$0xff]  ;;  %v8005_v36 = vld [vmem:[#allocation6 + $0x98] sm:$0xff]   ;;  %v8006_v60 = vld [vmem:[#allocation6 + $0x50] sm:$0xff]  }
 0x438   : > { %v4819_v57 = vadd.f32 %v10405_v50, %v4783_v27  ;;  %v4784_v7 = vmax.f32 %v4750_v28, %v4752_v9  ;;  %v4753_v56 = vadd.f32 %v4609_v38, %v10363_v4  ;;  %v4755_v8 = vadd.f32 %v4702_v51, %v10366_v2  ;;  %v10709_v27 = vld [vmem:[#allocation21_spill] sm:$0xff]  ;;  %v10710_v28 = vld [vmem:[#allocation24_spill] sm:$0xff] }
 0x439   : > { %v4611_v19 = vpop.f32.mrf.mxu0  ;;  %v4704_v35 = vpop.f32.mrf.mxu1  ;;  %v4098_v2 = vadd.f32 %v10376_v59, %v10230_v23  ;;  %v4105_v11 = vadd.f32 %v10708_v32, %v10707_v20  ;;  %v4107_v9 = vadd.f32 %v10710_v28, %v10709_v27  ;;  %v8008_v20 = vld [vmem:[#allocation6 + $0xd0] sm:$0xff]   ;;  %v8011_v27 = vld [vmem:[#allocation6 + $0x8] sm:$0xff]  }
 0x43a   : > { %v10476_v15 = vpack.c.bf16 %v4819_v57, %v4817_v6  ;;  %v4820_v40 = vadd.f32 %v10411_v46, %v4784_v7  ;;  %v4785_v4 = vmax.f32 %v4753_v56, %v4755_v8  ;;  %v4754_v17 = vadd.f32 %v4611_v19, %v4094_v24  ;;  %v10711_v8 = vld [vmem:[#allocation25_spill] sm:$0xff]  ;;  %v8009_v32 = vld [vmem:[#allocation6 + $0x90] sm:$0xff]  }
 0x43b   : > { %v4756_v62 = vadd.f32 %v4704_v35, %v4096_v42  ;;  %v4613_v49 = vpop.f32.mrf.mxu0  ;;  %v4706_v5 = vpop.f32.mrf.mxu1  ;;  %v10712_v42 = vld [vmem:[#allocation27_spill] sm:$0xff]  ;;  %v10713_v35 = vld [vmem:[#allocation26_spill] sm:$0xff]  ;;  %v8012_v28 = vld [vmem:[#allocation6 + $0xc8] sm:$0xff]  }
 0x43c   : > { %v4757_v55 = vadd.f32 %v4613_v49, %v4097_v14  ;;  %v4759_v47 = vadd.f32 %v4706_v5, %v4099_v25  ;;  %v10483_v21 = vpack.c.bf16 %v4820_v40, %v4818_v61  ;;  %v4821_v12 = vadd.f32 %v10405_v50, %v4785_v4  ;;  %v10714_v40 = vld [vmem:[#allocation28_spill] sm:$0xff] }
 0x43d   : > { %v4786_v63 = vmax.f32 %v4754_v17, %v4756_v62  ;;  %v4615_v3 = vpop.f32.mrf.mxu0  ;;  %v4708_v54 = vpop.f32.mrf.mxu1  ;;  %v4106_v14 = vadd.f32 %v10712_v42, %v10711_v8  ;;  %v4108_v4 = vadd.f32 %v10714_v40, %v10713_v35 }
 0x43e   : > { %v4787_v23 = vmax.f32 %v4757_v55, %v4759_v47  ;;  %v4758_v59 = vadd.f32 %v4615_v3, %v4098_v2  ;;  %v4760_v26 = vadd.f32 %v4708_v54, %v4100_v1 }
 0x43f   : > { %v4619_v39 = vpop.f32.mrf.mxu0  ;;  %v4712_v41 = vpop.f32.mrf.mxu1  ;;  %v4822_v24 = vadd.f32 %v10411_v46, %v4786_v63 }
 0x440   : > { %v4823_v45 = vadd.f32 %v10405_v50, %v4787_v23  ;;  %v4788_v48 = vmax.f32 %v4758_v59, %v4760_v26  ;;  %v4761_v10 = vadd.f32 %v4619_v39, %v4101_v53  ;;  %v4763_v29 = vadd.f32 %v4712_v41, %v4103_v34  ;;  %v7983_v59 = vld [vmem:[%s10620_s5 + $0x8] sm:$0x3f]   ;;  %v7988_v26 = vld [vmem:[#allocation6 + $0xf8] sm:$0xff]   ;;  %v7999_v39 = vld [vmem:[#allocation6 + $0x20] sm:$0xff]  }
 0x441   : > { %v4621_v6 = vpop.f32.mrf.mxu0  ;;  %v4714_v38 = vpop.f32.mrf.mxu1  ;;  %v8000_v41 = vld [vmem:[#allocation6 + $0xe0] sm:$0xff]  }
 0x442   : > { %v4837_v51 = vpack.c.bf16 %v4823_v45, %v4821_v12  ;;  %v4824_v57 = vadd.f32 %v10411_v46, %v4788_v48  ;;  %v4789_v7 = vmax.f32 %v4761_v10, %v4763_v29  ;;  %v4762_v56 = vadd.f32 %v4621_v6, %v4102_v30  ;;  %v7997_v30 = vld [vmem:[#allocation6 + $0xa8] sm:$0xff]   ;;  %v7998_v12 = vld [vmem:[#allocation6 + $0x60] sm:$0xff]   ;;  %v8002_v48 = vld [vmem:[#allocation6 + $0x58] sm:$0xff]  }
 0x443   : > { %v4764_v25 = vadd.f32 %v4714_v38, %v4104_v43  ;;  %v4623_v61 = vpop.f32.mrf.mxu0  ;;  %v4716_v19 = vpop.f32.mrf.mxu1  ;;  %v8001_v45 = vld [vmem:[#allocation6 + $0xa0] sm:$0xff]   ;;  %v8003_v10 = vld [vmem:[#allocation6 + $0x18] sm:$0xff]   ;;  %v8007_v43 = vld [vmem:[#allocation6 + $0x10] sm:$0xff]  }
 0x444   : > { %v4765_v17 = vadd.f32 %v4623_v61, %v4105_v11  ;;  %v4767_v2 = vadd.f32 %v4716_v19, %v4107_v9  ;;  %v4838_v62 = vpack.c.bf16 %v4824_v57, %v4822_v24  ;;  %v4825_v53 = vadd.f32 %v10405_v50, %v4789_v7  ;;  %v8004_v29 = vld [vmem:[#allocation6 + $0xd8] sm:$0xff]   ;;  %v8010_v11 = vld [vmem:[#allocation6 + $0x48] sm:$0xff]   ;;  %v8014_v9 = vld [vmem:[#allocation6 + $0x40] sm:$0xff]  }
 0x445   : > { %v4790_v49 = vmax.f32 %v4762_v56, %v4764_v25  ;;  %v4625_v5 = vpop.f32.mrf.mxu0  ;;  %v4718_v1 = vpop.f32.mrf.mxu1  ;;  %v8013_v24 = vld [vmem:[#allocation6 + $0x88] sm:$0xff]   ;;  %v8015_v6 = vld [vmem:[#allocation6] sm:$0xff]   ;;  %v8020_v7 = vld [vmem:[#allocation6 + $0x1f8] sm:$0xff]  }
 0x446   : > { %v4791_v55 = vmax.f32 %v4765_v17, %v4767_v2  ;;  %v4766_v47 = vadd.f32 %v4625_v5, %v4106_v14  ;;  %v4768_v58 = vadd.f32 %v4718_v1, %v4108_v4  ;;  %v8016_v38 = vld [vmem:[#allocation6 + $0xc0] sm:$0xff]  }
 0x447   : > { %v4826_v54 = vadd.f32 %v10411_v46, %v4790_v49  ;;  %v8017_v57 = vld [vmem:[#allocation6 + $0x80] sm:$0xff]  }
 0x448   : > { %v4827_v63 = vadd.f32 %v10405_v50, %v4791_v55  ;;  %v4792_v3 = vmax.f32 %v4766_v47, %v4768_v58  ;;  %v10715_v50 = vmov 0  }
 0x44a   : > { %v4828_v52 = vadd.f32 %v10411_v46, %v4792_v3  ;;  %v4839_v37 = vpack.c.bf16 %v4827_v63, %v4825_v53  ;;  %v7982_v46 = vld [vmem:[%s10620_s5] sm:$0xff]  }
 0x44c   : > { %v4840_v34 = vpack.c.bf16 %v4828_v52, %v4826_v54  ;;  %v4863_v23 = vsel %vm678_vm1, %v4839_v37, 0  ;;  %v8019_v37 = vld [vmem:[#allocation6 + $0x138] sm:$0xff]  }
 0x44e   : > { %7054 = vmatprep.subr.msk.bf16.mxu1 %vm678_vm1, %v4840_v34 }
 0x44f   : > { %4873 = vmatpush1.bf16.msra.mxu1 %v4863_v23 }
 0x450   : > { %4874 = vmatprep.subr.bf16.mxu1 %v4838_v62 }
 0x453   : > { %4875 = vmatpush1.bf16.msra.mxu1 %v4837_v51 }
 0x454   : > { %4876 = vmatprep.subr.bf16.mxu1 %v10483_v21 }
 0x457   : > { %4877 = vmatpush1.bf16.msra.mxu1 %v10476_v15 }
 0x458   : > { %4878 = vmatprep.subr.bf16.mxu1 %v10459_v13 }
 0x45b   : > { %4879 = vmatpush1.bf16.msra.mxu1 %v10452_v31 }
 0x45c   : > { %4880 = vmatprep.subr.bf16.mxu1 %v10443_v44 }
 0x45f   : > { %4881 = vmatpush1.bf16.msra.mxu1 %v10436_v18 }
 0x460   : > { %4882 = vmatprep.subr.bf16.mxu1 %v10427_v22 }
 0x463   : > { %4883 = vmatpush1.bf16.msra.mxu1 %v10420_v0 }
 0x464   : > { %7063 = vmatprep.subr.msk.bf16.mxu1 %vm678_vm1, %v4840_v34 }
 0x466   : > { %7055 = vmatmul.mubr.msk.bf16.vlgmr.msra.gmra.mxu1 %vm4855_vm6, %v7982_v46 }
 0x467   : > { %4947 = vmatpush1.bf16.msra.mxu1 %v4863_v23  ;;  %4910 = vmatprep.mubr.bf16.mxu1 %v10715_v50 }
 0x468   : > { %4948 = vmatprep.subr.bf16.mxu1 %v4838_v62 }
 0x46b   : > { %4949 = vmatpush1.bf16.msra.mxu1 %v4837_v51  ;;  %v8018_v51 = vld [vmem:[#allocation6 + $0x178] sm:$0xff]  }
 0x46c   : > { %4950 = vmatprep.subr.bf16.mxu1 %v10483_v21  ;;  %v7984_v21 = vld [vmem:[%s10620_s5 + $0x10] sm:$0xff]  }
 0x46e   : > { %7056 = vmatmul.mubr.msk.bf16.gmra.mxu1 %vm4855_vm6, %v7983_v59  ;;  %v8021_v59 = vld [vmem:[#allocation6 + $0x1b8] sm:$0xff]  }
 0x46f   : > { %4951 = vmatpush1.bf16.msra.mxu1 %v10476_v15  ;;  %4974 = vmatprep.mubr.bf16.mxu1 %v10715_v50  ;;  %v7994_v15 = vld [vmem:[#allocation6 + $0x68] sm:$0xff]  }
 0x470   : > { %4952 = vmatprep.subr.bf16.mxu1 %v10459_v13  ;;  %v7992_v13 = vld [vmem:[#allocation6 + $0xf0] sm:$0xff]  }
 0x473   : > { %4953 = vmatpush1.bf16.msra.mxu1 %v10452_v31  ;;  %v7991_v31 = vld [vmem:[#allocation6 + $0x30] sm:$0xff]  }
 0x474   : > { %4954 = vmatprep.subr.bf16.mxu1 %v10443_v44  ;;  %v7985_v44 = vld [vmem:[%s10620_s5 + $0x18] sm:$0x3f]  }
 0x477   : > { %4955 = vmatpush1.bf16.msra.mxu1 %v10436_v18  ;;  %v7989_v18 = vld [vmem:[#allocation6 + $0xb8] sm:$0xff]  }
 0x478   : > { %4956 = vmatprep.subr.bf16.mxu1 %v10427_v22  ;;  %v7990_v22 = vld [vmem:[#allocation6 + $0x70] sm:$0xff]  }
 0x479   : > { %7198 = vmatprep.subr.bf16.mxu0 %v7990_v22 }
 0x47a   : > { %7199 = vmatpush3.bf16.msra.mxu0 %v7991_v31  ;;  %v8023_v31 = vld [vmem:[#allocation6 + $0x130] sm:$0xff]  }
 0x47b   : > { %4957 = vmatpush1.bf16.msra.mxu1 %v10420_v0  ;;  %v7993_v0 = vld [vmem:[#allocation6 + $0xb0] sm:$0xff]   ;;  %7200 = vmatprep.subr.bf16.mxu0 %v7994_v15  ;;  %v8026_v15 = vld [vmem:[#allocation6 + $0x168] sm:$0xff]  }
 0x47c   : > { %7218 = vmatprep.subr.bf16.mxu1 %v7988_v26  ;;  %v8022_v26 = vld [vmem:[#allocation6 + $0x170] sm:$0xff]  }
 0x47e   : > { %7064 = vmatmul.mubr.msk.bf16.vlgmr.msra.gmra.mxu1 %vm4855_vm6, %v7984_v21  ;;  %7201 = vmatpush3.bf16.msra.mxu0 %v7995_v33 }
 0x47f   : > { %4984 = vmatprep.mubr.bf16.mxu1 %v10715_v50  ;;  %7219 = vmatpush3.bf16.msra.mxu1 %v7989_v18  ;;  %v8024_v18 = vld [vmem:[#allocation6 + $0x1f0] sm:$0xff]  }
 0x480   : > { %7220 = vmatprep.subr.bf16.mxu1 %v7992_v13  ;;  %7202 = vmatprep.subr.bf16.mxu0 %v7998_v12  ;;  %v8027_v12 = vld [vmem:[#allocation6 + $0x128] sm:$0xff]  }
 0x482   : > { %7203 = vmatpush3.bf16.msra.mxu0 %v7999_v39  ;;  %v8030_v39 = vld [vmem:[#allocation6 + $0x160] sm:$0xff]  }
 0x483   : > { %7221 = vmatpush3.bf16.msra.mxu1 %v7993_v0  ;;  %7204 = vmatprep.subr.bf16.mxu0 %v8002_v48  ;;  %v8031_v48 = vld [vmem:[#allocation6 + $0x120] sm:$0xff]  }
 0x484   : > { %7222 = vmatprep.subr.bf16.mxu1 %v7996_v16  ;;  %v8025_v16 = vld [vmem:[#allocation6 + $0x1b0] sm:$0xff]  }
 0x486   : > { %7065 = vmatmul.mubr.msk.bf16.gmra.mxu1 %vm4855_vm6, %v7985_v44  ;;  %7205 = vmatpush3.bf16.msra.mxu0 %v8003_v10  ;;  %v8034_v10 = vld [vmem:[#allocation6 + $0x158] sm:$0xff]  }
 0x487   : > { %7223 = vmatpush3.bf16.msra.mxu1 %v7997_v30  ;;  %7206 = vmatprep.subr.bf16.mxu0 %v8006_v60  ;;  %v8028_v30 = vld [vmem:[#allocation6 + $0x1e8] sm:$0xff]   ;;  %v8035_v60 = vld [vmem:[#allocation6 + $0x118] sm:$0xff]  }
 0x488   : > { %7224 = vmatprep.subr.bf16.mxu1 %v8000_v41  ;;  %v8029_v41 = vld [vmem:[#allocation6 + $0x1a8] sm:$0xff]  }
 0x48a   : > { %7207 = vmatpush3.bf16.msra.mxu0 %v8007_v43  ;;  %v8038_v43 = vld [vmem:[#allocation6 + $0x150] sm:$0xff]  }
 0x48b   : > { %7225 = vmatpush3.bf16.msra.mxu1 %v8001_v45  ;;  %7208 = vmatprep.subr.bf16.mxu0 %v8010_v11  ;;  %v8032_v45 = vld [vmem:[#allocation6 + $0x1e0] sm:$0xff]   ;;  %v8039_v11 = vld [vmem:[#allocation6 + $0x110] sm:$0xff]  }
 0x48c   : > { %7226 = vmatprep.subr.bf16.mxu1 %v8004_v29  ;;  %v8033_v29 = vld [vmem:[#allocation6 + $0x1a0] sm:$0xff]  }
 0x48e   : > { %7209 = vmatpush3.bf16.msra.mxu0 %v8011_v27 }
 0x48f   : > { %7227 = vmatpush3.bf16.msra.mxu1 %v8005_v36  ;;  %7210 = vmatprep.subr.bf16.mxu0 %v8014_v9  ;;  %v8036_v36 = vld [vmem:[#allocation6 + $0x1d8] sm:$0xff]   ;;  %v8041_v9 = vld [vmem:[#allocation6 + $0x190] sm:$0xff]  }
 0x490   : > { %7228 = vmatprep.subr.bf16.mxu1 %v8008_v20  ;;  %v8037_v20 = vld [vmem:[#allocation6 + $0x198] sm:$0xff]  }
 0x492   : > { %7211 = vmatpush3.bf16.msra.mxu0 %v8015_v6 }
 0x493   : > { %7229 = vmatpush3.bf16.msra.mxu1 %v8009_v32  ;;  %7240 = vmatprep.subr.bf16.mxu0 %v8018_v51  ;;  %v8040_v32 = vld [vmem:[#allocation6 + $0x1d0] sm:$0xff]   ;;  %v8046_v51 = vld [vmem:[#allocation6 + $0x140] sm:$0xff]  }
 0x494   : > { %7230 = vmatprep.subr.bf16.mxu1 %v8012_v28  ;;  %v8042_v28 = vld [vmem:[#allocation6 + $0x148] sm:$0xff]  }
 0x497   : > { %7231 = vmatpush3.bf16.msra.mxu1 %v8013_v24  ;;  %v8044_v24 = vld [vmem:[#allocation6 + $0x1c8] sm:$0xff]  }
 0x498   : > { %7232 = vmatprep.subr.bf16.mxu1 %v8016_v38  ;;  %v8043_v38 = vld [vmem:[#allocation6 + $0x108] sm:$0xff]  }
 0x49b   : > { %7233 = vmatpush3.bf16.msra.mxu1 %v8017_v57 }
 0x49c   : > { %7262 = vmatprep.subr.bf16.mxu1 %v8020_v7  ;;  %v8045_v7 = vld [vmem:[#allocation6 + $0x188] sm:$0xff]  }
 0x526   : > { %v4902_v56 = vpop.f32.mrf.mxu1 }
 0x528   : > { %v4904_v8 = vpop.f32.mrf.mxu1 }
 0x52a   : > { %v4906_v42 = vpop.f32.mrf.mxu1 }
 0x52c   : > { %v4908_v14 = vpop.f32.mrf.mxu1 }
 0x52e   : > { %v4912_v25 = vpop.f32.mrf.mxu1 }
 0x530   : > { %v10547_v61 = vpop.f32.mrf.mxu1 }
 0x532   : > { %v4916_v19 = vpop.f32.mrf.mxu1 }
 0x534   : > { %v10549_v35 = vpop.f32.mrf.mxu1 }
 0x53e   : > { %v4976_v40 = vpop.f32.mrf.mxu1 }
 0x53f   : > { %v4995_v17 = vmax.f32 %v4902_v56, %v4976_v40  ;;  %v8048_v56 = vld [vmem:[#allocation6 + $0x1c0] sm:$0xff]  }
 0x540   : > { %v4978_v4 = vpop.f32.mrf.mxu1 }
 0x541   : > { %v4996_v62 = vmax.f32 %v4904_v8, %v4978_v4  ;;  %v5003_v47 = vmax.f32 %v4995_v17, 0.0  ;;  %v8051_v4 = vld [vmem:[#allocation6 + $0x238] sm:$0xff]   ;;  %v8054_v17 = vld [vmem:[#allocation6 + $0x270] sm:$0xff]  }
 0x542   : > { %v4980_v2 = vpop.f32.mrf.mxu1 }
 0x543   : > { %v4997_v49 = vmax.f32 %v4906_v42, %v4980_v2  ;;  %v5004_v53 = vmax.f32 %v4996_v62, 0.0  ;;  %v8047_v42 = vld [vmem:[#allocation6 + $0x100] sm:$0xff]   ;;  %v8053_v2 = vld [vmem:[#allocation6 + $0x2b8] sm:$0xff]  }
 0x544   : > { %v4982_v5 = vpop.f32.mrf.mxu1 }
 0x545   : > { %v5005_v1 = vmax.f32 %v4997_v49, 0.0  ;;  %v4998_v55 = vmax.f32 %v4908_v14, %v4982_v5  ;;  %v8050_v14 = vld [vmem:[#allocation6 + $0x278] sm:$0xff]   ;;  %v8056_v49 = vld [vmem:[#allocation6 + $0x2f0] sm:$0xff]  }
 0x546   : > { %v4986_v58 = vpop.f32.mrf.mxu1 }
 0x547   : > { %v5006_v63 = vmax.f32 %v4998_v55, 0.0  ;;  %v10551_v3 = vpack.c.bf16 %v5005_v1, %v5003_v47  ;;  %v4999_v34 = vmax.f32 %v4912_v25, %v4986_v58  ;;  %v8055_v1 = vld [vmem:[#allocation6 + $0x230] sm:$0xff]   ;;  %v8058_v55 = vld [vmem:[#allocation6 + $0x268] sm:$0xff]  }
 0x548   : > { %v10553_v54 = vpop.f32.mrf.mxu1  ;;  %v8057_v47 = vld [vmem:[#allocation6 + $0x2b0] sm:$0xff]   ;;  %v8060_v58 = vld [vmem:[#allocation6 + $0x2e8] sm:$0xff]  }
 0x549   : > { %v5012_v52 = vpack.c.bf16 %v5006_v63, %v5004_v53  ;;  %v5226_v44 = vrot.slane %v10551_v3, 2  ;;  %v5007_v22 = vmax.f32 %v4999_v34, 0.0  ;;  %v5000_v57 = vmax.f32 %v10547_v61, %v10553_v54  ;;  %v8059_v53 = vld [vmem:[#allocation6 + $0x228] sm:$0xff]   ;;  %v8062_v63 = vld [vmem:[#allocation6 + $0x260] sm:$0xff]  }
 0x54a   : > { %v4990_v23 = vpop.f32.mrf.mxu1  ;;  %v5400_v61 = vrot.slane %v10551_v3, 4  ;;  %v5574_v62 = vrot.slane %v10551_v3, 6  ;;  %v8064_v54 = vld [vmem:[#allocation6 + $0x2e0] sm:$0xff]  }
 0x54b   : > { %5176 = vmatprep.mubr.bf16.mxu0 %v5012_v52  ;;  %v5227_v46 = vrot.slane %v5012_v52, 2  ;;  %v5401_v50 = vrot.slane %v5012_v52, 4  ;;  %v5001_v21 = vmax.f32 %v4916_v19, %v4990_v23  ;;  %v5575_v0 = vrot.slane %v5012_v52, 6  ;;  %v8049_v19 = vld [vmem:[#allocation6 + $0x180] sm:$0xff]   ;;  %v8068_v23 = vld [vmem:[#allocation6 + $0x2d8] sm:$0xff]  }
 0x54c   : > { %5177 = vmatmul.mubr.bf16.vlgmr.msra.gmra.mxu0 %v10551_v3  ;;  %v4992_v27 = vpop.f32.mrf.mxu1  ;;  %v5008_v25 = vmax.f32 %v5000_v57, 0.0  ;;  %v8061_v3 = vld [vmem:[#allocation6 + $0x2a8] sm:$0xff]   ;;  %v8063_v52 = vld [vmem:[#allocation6 + $0x220] sm:$0xff]  }
 0x54d   : > { %7241 = vmatpush3.bf16.msra.mxu0 %v8019_v37  ;;  %5358 = vmatprep.mubr.bf16.mxu1 %v5227_v46  ;;  %v5009_v13 = vmax.f32 %v5001_v21, 0.0  ;;  %v5002_v6 = vmax.f32 %v10549_v35, %v4992_v27  ;;  %v8052_v35 = vld [vmem:[#allocation6 + $0x2f8] sm:$0xff]   ;;  %v8065_v34 = vld [vmem:[#allocation6 + $0x2a0] sm:$0xff]   ;;  %v8071_v21 = vld [vmem:[#allocation6 + $0x210] sm:$0xff]  }
 0x54e   : > { %5532 = vmatprep.mubr.bf16.mxu0 %v5401_v50  ;;  %5359 = vmatmul.mubr.bf16.vlgmr.msra.gmra.mxu1 %v5226_v44  ;;  %v8066_v37 = vld [vmem:[#allocation6 + $0x258] sm:$0xff]   ;;  %v8070_v50 = vld [vmem:[#allocation6 + $0x250] sm:$0xff]   ;;  %v8074_v44 = vld [vmem:[#allocation6 + $0x248] sm:$0xff]  }
 0x54f   : > { %7263 = vmatpush3.bf16.msra.mxu1 %v8021_v59  ;;  %7242 = vmatprep.subr.bf16.mxu0 %v8022_v26  ;;  %v10557_v33 = vpack.c.bf16 %v5009_v13, %v5007_v22  ;;  %v5010_v8 = vmax.f32 %v5002_v6, 0.0  ;;  %v8067_v46 = vld [vmem:[#allocation6 + $0x218] sm:$0xff]   ;;  %v8072_v26 = vld [vmem:[#allocation6 + $0x2d0] sm:$0xff]   ;;  %v8076_v22 = vld [vmem:[#allocation6 + $0x2c8] sm:$0xff]  }
 0x550   : > { %5706 = vmatprep.mubr.bf16.mxu1 %v5575_v0  ;;  %7264 = vmatprep.subr.bf16.mxu1 %v8024_v18  ;;  %v8069_v59 = vld [vmem:[#allocation6 + $0x298] sm:$0xff]   ;;  %v8073_v18 = vld [vmem:[#allocation6 + $0x290] sm:$0xff]   ;;  %v8078_v13 = vld [vmem:[#allocation6 + $0x240] sm:$0xff]  }
 0x551   : > { %7243 = vmatpush3.bf16.msra.mxu0 %v8023_v31  ;;  %v10562_v40 = vpack.c.bf16 %v5010_v8, %v5008_v25  ;;  %v8075_v31 = vld [vmem:[#allocation6 + $0x208] sm:$0xff]   ;;  %v8093_v27 = vld [vmem:[#allocation6 + $0x310] sm:$0xff]   ;;  %v8097_v6 = vld [vmem:[#allocation6 + $0x300] sm:$0xff]  }
 0x552   : > { %7244 = vmatprep.subr.bf16.mxu0 %v8026_v15  ;;  %v8077_v0 = vld [vmem:[#allocation6 + $0x288] sm:$0xff]   ;;  %v8080_v15 = vld [vmem:[#allocation6 + $0x2c0] sm:$0xff]  }
 0x553   : > { %7265 = vmatpush3.bf16.msra.mxu1 %v8025_v16  ;;  %v5921_v5 = vrot.slane %v10562_v40, 2  ;;  %v8079_v16 = vld [vmem:[#allocation6 + $0x200] sm:$0xff]  }
 0x554   : > { %7266 = vmatprep.subr.bf16.mxu1 %v8028_v30  ;;  %v8082_v30 = vld [vmem:[#allocation6 + $0x378] sm:$0xff]   ;;  %v7082_v57 = vld [vmem:[%s10623_s8] ss:$0 sm:$0xff] }
 0x555   : > { %7245 = vmatpush3.bf16.msra.mxu0 %v8027_v12  ;;  %v8081_v12 = vld [vmem:[#allocation6 + $0x280] sm:$0xff]  }
 0x556   : > { %7246 = vmatprep.subr.bf16.mxu0 %v8030_v39  ;;  %v8083_v39 = vld [vmem:[#allocation6 + $0x338] sm:$0xff]  }
 0x557   : > { %7267 = vmatpush3.bf16.msra.mxu1 %v8029_v41  ;;  %v8084_v41 = vld [vmem:[#allocation6 + $0x370] sm:$0xff]  }
 0x558   : > { %7268 = vmatprep.subr.bf16.mxu1 %v8032_v45  ;;  %v6095_v45 = vrot.slane %v10562_v40, 4 }
 0x559   : > { %7247 = vmatpush3.bf16.msra.mxu0 %v8031_v48  ;;  %v5920_v48 = vrot.slane %v10557_v33, 2 }
 0x55a   : > { %7248 = vmatprep.subr.bf16.mxu0 %v8034_v10  ;;  %v8085_v10 = vld [vmem:[#allocation6 + $0x330] sm:$0xff]  }
 0x55b   : > { %7269 = vmatpush3.bf16.msra.mxu1 %v8033_v29  ;;  %v8086_v29 = vld [vmem:[#allocation6 + $0x368] sm:$0xff]  }
 0x55c   : > { %7270 = vmatprep.subr.bf16.mxu1 %v8036_v36  ;;  %v8087_v36 = vld [vmem:[#allocation6 + $0x328] sm:$0xff]  }
 0x55d   : > { %7249 = vmatpush3.bf16.msra.mxu0 %v8035_v60  ;;  %v8088_v60 = vld [vmem:[#allocation6 + $0x360] sm:$0xff]  }
 0x55e   : > { %7250 = vmatprep.subr.bf16.mxu0 %v8038_v43  ;;  %v8089_v43 = vld [vmem:[#allocation6 + $0x320] sm:$0xff]  }
 0x55f   : > { %7271 = vmatpush3.bf16.msra.mxu1 %v8037_v20  ;;  %v8090_v20 = vld [vmem:[#allocation6 + $0x358] sm:$0xff]  }
 0x560   : > { %7272 = vmatprep.subr.bf16.mxu1 %v8040_v32  ;;  %v8091_v32 = vld [vmem:[#allocation6 + $0x318] sm:$0xff]  }
 0x561   : > { %7251 = vmatpush3.bf16.msra.mxu0 %v8039_v11  ;;  %v8092_v11 = vld [vmem:[#allocation6 + $0x350] sm:$0xff]  }
 0x562   : > { %7252 = vmatprep.subr.bf16.mxu0 %v8042_v28  ;;  %v8094_v28 = vld [vmem:[#allocation6 + $0x348] sm:$0xff]  }
 0x563   : > { %7273 = vmatpush3.bf16.msra.mxu1 %v8041_v9  ;;  %v8095_v9 = vld [vmem:[#allocation6 + $0x308] sm:$0xff]  }
 0x564   : > { %7274 = vmatprep.subr.bf16.mxu1 %v8044_v24  ;;  %v8096_v24 = vld [vmem:[#allocation6 + $0x340] sm:$0xff]  }
 0x565   : > { %7253 = vmatpush3.bf16.msra.mxu0 %v8043_v38  ;;  %v6094_v38 = vrot.slane %v10557_v33, 4 }
 0x566   : > { %7254 = vmatprep.subr.bf16.mxu0 %v8046_v51 }
 0x567   : > { %7275 = vmatpush3.bf16.msra.mxu1 %v8045_v7 }
 0x568   : > { %7276 = vmatprep.subr.bf16.mxu1 %v8048_v56 }
 0x569   : > { %7255 = vmatpush3.bf16.msra.mxu0 %v8047_v42 }
 0x56a   : > { %7284 = vmatprep.subr.bf16.mxu0 %v8050_v14 }
 0x56b   : > { %7277 = vmatpush3.bf16.msra.mxu1 %v8049_v19 }
 0x56c   : > { %5533 = vmatmul.mubr.bf16.vlgmr.msra.gmra.mxu0 %v5400_v61  ;;  %7306 = vmatprep.subr.bf16.mxu1 %v8052_v35 }
 0x56d   : > { %7285 = vmatpush3.bf16.msra.mxu0 %v8051_v4  ;;  %5876 = vmatprep.mubr.bf16.mxu0 %v10562_v40 }
 0x56e   : > { %5707 = vmatmul.mubr.bf16.vlgmr.msra.gmra.mxu1 %v5574_v62  ;;  %7286 = vmatprep.subr.bf16.mxu0 %v8054_v17 }
 0x56f   : > { %7307 = vmatpush3.bf16.msra.mxu1 %v8053_v2  ;;  %6052 = vmatprep.mubr.bf16.mxu1 %v5921_v5 }
 0x570   : > { %7308 = vmatprep.subr.bf16.mxu1 %v8056_v49 }
 0x571   : > { %7287 = vmatpush3.bf16.msra.mxu0 %v8055_v1 }
 0x572   : > { %7288 = vmatprep.subr.bf16.mxu0 %v8058_v55 }
 0x573   : > { %7309 = vmatpush3.bf16.msra.mxu1 %v8057_v47 }
 0x574   : > { %7310 = vmatprep.subr.bf16.mxu1 %v8060_v58 }
 0x575   : > { %7289 = vmatpush3.bf16.msra.mxu0 %v8059_v53 }
 0x576   : > { %7290 = vmatprep.subr.bf16.mxu0 %v8062_v63 }
 0x577   : > { %7311 = vmatpush3.bf16.msra.mxu1 %v8061_v3 }
 0x578   : > { %7312 = vmatprep.subr.bf16.mxu1 %v8064_v54 }
 0x579   : > { %7291 = vmatpush3.bf16.msra.mxu0 %v8063_v52 }
 0x57a   : > { %7292 = vmatprep.subr.bf16.mxu0 %v8066_v37 }
 0x57b   : > { %7313 = vmatpush3.bf16.msra.mxu1 %v8065_v34 }
 0x57c   : > { %7314 = vmatprep.subr.bf16.mxu1 %v8068_v23 }
 0x57d   : > { %7293 = vmatpush3.bf16.msra.mxu0 %v8067_v46 }
 0x57e   : > { %7294 = vmatprep.subr.bf16.mxu0 %v8070_v50 }
 0x57f   : > { %7315 = vmatpush3.bf16.msra.mxu1 %v8069_v59 }
 0x580   : > { %7316 = vmatprep.subr.bf16.mxu1 %v8072_v26 }
 0x581   : > { %7295 = vmatpush3.bf16.msra.mxu0 %v8071_v21 }
 0x582   : > { %7296 = vmatprep.subr.bf16.mxu0 %v8074_v44 }
 0x583   : > { %7317 = vmatpush3.bf16.msra.mxu1 %v8073_v18 }
 0x584   : > { %7318 = vmatprep.subr.bf16.mxu1 %v8076_v22 }
 0x585   : > { %7297 = vmatpush3.bf16.msra.mxu0 %v8075_v31 }
 0x586   : > { %7298 = vmatprep.subr.bf16.mxu0 %v8078_v13 }
 0x587   : > { %7319 = vmatpush3.bf16.msra.mxu1 %v8077_v0 }
 0x588   : > { %7320 = vmatprep.subr.bf16.mxu1 %v8080_v15 }
 0x589   : > { %7299 = vmatpush3.bf16.msra.mxu0 %v8079_v16 }
 0x58a   : > { %7328 = vmatprep.subr.bf16.mxu0 %v8082_v30 }
 0x58b   : > { %7321 = vmatpush3.bf16.msra.mxu1 %v8081_v12 }
 0x58c   : > { %5877 = vmatmul.mubr.bf16.vlgmr.msra.gmra.mxu0 %v10557_v33 }
 0x58d   : > { %7329 = vmatpush3.bf16.msra.mxu0 %v8083_v39  ;;  %6226 = vmatprep.mubr.bf16.mxu0 %v6095_v45 }
 0x58e   : > { %6053 = vmatmul.mubr.bf16.vlgmr.msra.gmra.mxu1 %v5920_v48  ;;  %7330 = vmatprep.subr.bf16.mxu0 %v8084_v41 }
 0x591   : > { %7331 = vmatpush3.bf16.msra.mxu0 %v8085_v10 }
 0x592   : > { %7332 = vmatprep.subr.bf16.mxu0 %v8086_v29 }
 0x595   : > { %7333 = vmatpush3.bf16.msra.mxu0 %v8087_v36 }
 0x596   : > { %7334 = vmatprep.subr.bf16.mxu0 %v8088_v60 }
 0x599   : > { %7335 = vmatpush3.bf16.msra.mxu0 %v8089_v43 }
 0x59a   : > { %7336 = vmatprep.subr.bf16.mxu0 %v8090_v20 }
 0x59d   : > { %7337 = vmatpush3.bf16.msra.mxu0 %v8091_v32 }
 0x59e   : > { %7338 = vmatprep.subr.bf16.mxu0 %v8092_v11 }
 0x5a1   : > { %7339 = vmatpush3.bf16.msra.mxu0 %v8093_v27 }
 0x5a2   : > { %7340 = vmatprep.subr.bf16.mxu0 %v8094_v28 }
 0x5a5   : > { %7341 = vmatpush3.bf16.msra.mxu0 %v8095_v9 }
 0x5a6   : > { %7342 = vmatprep.subr.bf16.mxu0 %v8096_v24 }
 0x5a9   : > { %7343 = vmatpush3.bf16.msra.mxu0 %v8097_v6 }
 0x5ac   : > { %6227 = vmatmul.mubr.bf16.vlgmr.msra.gmra.mxu0 %v6094_v38 }
 0x60c   : > { %v7212_v51 = vpop.f32.mrf.mxu0 }
 0x60e   : > { %v7213_v7 = vpop.f32.mrf.mxu0  ;;  %v7234_v56 = vpop.f32.mrf.mxu1 }
 0x60f   : > { %v7214_v8 = vadd.f32 %v7213_v7, %v7212_v51 }
 0x610   : > { %v7215_v42 = vpop.f32.mrf.mxu0  ;;  %v7235_v14 = vpop.f32.mrf.mxu1 }
 0x611   : > { %v5190_v25 = vadd.f32 %v7214_v8, %v7082_v57  ;;  %v7236_v19 = vadd.f32 %v7235_v14, %v7234_v56 }
 0x612   : > { %v7216_v35 = vpop.f32.mrf.mxu0  ;;  %v7237_v40 = vpop.f32.mrf.mxu1 }
 0x613   : > { %v5366_v4 = vadd.f32 %v7236_v19, %v5190_v25 }
 0x614   : > { %v7238_v61 = vpop.f32.mrf.mxu1 }
 0x62c   : > { %v7256_v17 = vpop.f32.mrf.mxu0 }
 0x62e   : > { %v7257_v2 = vpop.f32.mrf.mxu0  ;;  %v7278_v33 = vpop.f32.mrf.mxu1 }
 0x62f   : > { %v7258_v34 = vadd.f32 %v7257_v2, %v7256_v17 }
 0x630   : > { %v7259_v62 = vpop.f32.mrf.mxu0  ;;  %v7279_v49 = vpop.f32.mrf.mxu1 }
 0x631   : > { %v5540_v23 = vadd.f32 %v7258_v34, %v5366_v4  ;;  %v7280_v46 = vadd.f32 %v7279_v49, %v7278_v33 }
 0x632   : > { %v7260_v5 = vpop.f32.mrf.mxu0  ;;  %v7281_v1 = vpop.f32.mrf.mxu1 }
 0x633   : > { %v5714_v59 = vadd.f32 %v7280_v46, %v5540_v23 }
 0x634   : > { %v7282_v55 = vpop.f32.mrf.mxu1 }
 0x64c   : > { %v7300_v47 = vpop.f32.mrf.mxu0 }
 0x64e   : > { %v7301_v58 = vpop.f32.mrf.mxu0  ;;  %v7322_v53 = vpop.f32.mrf.mxu1 }
 0x64f   : > { %v7302_v50 = vadd.f32 %v7301_v58, %v7300_v47 }
 0x650   : > { %v7303_v63 = vpop.f32.mrf.mxu0  ;;  %v7323_v3 = vpop.f32.mrf.mxu1 }
 0x651   : > { %v5884_v26 = vadd.f32 %v7302_v50, %v5714_v59  ;;  %v7324_v21 = vadd.f32 %v7323_v3, %v7322_v53 }
 0x652   : > { %v7304_v54 = vpop.f32.mrf.mxu0  ;;  %v7325_v52 = vpop.f32.mrf.mxu1 }
 0x653   : > { %v6060_v22 = vadd.f32 %v7324_v21, %v5884_v26 }
 0x654   : > { %v7326_v37 = vpop.f32.mrf.mxu1 }
 0x66c   : > { %v7344_v44 = vpop.f32.mrf.mxu0 }
 0x66e   : > { %v7345_v18 = vpop.f32.mrf.mxu0 }
 0x66f   : > { %v7346_v31 = vadd.f32 %v7345_v18, %v7344_v44 }
 0x670   : > { %v7347_v13 = vpop.f32.mrf.mxu0 }
 0x671   : > { %v6234_v0 = vadd.f32 %v7346_v31, %v6060_v22 }
 0x672   : > { %v7348_v15 = vpop.f32.mrf.mxu0 }
 0x673   : > { %6235 = vst [vmem:[%s358_s22] sm:$0xf] %v6234_v0 }
 0x674   : > { %8174 = shalt.err (!%p8171_p3)
}
 0x675   : > { %s8175_s29 = scalar_lea.hbm %s10580_s21, 64  ;;  %s8179_s17 = scalar_lea.hbm %s10624_s9, 128 }
 0x676   : > { %p8176_p2 = scmp.ne.s32.totalorder %s10580_s21, %s8175_s29  ;;  %p8180_p6 = scmp.lt.s32.totalorder %s10580_s21, %s10624_s9 }
 0x677   : > { %p8181_p9 = scmp.lt.s32.totalorder %s8179_s17, %s8175_s29 }
 0x678   : > { %p8177_p4 = pnand %p8176_p2, %p8327_p5 }
 0x679   : > { %p8182_p10 = por %p8181_p9, %p8180_p6 }
 0x67a   : > { %p8178_p13 = pneg %p8177_p4 }
 0x67c   : > { %p8183_p12 = pnand %p8182_p10, %p8178_p13 }
 0x67e   : > { %8186 = shalt.err (!%p8183_p12)
}
 0x67f   : > { %7358 = dma.vmem_to_hbm [thread:$0]  (%p8327_p5), %s6251_s25, 64, %s10580_s21, %s6237_s23  }
 0x680 PF: > { %p7375_p7 = scmp.ge.s32.totalorder %s8229_s12, 2  ;;  %s6262_s18 = sand.u32 1, %s8217_s30  }
 0x681   : > { %p10716_p8 = scmp.ne.s32.totalorder %s10640_s20, 0  ;;  %s6263_s24 = scalar_lea.sflag [#allocation5], %s6262_s18 }
 0x683   : > { %p7368_p11 = pnand %p7375_p7, %p10716_p8 }
 0x685   : > { %p7369_p0 = pneg %p7368_p11 }
 0x687   : > { %8212 = dma.done.wait (%p7369_p0), %s6263_s24, 64  }
 0x688   : > { %8214 = vsyncadd (%p7369_p0), %s6263_s24, 4294967232  ;;  %s10717_s13 = sld [smem:[#allocation12_spill]]  ;;  %p21_p1 = scmp.ge.s32.totalorder %s8314_s15, 4  }
 0x689   : > { %s10718_s30 = smov %s8221_s10  ;;  %s10719_s10 = smov %s8225_s11 }
 0x68a   : > { %s10721_s12 = smov %s8314_s15  ;;  %23 = sbr.rel (!%p21_p1) target bundleno = 5 (0x5), region = 112 }
 0x68e   : > { %s10720_s11 = smov %s10717_s13 }
 0x68f   :  { %6268 = vsyncpa [#allocation4], 1 }
 0x690   :  { %6270 = vsyncpa [#allocation4 + $0x1], 1 }
 0x691   :  { %6271 = vsyncpa [#allocation7], 1 }
 0x692   :  { %6272 = vsyncpa [#allocation5], 1 }
 0x693   :  { %6274 = vsyncpa [#allocation5 + $0x1], 1 }

</bundles_post_ra>
